<compile_context>
chip_gen: v5e
topology: v5e:2x2
jax: 0.10.0
libtpu: 0.0.40
codegen_flags: <defaults>
</compile_context>

<pallas_src>
import functools
import math

import jax
import jax.numpy as jnp
from jax.experimental import pallas as pl
from jax.experimental.pallas import tpu as pltpu

# ----------------------- small, PUNO-consistent config -----------------------
B = 2
IN_CH = 3
OUT_CH = 1
HIDDEN = 8
LIFT_CH = 16
PROJ_CH = 16
UNO_OUT = [8, 8, 8, 8]          # uno_out_channels
N_MODES = (4, 4)                # uno_n_modes per layer (n_dim = 2)
H = W = 16
N_LAYERS = len(UNO_OUT)
N_SAMPLES = 3
# horizontal_skips_map default: {n_layers - i - 1: i}  ->  {3: 0, 2: 1}
SKIPS_MAP = {N_LAYERS - i - 1: i for i in range(N_LAYERS // 2)}
N_PIX = B * H * W               # 512 lane-axis columns of the (C, N) layout


# ------------------------------- helpers --------------------------------------
def _bf16(x):
    return x.astype(jnp.bfloat16)


def _gelu(x):
    return jax.nn.gelu(x, approximate=True)


def _softplus(x):
    # stable softplus using only exp/log/abs/max (guaranteed Mosaic lowering)
    return jnp.maximum(x, 0.0) + jnp.log(1.0 + jnp.exp(-jnp.abs(x)))


def _vmem(n):
    return [pl.BlockSpec(memory_space=pltpu.MemorySpace.VMEM) for _ in range(n)]


def _pcall(kernel, out_shapes, *args):
    """Grid-less pallas_call: full arrays resident in VMEM, single block."""
    multi = isinstance(out_shapes, (tuple, list))
    n_out = len(out_shapes) if multi else 1
    return pl.pallas_call(
        kernel,
        out_shape=tuple(out_shapes) if multi else out_shapes,
        in_specs=_vmem(len(args)),
        out_specs=tuple(_vmem(n_out)) if multi else _vmem(1)[0],
    )(*args)


# ------------------------------- Pallas kernels -------------------------------
def lifting_kernel(x_ref, w1_ref, b1_ref, w2_ref, b2_ref, o_ref):
    # fused lifting MLP: o = W2 @ gelu(W1 @ x + b1) + b2   (channels-first)
    h = jnp.dot(_bf16(w1_ref[...]), _bf16(x_ref[...]),
                preferred_element_type=jnp.float32) + b1_ref[...]
    h = _gelu(h)
    o = jnp.dot(_bf16(w2_ref[...]), _bf16(h),
                preferred_element_type=jnp.float32) + b2_ref[...]
    o_ref[...] = o.astype(o_ref.dtype)


def spectral_mix_kernel(x_ref, w_ref, y_ref):
    # Per-mode complex channel matmul, real/imag stacked so one MXU dot/mode:
    #   x[m] = [xr | xi]            (B, 2Cin)
    #   w[m] = [[wr, wi],[-wi, wr]] (2Cin, 2Cout)   (precomputed at init)
    #   y[m] = [yr | yi]            (B, 2Cout)
    # Statically unrolled over the (small) set of kept modes of BOTH corners.
    M = x_ref.shape[0]
    for m in range(M):
        y_ref[m] = jnp.dot(_bf16(x_ref[m]), _bf16(w_ref[m]),
                           preferred_element_type=jnp.float32)


def fno_block_kernel(x_ref, xfno_ref, sw_ref, bias_ref, o_ref, *, activation):
    # fused fno-skip 1x1 conv + spectral output + spectral bias + activation
    y = jnp.dot(_bf16(sw_ref[...]), _bf16(x_ref[...]),
                preferred_element_type=jnp.float32)
    y = y + xfno_ref[...] + bias_ref[...]
    if activation == "gelu":
        y = _gelu(y)
    o_ref[...] = y.astype(o_ref.dtype)


def fno_block_hskip_kernel(x_ref, xfno_ref, sw_ref, bias_ref, hw_ref,
                           o_ref, hs_ref, *, activation):
    # same as fno_block_kernel + the U-net horizontal-skip 1x1 conv on the
    # block output (second output), saving one pallas_call + HBM roundtrip.
    y = jnp.dot(_bf16(sw_ref[...]), _bf16(x_ref[...]),
                preferred_element_type=jnp.float32)
    y = y + xfno_ref[...] + bias_ref[...]
    if activation == "gelu":
        y = _gelu(y)
    o_ref[...] = y.astype(o_ref.dtype)
    hs = jnp.dot(_bf16(hw_ref[...]), _bf16(y),
                 preferred_element_type=jnp.float32)
    hs_ref[...] = hs.astype(hs_ref.dtype)


def heads_kernel(x_ref, w1_ref, b1_ref, w2m_ref, b2m_ref, w2s_ref, b2s_ref,
                 mu_ref, sg_ref):
    # fused mu/sigma heads; first projections of both heads share one matmul
    # (weights concatenated along the output-channel/sublane axis at init).
    h = jnp.dot(_bf16(w1_ref[...]), _bf16(x_ref[...]),
                preferred_element_type=jnp.float32) + b1_ref[...]
    h = _gelu(h)
    h_mu = h[:PROJ_CH, :]
    h_sg = h[PROJ_CH:, :]
    mu = jnp.dot(_bf16(w2m_ref[...]), _bf16(h_mu),
                 preferred_element_type=jnp.float32) + b2m_ref[...]
    sg = jnp.dot(_bf16(w2s_ref[...]), _bf16(h_sg),
                 preferred_element_type=jnp.float32) + b2s_ref[...]
    mu_ref[...] = mu.astype(mu_ref.dtype)
    sg_ref[...] = (_softplus(sg) + 1e-6).astype(sg_ref.dtype)


# ------------------------------ SpectralConv glue ------------------------------
def spectral_conv(x_cf, blk, m1, m2):
    """x_cf: (Cin, N) channels-first-flat -> (Cout, N)."""
    Cin = x_cf.shape[0]
    Cout = blk["spec_bias"].shape[0]
    M = 2 * m1 * m2
    Wf = W // 2 + 1

    x4 = x_cf.reshape(Cin, B, H, W)
    # TODO(synk): rfft2/irfft2 have no Pallas TPU primitive; jnp.fft used here.
    x_ft = jnp.fft.rfft2(x4, axes=(2, 3), norm="forward")          # (Cin,B,H,Wf)
    # both kept-mode corners, stacked along the mode axis
    xc = jnp.concatenate(
        [x_ft[:, :, :m1, :m2], x_ft[:, :, H - m1:, :m2]], axis=2)  # (Cin,B,2m1,m2)
    xc = jnp.transpose(xc.reshape(Cin, B, M), (2, 1, 0))           # (M,B,Cin) c64
    xst = jnp.concatenate([jnp.real(xc), jnp.imag(xc)], axis=-1)   # (M,B,2Cin) f32

    y = _pcall(spectral_mix_kernel,
               jax.ShapeDtypeStruct((M, B, 2 * Cout), jnp.float32),
               xst, blk["wst"])                                    # (M,B,2Cout)

    yc = jax.lax.complex(y[..., :Cout], y[..., Cout:])             # (M,B,Cout)
    yc = jnp.transpose(yc, (2, 1, 0)).reshape(Cout, B, 2 * m1, m2)
    out_ft = jnp.zeros((Cout, B, H, Wf), dtype=jnp.complex64)
    out_ft = out_ft.at[:, :, :m1, :m2].set(yc[:, :, :m1])
    out_ft = out_ft.at[:, :, H - m1:, :m2].set(yc[:, :, m1:])
    x_out = jnp.fft.irfft2(out_ft, s=(H, W), axes=(2, 3), norm="forward")
    return x_out.reshape(Cout, B * H * W)


# ---------------------------------- forward ----------------------------------
def puno_forward(params, x_nchw, key, n_samples=N_SAMPLES):
    Bx, Ci, Hx, Wx = x_nchw.shape
    N = Bx * Hx * Wx
    # NCHW -> channels-first-flat (C, B*H*W): one tiny transpose; all kernel
    # outputs downstream are lane-dense (last dim = N = 512).
    x = jnp.transpose(x_nchw, (1, 0, 2, 3)).reshape(Ci, N).astype(jnp.float32)

    # fused lifting MLP (two 1x1 convs, gelu in between)
    lift = params["lift"]
    x = _pcall(lifting_kernel, jax.ShapeDtypeStruct((HIDDEN, N), jnp.float32),
               x, lift["w1"], lift["b1"], lift["w2"], lift["b2"])

    skip_outputs = {}
    for li in range(N_LAYERS):
        if li in SKIPS_MAP:
            # uno_scalings all 1 -> resample() is the identity here
            x = jnp.concatenate([x, skip_outputs[SKIPS_MAP[li]]], axis=0)
        blk = params["blocks"][li]
        x_fno = spectral_conv(x, blk, *N_MODES)
        # NOTE: gelu between FNO blocks, identity after the last (FNO convention)
        act = "gelu" if li < N_LAYERS - 1 else None
        Cout = UNO_OUT[li]
        if li in SKIPS_MAP.values():
            hs = params["hskips"][li]
            x, skip = _pcall(
                functools.partial(fno_block_hskip_kernel, activation=act),
                (jax.ShapeDtypeStruct((Cout, N), jnp.float32),
                 jax.ShapeDtypeStruct((Cout, N), jnp.float32)),
                x, x_fno, blk["skip_w"], blk["spec_bias"], hs["w"])
            skip_outputs[li] = skip
        else:
            x = _pcall(
                functools.partial(fno_block_kernel, activation=act),
                jax.ShapeDtypeStruct((Cout, N), jnp.float32),
                x, x_fno, blk["skip_w"], blk["spec_bias"])

    # fused mu / sigma projection MLPs (softplus(.)+1e-6 fused in-kernel)
    hd = params["heads"]
    mu, sg = _pcall(
        heads_kernel,
        (jax.ShapeDtypeStruct((OUT_CH, N), jnp.float32),
         jax.ShapeDtypeStruct((OUT_CH, N), jnp.float32)),
        x, hd["w1"], hd["b1"], hd["w2m"], hd["b2m"], hd["w2s"], hd["b2s"])

    mu = jnp.transpose(mu.reshape(OUT_CH, Bx, Hx, Wx), (1, 0, 2, 3))[..., None]
    sg = jnp.transpose(sg.reshape(OUT_CH, Bx, Hx, Wx), (1, 0, 2, 3))[..., None]
    eps = jax.random.normal(key, mu.shape[:-1] + (n_samples,), dtype=jnp.float32)
    return mu + sg * eps                                  # (B, out_ch, H, W, S)


# ------------------------------ parameter init ------------------------------
def _conv1x1_init(key, cin, cout, bias=True):
    # channels-first weights: (cout, cin); biases stored as (cout, 1) columns
    kw, kb = jax.random.split(key)
    bound = 1.0 / math.sqrt(cin)
    w = jax.random.uniform(kw, (cout, cin), jnp.float32, -bound, bound)
    b = (jax.random.uniform(kb, (cout, 1), jnp.float32, -bound, bound)
         if bias else jnp.zeros((cout, 1), jnp.float32))
    return w, b


def _spectral_init(key, cin, cout, m1, m2):
    # same init distribution as the classic SpectralConv2d; weights stored
    # pre-stacked as [[wr, wi], [-wi, wr]] so the kernel does 1 matmul / mode.
    scale = 1.0 / (cin * cout)
    ks = jax.random.split(key, 3)
    M = 2 * m1 * m2                    # corner-1 modes then corner-2 modes
    wr = scale * jax.random.uniform(ks[0], (M, cin, cout), jnp.float32)
    wi = scale * jax.random.uniform(ks[1], (M, cin, cout), jnp.float32)
    top = jnp.concatenate([wr, wi], axis=-1)             # (M, cin, 2cout)
    bot = jnp.concatenate([-wi, wr], axis=-1)            # (M, cin, 2cout)
    wst = jnp.concatenate([top, bot], axis=1)            # (M, 2cin, 2cout)
    spec_bias = 0.02 * jax.random.normal(ks[2], (cout, 1), jnp.float32)
    return {"wst": wst, "spec_bias": spec_bias}


def init_params(key):
    keys = jax.random.split(key, 32)
    ki = iter(keys)
    p = {}
    w1, b1 = _conv1x1_init(next(ki), IN_CH, LIFT_CH)
    w2, b2 = _conv1x1_init(next(ki), LIFT_CH, HIDDEN)
    p["lift"] = {"w1": w1, "b1": b1, "w2": w2, "b2": b2}

    p["blocks"], p["hskips"] = [], {}
    prev = HIDDEN
    for i in range(N_LAYERS):
        if i in SKIPS_MAP:
            prev = prev + UNO_OUT[SKIPS_MAP[i]]
        blk = _spectral_init(next(ki), prev, UNO_OUT[i], *N_MODES)
        sw, _ = _conv1x1_init(next(ki), prev, UNO_OUT[i], bias=False)  # fno skip
        blk["skip_w"] = sw
        p["blocks"].append(blk)
        if i in SKIPS_MAP.values():
            hw, _ = _conv1x1_init(next(ki), UNO_OUT[i], UNO_OUT[i], bias=False)
            p["hskips"][i] = {"w": hw}
        prev = UNO_OUT[i]

    # mu / sigma heads: first projections concatenated into one weight
    mw1, mb1 = _conv1x1_init(next(ki), prev, PROJ_CH)
    mw2, mb2 = _conv1x1_init(next(ki), PROJ_CH, OUT_CH)
    sw1, sb1 = _conv1x1_init(next(ki), prev, PROJ_CH)
    sw2, sb2 = _conv1x1_init(next(ki), PROJ_CH, OUT_CH)
    p["heads"] = {"w1": jnp.concatenate([mw1, sw1], axis=0),   # (2*PROJ_CH, prev)
                  "b1": jnp.concatenate([mb1, sb1], axis=0),   # (2*PROJ_CH, 1)
                  "w2m": mw2, "b2m": mb2, "w2s": sw2, "b2s": sb2}
    return p


# ------------------------------------ main ------------------------------------
if __name__ == "__main__":
    key = jax.random.PRNGKey(0)
    kp, kx, ks = jax.random.split(key, 3)
    params = init_params(kp)
    x = jax.random.normal(kx, (B, IN_CH, H, W), dtype=jnp.float32)

    fwd = jax.jit(functools.partial(puno_forward, n_samples=N_SAMPLES))
    out = fwd(params, x, ks)
    out = jax.block_until_ready(out)

    assert out.shape == (B, OUT_CH, H, W, N_SAMPLES), out.shape
    assert bool(jnp.all(jnp.isfinite(out)))
    print("KERNEL_OK")
</pallas_src>

<mosaic_0001>
module attributes {stable_mosaic.version = 11 : i64} {
  func.func @lifting_kernel(%arg0: memref<3x512xf32, #tpu.memory_space<vmem>>, %arg1: memref<16x3xf32, #tpu.memory_space<vmem>>, %arg2: memref<16x1xf32, #tpu.memory_space<vmem>>, %arg3: memref<8x16xf32, #tpu.memory_space<vmem>>, %arg4: memref<8x1xf32, #tpu.memory_space<vmem>>, %arg5: memref<8x512xf32, #tpu.memory_space<vmem>>) attributes {dimension_semantics = [], scalar_prefetch = 0 : i64, scratch_operands = 0 : i64, tpu.core_type = #tpu.core_type<tc>} {
    %c0 = arith.constant 0 : index
    %c0_0 = arith.constant 0 : index
    %0 = vector.load %arg1[%c0, %c0_0] : memref<16x3xf32, #tpu.memory_space<vmem>>, vector<16x3xf32>
    %1 = arith.truncf %0 : vector<16x3xf32> to vector<16x3xbf16>
    %c0_1 = arith.constant 0 : index
    %c0_2 = arith.constant 0 : index
    %2 = vector.load %arg0[%c0_1, %c0_2] : memref<3x512xf32, #tpu.memory_space<vmem>>, vector<3x512xf32>
    %3 = arith.truncf %2 : vector<3x512xf32> to vector<3x512xbf16>
    %cst = arith.constant dense<0.000000e+00> : vector<16x512xf32>
    %4 = tpu.matmul %1, %3, %cst {dimension_numbers = #tpu.dot_dimension_numbers<[1], [0], [0], [1], [0, 0, 1, 1], [], []>} : vector<16x3xbf16>, vector<3x512xbf16>, vector<16x512xf32> -> vector<16x512xf32>
    %c0_3 = arith.constant 0 : index
    %c0_4 = arith.constant 0 : index
    %5 = vector.load %arg2[%c0_3, %c0_4] : memref<16x1xf32, #tpu.memory_space<vmem>>, vector<16x1xf32>
    %6 = vector.broadcast %5 : vector<16x1xf32> to vector<16x512xf32>
    %7 = arith.addf %4, %6 : vector<16x512xf32>
    %8 = arith.mulf %7, %7 : vector<16x512xf32>
    %9 = arith.mulf %7, %8 : vector<16x512xf32>
    %cst_5 = arith.constant 4.471500e-02 : f32
    %10 = vector.broadcast %cst_5 : f32 to vector<16x512xf32>
    %11 = arith.mulf %10, %9 : vector<16x512xf32>
    %12 = arith.addf %7, %11 : vector<16x512xf32>
    %cst_6 = arith.constant 0.797884583 : f32
    %13 = vector.broadcast %cst_6 : f32 to vector<16x512xf32>
    %14 = arith.mulf %13, %12 : vector<16x512xf32>
    %15 = math.tanh %14 : vector<16x512xf32>
    %cst_7 = arith.constant 1.000000e+00 : f32
    %16 = vector.broadcast %cst_7 : f32 to vector<16x512xf32>
    %17 = arith.addf %16, %15 : vector<16x512xf32>
    %cst_8 = arith.constant 5.000000e-01 : f32
    %18 = vector.broadcast %cst_8 : f32 to vector<16x512xf32>
    %19 = arith.mulf %18, %17 : vector<16x512xf32>
    %20 = arith.mulf %7, %19 : vector<16x512xf32>
    %c0_9 = arith.constant 0 : index
    %c0_10 = arith.constant 0 : index
    %21 = vector.load %arg3[%c0_9, %c0_10] : memref<8x16xf32, #tpu.memory_space<vmem>>, vector<8x16xf32>
    %22 = arith.truncf %21 : vector<8x16xf32> to vector<8x16xbf16>
    %23 = arith.truncf %20 : vector<16x512xf32> to vector<16x512xbf16>
    %cst_11 = arith.constant dense<0.000000e+00> : vector<8x512xf32>
    %24 = tpu.matmul %22, %23, %cst_11 {dimension_numbers = #tpu.dot_dimension_numbers<[1], [0], [0], [1], [0, 0, 1, 1], [], []>} : vector<8x16xbf16>, vector<16x512xbf16>, vector<8x512xf32> -> vector<8x512xf32>
    %c0_12 = arith.constant 0 : index
    %c0_13 = arith.constant 0 : index
    %25 = vector.load %arg4[%c0_12, %c0_13] : memref<8x1xf32, #tpu.memory_space<vmem>>, vector<8x1xf32>
    %26 = vector.broadcast %25 : vector<8x1xf32> to vector<8x512xf32>
    %27 = arith.addf %24, %26 : vector<8x512xf32>
    %c0_14 = arith.constant 0 : index
    %c0_15 = arith.constant 0 : index
    %28 = vector.load %arg5[%c0_14, %c0_15] : memref<8x512xf32, #tpu.memory_space<vmem>>, vector<8x512xf32>
    tpu.vector_store %arg5[%c0_14, %c0_15], %27 {strides = array<i32>} : memref<8x512xf32, #tpu.memory_space<vmem>>, vector<8x512xf32>,
    return
  }
}

module attributes {stable_mosaic.version = 11 : i64} {
  func.func @spectral_mix_kernel(%arg0: memref<32x2x16xf32, #tpu.memory_space<vmem>>, %arg1: memref<32x16x16xf32, #tpu.memory_space<vmem>>, %arg2: memref<32x2x16xf32, #tpu.memory_space<vmem>>) attributes {dimension_semantics = [], scalar_prefetch = 0 : i64, scratch_operands = 0 : i64, tpu.core_type = #tpu.core_type<tc>} {
    %c0 = arith.constant 0 : index
    %c0_0 = arith.constant 0 : index
    %c0_1 = arith.constant 0 : index
    %0 = vector.load %arg0[%c0, %c0_0, %c0_1] : memref<32x2x16xf32, #tpu.memory_space<vmem>>, vector<1x2x16xf32>
    %1 = vector.shape_cast %0 : vector<1x2x16xf32> to vector<2x16xf32>
    %2 = arith.truncf %1 : vector<2x16xf32> to vector<2x16xbf16>
    %c0_2 = arith.constant 0 : index
    %c0_3 = arith.constant 0 : index
    %c0_4 = arith.constant 0 : index
    %3 = vector.load %arg1[%c0_2, %c0_3, %c0_4] : memref<32x16x16xf32, #tpu.memory_space<vmem>>, vector<1x16x16xf32>
    %4 = vector.shape_cast %3 : vector<1x16x16xf32> to vector<16x16xf32>
    %5 = arith.truncf %4 : vector<16x16xf32> to vector<16x16xbf16>
    %cst = arith.constant dense<0.000000e+00> : vector<2x16xf32>
    %6 = tpu.matmul %2, %5, %cst {dimension_numbers = #tpu.dot_dimension_numbers<[1], [0], [0], [1], [0, 0, 1, 1], [], []>} : vector<2x16xbf16>, vector<16x16xbf16>, vector<2x16xf32> -> vector<2x16xf32>
    %c0_5 = arith.constant 0 : index
    %c0_6 = arith.constant 0 : index
    %c0_7 = arith.constant 0 : index
    %7 = vector.load %arg2[%c0_5, %c0_6, %c0_7] : memref<32x2x16xf32, #tpu.memory_space<vmem>>, vector<1x2x16xf32>
    %8 = vector.shape_cast %7 : vector<1x2x16xf32> to vector<2x16xf32>
    %9 = vector.shape_cast %6 : vector<2x16xf32> to vector<1x2x16xf32>
    tpu.vector_store %arg2[%c0_5, %c0_6, %c0_7], %9 {strides = array<i32>} : memref<32x2x16xf32, #tpu.memory_space<vmem>>, vector<1x2x16xf32>,
    %c1 = arith.constant 1 : index
    %c0_8 = arith.constant 0 : index
    %c0_9 = arith.constant 0 : index
    %10 = vector.load %arg0[%c1, %c0_8, %c0_9] : memref<32x2x16xf32, #tpu.memory_space<vmem>>, vector<1x2x16xf32>
    %11 = vector.shape_cast %10 : vector<1x2x16xf32> to vector<2x16xf32>
    %12 = arith.truncf %11 : vector<2x16xf32> to vector<2x16xbf16>
    %c1_10 = arith.constant 1 : index
    %c0_11 = arith.constant 0 : index
    %c0_12 = arith.constant 0 : index
    %13 = vector.load %arg1[%c1_10, %c0_11, %c0_12] : memref<32x16x16xf32, #tpu.memory_space<vmem>>, vector<1x16x16xf32>
    %14 = vector.shape_cast %13 : vector<1x16x16xf32> to vector<16x16xf32>
    %15 = arith.truncf %14 : vector<16x16xf32> to vector<16x16xbf16>
    %cst_13 = arith.constant dense<0.000000e+00> : vector<2x16xf32>
    %16 = tpu.matmul %12, %15, %cst_13 {dimension_numbers = #tpu.dot_dimension_numbers<[1], [0], [0], [1], [0, 0, 1, 1], [], []>} : vector<2x16xbf16>, vector<16x16xbf16>, vector<2x16xf32> -> vector<2x16xf32>
    %c1_14 = arith.constant 1 : index
    %c0_15 = arith.constant 0 : index
    %c0_16 = arith.constant 0 : index
    %17 = vector.load %arg2[%c1_14, %c0_15, %c0_16] : memref<32x2x16xf32, #tpu.memory_space<vmem>>, vector<1x2x16xf32>
    %18 = vector.shape_cast %17 : vector<1x2x16xf32> to vector<2x16xf32>
    %19 = vector.shape_cast %16 : vector<2x16xf32> to vector<1x2x16xf32>
    tpu.vector_store %arg2[%c1_14, %c0_15, %c0_16], %19 {strides = array<i32>} : memref<32x2x16xf32, #tpu.memory_space<vmem>>, vector<1x2x16xf32>,
    %c2 = arith.constant 2 : index
    %c0_17 = arith.constant 0 : index
    %c0_18 = arith.constant 0 : index
    %20 = vector.load %arg0[%c2, %c0_17, %c0_18] : memref<32x2x16xf32, #tpu.memory_space<vmem>>, vector<1x2x16xf32>
    %21 = vector.shape_cast %20 : vector<1x2x16xf32> to vector<2x16xf32>
    %22 = arith.truncf %21 : vector<2x16xf32> to vector<2x16xbf16>
    %c2_19 = arith.constant 2 : index
    %c0_20 = arith.constant 0 : index
    %c0_21 = arith.constant 0 : index
    %23 = vector.load %arg1[%c2_19, %c0_20, %c0_21] : memref<32x16x16xf32, #tpu.memory_space<vmem>>, vector<1x16x16xf32>
    %24 = vector.shape_cast %23 : vector<1x16x16xf32> to vector<16x16xf32>
    %25 = arith.truncf %24 : vector<16x16xf32> to vector<16x16xbf16>
    %cst_22 = arith.constant dense<0.000000e+00> : vector<2x16xf32>
    %26 = tpu.matmul %22, %25, %cst_22 {dimension_numbers = #tpu.dot_dimension_numbers<[1], [0], [0], [1], [0, 0, 1, 1], [], []>} : vector<2x16xbf16>, vector<16x16xbf16>, vector<2x16xf32> -> vector<2x16xf32>
    %c2_23 = arith.constant 2 : index
    %c0_24 = arith.constant 0 : index
    %c0_25 = arith.constant 0 : index
    %27 = vector.load %arg2[%c2_23, %c0_24, %c0_25] : memref<32x2x16xf32, #tpu.memory_space<vmem>>, vector<1x2x16xf32>
    %28 = vector.shape_cast %27 : vector<1x2x16xf32> to vector<2x16xf32>
    %29 = vector.shape_cast %26 : vector<2x16xf32> to vector<1x2x16xf32>
    tpu.vector_store %arg2[%c2_23, %c0_24, %c0_25], %29 {strides = array<i32>} : memref<32x2x16xf32, #tpu.memory_space<vmem>>, vector<1x2x16xf32>,
    %c3 = arith.constant 3 : index
    %c0_26 = arith.constant 0 : index
    %c0_27 = arith.constant 0 : index
    %30 = vector.load %arg0[%c3, %c0_26, %c0_27] : memref<32x2x16xf32, #tpu.memory_space<vmem>>, vector<1x2x16xf32>
    %31 = vector.shape_cast %30 : vector<1x2x16xf32> to vector<2x16xf32>
    %32 = arith.truncf %31 : vector<2x16xf32> to vector<2x16xbf16>
    %c3_28 = arith.constant 3 : index
    %c0_29 = arith.constant 0 : index
    %c0_30 = arith.constant 0 : index
    %33 = vector.load %arg1[%c3_28, %c0_29, %c0_30] : memref<32x16x16xf32, #tpu.memory_space<vmem>>, vector<1x16x16xf32>
    %34 = vector.shape_cast %33 : vector<1x16x16xf32> to vector<16x16xf32>
    %35 = arith.truncf %34 : vector<16x16xf32> to vector<16x16xbf16>
    %cst_31 = arith.constant dense<0.000000e+00> : vector<2x16xf32>
    %36 = tpu.matmul %32, %35, %cst_31 {dimension_numbers = #tpu.dot_dimension_numbers<[1], [0], [0], [1], [0, 0, 1, 1], [], []>} : vector<2x16xbf16>, vector<16x16xbf16>, vector<2x16xf32> -> vector<2x16xf32>
    %c3_32 = arith.constant 3 : index
    %c0_33 = arith.constant 0 : index
    %c0_34 = arith.constant 0 : index
    %37 = vector.load %arg2[%c3_32, %c0_33, %c0_34] : memref<32x2x16xf32, #tpu.memory_space<vmem>>, vector<1x2x16xf32>
    %38 = vector.shape_cast %37 : vector<1x2x16xf32> to vector<2x16xf32>
    %39 = vector.shape_cast %36 : vector<2x16xf32> to vector<1x2x16xf32>
    tpu.vector_store %arg2[%c3_32, %c0_33, %c0_34], %39 {strides = array<i32>} : memref<32x2x16xf32, #tpu.memory_space<vmem>>, vector<1x2x16xf32>,
    %c4 = arith.constant 4 : index
    %c0_35 = arith.constant 0 : index
    %c0_36 = arith.constant 0 : index
    %40 = vector.load %arg0[%c4, %c0_35, %c0_36] : memref<32x2x16xf32, #tpu.memory_space<vmem>>, vector<1x2x16xf32>
    %41 = vector.shape_cast %40 : vector<1x2x16xf32> to vector<2x16xf32>
    %42 = arith.truncf %41 : vector<2x16xf32> to vector<2x16xbf16>
    %c4_37 = arith.constant 4 : index
    %c0_38 = arith.constant 0 : index
    %c0_39 = arith.constant 0 : index
    %43 = vector.load %arg1[%c4_37, %c0_38, %c0_39] : memref<32x16x16xf32, #tpu.memory_space<vmem>>, vector<1x16x16xf32>
    %44 = vector.shape_cast %43 : vector<1x16x16xf32> to vector<16x16xf32>
    %45 = arith.truncf %44 : vector<16x16xf32> to vector<16x16xbf16>
    %cst_40 = arith.constant dense<0.000000e+00> : vector<2x16xf32>
    %46 = tpu.matmul %42, %45, %cst_40 {dimension_numbers = #tpu.dot_dimension_numbers<[1], [0], [0], [1], [0, 0, 1, 1], [], []>} : vector<2x16xbf16>, vector<16x16xbf16>, vector<2x16xf32> -> vector<2x16xf32>
    %c4_41 = arith.constant 4 : index
    %c0_42 = arith.constant 0 : index
    %c0_43 = arith.constant 0 : index
    %47 = vector.load %arg2[%c4_41, %c0_42, %c0_43] : memref<32x2x16xf32, #tpu.memory_space<vmem>>, vector<1x2x16xf32>
    %48 = vector.shape_cast %47 : vector<1x2x16xf32> to vector<2x16xf32>
    %49 = vector.shape_cast %46 : vector<2x16xf32> to vector<1x2x16xf32>
    tpu.vector_store %arg2[%c4_41, %c0_42, %c0_43], %49 {strides = array<i32>} : memref<32x2x16xf32, #tpu.memory_space<vmem>>, vector<1x2x16xf32>,
    %c5 = arith.constant 5 : index
    %c0_44 = arith.constant 0 : index
    %c0_45 = arith.constant 0 : index
    %50 = vector.load %arg0[%c5, %c0_44, %c0_45] : memref<32x2x16xf32, #tpu.memory_space<vmem>>, vector<1x2x16xf32>
    %51 = vector.shape_cast %50 : vector<1x2x16xf32> to vector<2x16xf32>
    %52 = arith.truncf %51 : vector<2x16xf32> to vector<2x16xbf16>
    %c5_46 = arith.constant 5 : index
    %c0_47 = arith.constant 0 : index
    %c0_48 = arith.constant 0 : index
    %53 = vector.load %arg1[%c5_46, %c0_47, %c0_48] : memref<32x16x16xf32, #tpu.memory_space<vmem>>, vector<1x16x16xf32>
    %54 = vector.shape_cast %53 : vector<1x16x16xf32> to vector<16x16xf32>
    %55 = arith.truncf %54 : vector<16x16xf32> to vector<16x16xbf16>
    %cst_49 = arith.constant dense<0.000000e+00> : vector<2x16xf32>
    %56 = tpu.matmul %52, %55, %cst_49 {dimension_numbers = #tpu.dot_dimension_numbers<[1], [0], [0], [1], [0, 0, 1, 1], [], []>} : vector<2x16xbf16>, vector<16x16xbf16>, vector<2x16xf32> -> vector<2x16xf32>
    %c5_50 = arith.constant 5 : index
    %c0_51 = arith.constant 0 : index
    %c0_52 = arith.constant 0 : index
    %57 = vector.load %arg2[%c5_50, %c0_51, %c0_52] : memref<32x2x16xf32, #tpu.memory_space<vmem>>, vector<1x2x16xf32>
    %58 = vector.shape_cast %57 : vector<1x2x16xf32> to vector<2x16xf32>
    %59 = vector.shape_cast %56 : vector<2x16xf32> to vector<1x2x16xf32>
    tpu.vector_store %arg2[%c5_50, %c0_51, %c0_52], %59 {strides = array<i32>} : memref<32x2x16xf32, #tpu.memory_space<vmem>>, vector<1x2x16xf32>,
    %c6 = arith.constant 6 : index
    %c0_53 = arith.constant 0 : index
    %c0_54 = arith.constant 0 : index
    %60 = vector.load %arg0[%c6, %c0_53, %c0_54] : memref<32x2x16xf32, #tpu.memory_space<vmem>>, vector<1x2x16xf32>
    %61 = vector.shape_cast %60 : vector<1x2x16xf32> to vector<2x16xf32>
    %62 = arith.truncf %61 : vector<2x16xf32> to vector<2x16xbf16>
    %c6_55 = arith.constant 6 : index
    %c0_56 = arith.constant 0 : index
    %c0_57 = arith.constant 0 : index
    %63 = vector.load %arg1[%c6_55, %c0_56, %c0_57] : memref<32x16x16xf32, #tpu.memory_space<vmem>>, vector<1x16x16xf32>
    %64 = vector.shape_cast %63 : vector<1x16x16xf32> to vector<16x16xf32>
    %65 = arith.truncf %64 : vector<16x16xf32> to vector<16x16xbf16>
    %cst_58 = arith.constant dense<0.000000e+00> : vector<2x16xf32>
    %66 = tpu.matmul %62, %65, %cst_58 {dimension_numbers = #tpu.dot_dimension_numbers<[1], [0], [0], [1], [0, 0, 1, 1], [], []>} : vector<2x16xbf16>, vector<16x16xbf16>, vector<2x16xf32> -> vector<2x16xf32>
    %c6_59 = arith.constant 6 : index
    %c0_60 = arith.constant 0 : index
    %c0_61 = arith.constant 0 : index
    %67 = vector.load %arg2[%c6_59, %c0_60, %c0_61] : memref<32x2x16xf32, #tpu.memory_space<vmem>>, vector<1x2x16xf32>
    %68 = vector.shape_cast %67 : vector<1x2x16xf32> to vector<2x16xf32>
    %69 = vector.shape_cast %66 : vector<2x16xf32> to vector<1x2x16xf32>
    tpu.vector_store %arg2[%c6_59, %c0_60, %c0_61], %69 {strides = array<i32>} : memref<32x2x16xf32, #tpu.memory_space<vmem>>, vector<1x2x16xf32>,
    %c7 = arith.constant 7 : index
    %c0_62 = arith.constant 0 : index
    %c0_63 = arith.constant 0 : index
    %70 = vector.load %arg0[%c7, %c0_62, %c0_63] : memref<32x2x16xf32, #tpu.memory_space<vmem>>, vector<1x2x16xf32>
    %71 = vector.shape_cast %70 : vector<1x2x16xf32> to vector<2x16xf32>
    %72 = arith.truncf %71 : vector<2x16xf32> to vector<2x16xbf16>
    %c7_64 = arith.constant 7 : index
    %c0_65 = arith.constant 0 : index
    %c0_66 = arith.constant 0 : index
    %73 = vector.load %arg1[%c7_64, %c0_65, %c0_66] : memref<32x16x16xf32, #tpu.memory_space<vmem>>, vector<1x16x16xf32>
    %74 = vector.shape_cast %73 : vector<1x16x16xf32> to vector<16x16xf32>
    %75 = arith.truncf %74 : vector<16x16xf32> to vector<16x16xbf16>
    %cst_67 = arith.constant dense<0.000000e+00> : vector<2x16xf32>
    %76 = tpu.matmul %72, %75, %cst_67 {dimension_numbers = #tpu.dot_dimension_numbers<[1], [0], [0], [1], [0, 0, 1, 1], [], []>} : vector<2x16xbf16>, vector<16x16xbf16>, vector<2x16xf32> -> vector<2x16xf32>
    %c7_68 = arith.constant 7 : index
    %c0_69 = arith.constant 0 : index
    %c0_70 = arith.constant 0 : index
    %77 = vector.load %arg2[%c7_68, %c0_69, %c0_70] : memref<32x2x16xf32, #tpu.memory_space<vmem>>, vector<1x2x16xf32>
    %78 = vector.shape_cast %77 : vector<1x2x16xf32> to vector<2x16xf32>
    %79 = vector.shape_cast %76 : vector<2x16xf32> to vector<1x2x16xf32>
    tpu.vector_store %arg2[%c7_68, %c0_69, %c0_70], %79 {strides = array<i32>} : memref<32x2x16xf32, #tpu.memory_space<vmem>>, vector<1x2x16xf32>,
    %c8 = arith.constant 8 : index
    %c0_71 = arith.constant 0 : index
    %c0_72 = arith.constant 0 : index
    %80 = vector.load %arg0[%c8, %c0_71, %c0_72] : memref<32x2x16xf32, #tpu.memory_space<vmem>>, vector<1x2x16xf32>
    %81 = vector.shape_cast %80 : vector<1x2x16xf32> to vector<2x16xf32>
    %82 = arith.truncf %81 : vector<2x16xf32> to vector<2x16xbf16>
    %c8_73 = arith.constant 8 : index
    %c0_74 = arith.constant 0 : index
    %c0_75 = arith.constant 0 : index
    %83 = vector.load %arg1[%c8_73, %c0_74, %c0_75] : memref<32x16x16xf32, #tpu.memory_space<vmem>>, vector<1x16x16xf32>
    %84 = vector.shape_cast %83 : vector<1x16x16xf32> to vector<16x16xf32>
    %85 = arith.truncf %84 : vector<16x16xf32> to vector<16x16xbf16>
    %cst_76 = arith.constant dense<0.000000e+00> : vector<2x16xf32>
    %86 = tpu.matmul %82, %85, %cst_76 {dimension_numbers = #tpu.dot_dimension_numbers<[1], [0], [0], [1], [0, 0, 1, 1], [], []>} : vector<2x16xbf16>, vector<16x16xbf16>, vector<2x16xf32> -> vector<2x16xf32>
    %c8_77 = arith.constant 8 : index
    %c0_78 = arith.constant 0 : index
    %c0_79 = arith.constant 0 : index
    %87 = vector.load %arg2[%c8_77, %c0_78, %c0_79] : memref<32x2x16xf32, #tpu.memory_space<vmem>>, vector<1x2x16xf32>
    %88 = vector.shape_cast %87 : vector<1x2x16xf32> to vector<2x16xf32>
    %89 = vector.shape_cast %86 : vector<2x16xf32> to vector<1x2x16xf32>
    tpu.vector_store %arg2[%c8_77, %c0_78, %c0_79], %89 {strides = array<i32>} : memref<32x2x16xf32, #tpu.memory_space<vmem>>, vector<1x2x16xf32>,
    %c9 = arith.constant 9 : index
    %c0_80 = arith.constant 0 : index
    %c0_81 = arith.constant 0 : index
    %90 = vector.load %arg0[%c9, %c0_80, %c0_81] : memref<32x2x16xf32, #tpu.memory_space<vmem>>, vector<1x2x16xf32>
    %91 = vector.shape_cast %90 : vector<1x2x16xf32> to vector<2x16xf32>
    %92 = arith.truncf %91 : vector<2x16xf32> to vector<2x16xbf16>
    %c9_82 = arith.constant 9 : index
    %c0_83 = arith.constant 0 : index
    %c0_84 = arith.constant 0 : index
    %93 = vector.load %arg1[%c9_82, %c0_83, %c0_84] : memref<32x16x16xf32, #tpu.memory_space<vmem>>, vector<1x16x16xf32>
    %94 = vector.shape_cast %93 : vector<1x16x16xf32> to vector<16x16xf32>
    %95 = arith.truncf %94 : vector<16x16xf32> to vector<16x16xbf16>
    %cst_85 = arith.constant dense<0.000000e+00> : vector<2x16xf32>
    %96 = tpu.matmul %92, %95, %cst_85 {dimension_numbers = #tpu.dot_dimension_numbers<[1], [0], [0], [1], [0, 0, 1, 1], [], []>} : vector<2x16xbf16>, vector<16x16xbf16>, vector<2x16xf32> -> vector<2x16xf32>
    %c9_86 = arith.constant 9 : index
    %c0_87 = arith.constant 0 : index
    %c0_88 = arith.constant 0 : index
    %97 = vector.load %arg2[%c9_86, %c0_87, %c0_88] : memref<32x2x16xf32, #tpu.memory_space<vmem>>, vector<1x2x16xf32>
    %98 = vector.shape_cast %97 : vector<1x2x16xf32> to vector<2x16xf32>
    %99 = vector.shape_cast %96 : vector<2x16xf32> to vector<1x2x16xf32>
    tpu.vector_store %arg2[%c9_86, %c0_87, %c0_88], %99 {strides = array<i32>} : memref<32x2x16xf32, #tpu.memory_space<vmem>>, vector<1x2x16xf32>,
    %c10 = arith.constant 10 : index
    %c0_89 = arith.constant 0 : index
    %c0_90 = arith.constant 0 : index
    %100 = vector.load %arg0[%c10, %c0_89, %c0_90] : memref<32x2x16xf32, #tpu.memory_space<vmem>>, vector<1x2x16xf32>
    %101 = vector.shape_cast %100 : vector<1x2x16xf32> to vector<2x16xf32>
    %102 = arith.truncf %101 : vector<2x16xf32> to vector<2x16xbf16>
    %c10_91 = arith.constant 10 : index
    %c0_92 = arith.constant 0 : index
    %c0_93 = arith.constant 0 : index
    %103 = vector.load %arg1[%c10_91, %c0_92, %c0_93] : memref<32x16x16xf32, #tpu.memory_space<vmem>>, vector<1x16x16xf32>
    %104 = vector.shape_cast %103 : vector<1x16x16xf32> to vector<16x16xf32>
    %105 = arith.truncf %104 : vector<16x16xf32> to vector<16x16xbf16>
    %cst_94 = arith.constant dense<0.000000e+00> : vector<2x16xf32>
    %106 = tpu.matmul %102, %105, %cst_94 {dimension_numbers = #tpu.dot_dimension_numbers<[1], [0], [0], [1], [0, 0, 1, 1], [], []>} : vector<2x16xbf16>, vector<16x16xbf16>, vector<2x16xf32> -> vector<2x16xf32>
    %c10_95 = arith.constant 10 : index
    %c0_96 = arith.constant 0 : index
    %c0_97 = arith.constant 0 : index
    %107 = vector.load %arg2[%c10_95, %c0_96, %c0_97] : memref<32x2x16xf32, #tpu.memory_space<vmem>>, vector<1x2x16xf32>
    %108 = vector.shape_cast %107 : vector<1x2x16xf32> to vector<2x16xf32>
    %109 = vector.shape_cast %106 : vector<2x16xf32> to vector<1x2x16xf32>
    tpu.vector_store %arg2[%c10_95, %c0_96, %c0_97], %109 {strides = array<i32>} : memref<32x2x16xf32, #tpu.memory_space<vmem>>, vector<1x2x16xf32>,
    %c11 = arith.constant 11 : index
    %c0_98 = arith.constant 0 : index
    %c0_99 = arith.constant 0 : index
    %110 = vector.load %arg0[%c11, %c0_98, %c0_99] : memref<32x2x16xf32, #tpu.memory_space<vmem>>, vector<1x2x16xf32>
    %111 = vector.shape_cast %110 : vector<1x2x16xf32> to vector<2x16xf32>
    %112 = arith.truncf %111 : vector<2x16xf32> to vector<2x16xbf16>
    %c11_100 = arith.constant 11 : index
    %c0_101 = arith.constant 0 : index
    %c0_102 = arith.constant 0 : index
    %113 = vector.load %arg1[%c11_100, %c0_101, %c0_102] : memref<32x16x16xf32, #tpu.memory_space<vmem>>, vector<1x16x16xf32>
    %114 = vector.shape_cast %113 : vector<1x16x16xf32> to vector<16x16xf32>
    %115 = arith.truncf %114 : vector<16x16xf32> to vector<16x16xbf16>
    %cst_103 = arith.constant dense<0.000000e+00> : vector<2x16xf32>
    %116 = tpu.matmul %112, %115, %cst_103 {dimension_numbers = #tpu.dot_dimension_numbers<[1], [0], [0], [1], [0, 0, 1, 1], [], []>} : vector<2x16xbf16>, vector<16x16xbf16>, vector<2x16xf32> -> vector<2x16xf32>
    %c11_104 = arith.constant 11 : index
    %c0_105 = arith.constant 0 : index
    %c0_106 = arith.constant 0 : index
    %117 = vector.load %arg2[%c11_104, %c0_105, %c0_106] : memref<32x2x16xf32, #tpu.memory_space<vmem>>, vector<1x2x16xf32>
    %118 = vector.shape_cast %117 : vector<1x2x16xf32> to vector<2x16xf32>
    %119 = vector.shape_cast %116 : vector<2x16xf32> to vector<1x2x16xf32>
    tpu.vector_store %arg2[%c11_104, %c0_105, %c0_106], %119 {strides = array<i32>} : memref<32x2x16xf32, #tpu.memory_space<vmem>>, vector<1x2x16xf32>,
    %c12 = arith.constant 12 : index
    %c0_107 = arith.constant 0 : index
    %c0_108 = arith.constant 0 : index
    %120 = vector.load %arg0[%c12, %c0_107, %c0_108] : memref<32x2x16xf32, #tpu.memory_space<vmem>>, vector<1x2x16xf32>
    %121 = vector.shape_cast %120 : vector<1x2x16xf32> to vector<2x16xf32>
    %122 = arith.truncf %121 : vector<2x16xf32> to vector<2x16xbf16>
    %c12_109 = arith.constant 12 : index
    %c0_110 = arith.constant 0 : index
    %c0_111 = arith.constant 0 : index
    %123 = vector.load %arg1[%c12_109, %c0_110, %c0_111] : memref<32x16x16xf32, #tpu.memory_space<vmem>>, vector<1x16x16xf32>
    %124 = vector.shape_cast %123 : vector<1x16x16xf32> to vector<16x16xf32>
    %125 = arith.truncf %124 : vector<16x16xf32> to vector<16x16xbf16>
    %cst_112 = arith.constant dense<0.000000e+00> : vector<2x16xf32>
    %126 = tpu.matmul %122, %125, %cst_112 {dimension_numbers = #tpu.dot_dimension_numbers<[1], [0], [0], [1], [0, 0, 1, 1], [], []>} : vector<2x16xbf16>, vector<16x16xbf16>, vector<2x16xf32> -> vector<2x16xf32>
    %c12_113 = arith.constant 12 : index
    %c0_114 = arith.constant 0 : index
    %c0_115 = arith.constant 0 : index
    %127 = vector.load %arg2[%c12_113, %c0_114, %c0_115] : memref<32x2x16xf32, #tpu.memory_space<vmem>>, vector<1x2x16xf32>
    %128 = vector.shape_cast %127 : vector<1x2x16xf32> to vector<2x16xf32>
    %129 = vector.shape_cast %126 : vector<2x16xf32> to vector<1x2x16xf32>
    tpu.vector_store %arg2[%c12_113, %c0_114, %c0_115], %129 {strides = array<i32>} : memref<32x2x16xf32, #tpu.memory_space<vmem>>, vector<1x2x16xf32>,
    %c13 = arith.constant 13 : index
    %c0_116 = arith.constant 0 : index
    %c0_117 = arith.constant 0 : index
    %130 = vector.load %arg0[%c13, %c0_116, %c0_117] : memref<32x2x16xf32, #tpu.memory_space<vmem>>, vector<1x2x16xf32>
    %131 = vector.shape_cast %130 : vector<1x2x16xf32> to vector<2x16xf32>
    %132 = arith.truncf %131 : vector<2x16xf32> to vector<2x16xbf16>
    %c13_118 = arith.constant 13 : index
    %c0_119 = arith.constant 0 : index
    %c0_120 = arith.constant 0 : index
    %133 = vector.load %arg1[%c13_118, %c0_119, %c0_120] : memref<32x16x16xf32, #tpu.memory_space<vmem>>, vector<1x16x16xf32>
    %134 = vector.shape_cast %133 : vector<1x16x16xf32> to vector<16x16xf32>
    %135 = arith.truncf %134 : vector<16x16xf32> to vector<16x16xbf16>
    %cst_121 = arith.constant dense<0.000000e+00> : vector<2x16xf32>
    %136 = tpu.matmul %132, %135, %cst_121 {dimension_numbers = #tpu.dot_dimension_numbers<[1], [0], [0], [1], [0, 0, 1, 1], [], []>} : vector<2x16xbf16>, vector<16x16xbf16>, vector<2x16xf32> -> vector<2x16xf32>
    %c13_122 = arith.constant 13 : index
    %c0_123 = arith.constant 0 : index
    %c0_124 = arith.constant 0 : index
    %137 = vector.load %arg2[%c13_122, %c0_123, %c0_124] : memref<32x2x16xf32, #tpu.memory_space<vmem>>, vector<1x2x16xf32>
    %138 = vector.shape_cast %137 : vector<1x2x16xf32> to vector<2x16xf32>
    %139 = vector.shape_cast %136 : vector<2x16xf32> to vector<1x2x16xf32>
    tpu.vector_store %arg2[%c13_122, %c0_123, %c0_124], %139 {strides = array<i32>} : memref<32x2x16xf32, #tpu.memory_space<vmem>>, vector<1x2x16xf32>,
    %c14 = arith.constant 14 : index
    %c0_125 = arith.constant 0 : index
    %c0_126 = arith.constant 0 : index
    %140 = vector.load %arg0[%c14, %c0_125, %c0_126] : memref<32x2x16xf32, #tpu.memory_space<vmem>>, vector<1x2x16xf32>
    %141 = vector.shape_cast %140 : vector<1x2x16xf32> to vector<2x16xf32>
    %142 = arith.truncf %141 : vector<2x16xf32> to vector<2x16xbf16>
    %c14_127 = arith.constant 14 : index
    %c0_128 = arith.constant 0 : index
    %c0_129 = arith.constant 0 : index
    %143 = vector.load %arg1[%c14_127, %c0_128, %c0_129] : memref<32x16x16xf32, #tpu.memory_space<vmem>>, vector<1x16x16xf32>
    %144 = vector.shape_cast %143 : vector<1x16x16xf32> to vector<16x16xf32>
    %145 = arith.truncf %144 : vector<16x16xf32> to vector<16x16xbf16>
    %cst_130 = arith.constant dense<0.000000e+00> : vector<2x16xf32>
    %146 = tpu.matmul %142, %145, %cst_130 {dimension_numbers = #tpu.dot_dimension_numbers<[1], [0], [0], [1], [0, 0, 1, 1], [], []>} : vector<2x16xbf16>, vector<16x16xbf16>, vector<2x16xf32> -> vector<2x16xf32>
    %c14_131 = arith.constant 14 : index
    %c0_132 = arith.constant 0 : index
    %c0_133 = arith.constant 0 : index
    %147 = vector.load %arg2[%c14_131, %c0_132, %c0_133] : memref<32x2x16xf32, #tpu.memory_space<vmem>>, vector<1x2x16xf32>
    %148 = vector.shape_cast %147 : vector<1x2x16xf32> to vector<2x16xf32>
    %149 = vector.shape_cast %146 : vector<2x16xf32> to vector<1x2x16xf32>
    tpu.vector_store %arg2[%c14_131, %c0_132, %c0_133], %149 {strides = array<i32>} : memref<32x2x16xf32, #tpu.memory_space<vmem>>, vector<1x2x16xf32>,
    %c15 = arith.constant 15 : index
    %c0_134 = arith.constant 0 : index
    %c0_135 = arith.constant 0 : index
    %150 = vector.load %arg0[%c15, %c0_134, %c0_135] : memref<32x2x16xf32, #tpu.memory_space<vmem>>, vector<1x2x16xf32>
    %151 = vector.shape_cast %150 : vector<1x2x16xf32> to vector<2x16xf32>
    %152 = arith.truncf %151 : vector<2x16xf32> to vector<2x16xbf16>
    %c15_136 = arith.constant 15 : index
    %c0_137 = arith.constant 0 : index
    %c0_138 = arith.constant 0 : index
    %153 = vector.load %arg1[%c15_136, %c0_137, %c0_138] : memref<32x16x16xf32, #tpu.memory_space<vmem>>, vector<1x16x16xf32>
    %154 = vector.shape_cast %153 : vector<1x16x16xf32> to vector<16x16xf32>
    %155 = arith.truncf %154 : vector<16x16xf32> to vector<16x16xbf16>
    %cst_139 = arith.constant dense<0.000000e+00> : vector<2x16xf32>
    %156 = tpu.matmul %152, %155, %cst_139 {dimension_numbers = #tpu.dot_dimension_numbers<[1], [0], [0], [1], [0, 0, 1, 1], [], []>} : vector<2x16xbf16>, vector<16x16xbf16>, vector<2x16xf32> -> vector<2x16xf32>
    %c15_140 = arith.constant 15 : index
    %c0_141 = arith.constant 0 : index
    %c0_142 = arith.constant 0 : index
    %157 = vector.load %arg2[%c15_140, %c0_141, %c0_142] : memref<32x2x16xf32, #tpu.memory_space<vmem>>, vector<1x2x16xf32>
    %158 = vector.shape_cast %157 : vector<1x2x16xf32> to vector<2x16xf32>
    %159 = vector.shape_cast %156 : vector<2x16xf32> to vector<1x2x16xf32>
    tpu.vector_store %arg2[%c15_140, %c0_141, %c0_142], %159 {strides = array<i32>} : memref<32x2x16xf32, #tpu.memory_space<vmem>>, vector<1x2x16xf32>,
    %c16 = arith.constant 16 : index
    %c0_143 = arith.constant 0 : index
    %c0_144 = arith.constant 0 : index
    %160 = vector.load %arg0[%c16, %c0_143, %c0_144] : memref<32x2x16xf32, #tpu.memory_space<vmem>>, vector<1x2x16xf32>
    %161 = vector.shape_cast %160 : vector<1x2x16xf32> to vector<2x16xf32>
    %162 = arith.truncf %161 : vector<2x16xf32> to vector<2x16xbf16>
    %c16_145 = arith.constant 16 : index
    %c0_146 = arith.constant 0 : index
    %c0_147 = arith.constant 0 : index
    %163 = vector.load %arg1[%c16_145, %c0_146, %c0_147] : memref<32x16x16xf32, #tpu.memory_space<vmem>>, vector<1x16x16xf32>
    %164 = vector.shape_cast %163 : vector<1x16x16xf32> to vector<16x16xf32>
    %165 = arith.truncf %164 : vector<16x16xf32> to vector<16x16xbf16>
    %cst_148 = arith.constant dense<0.000000e+00> : vector<2x16xf32>
    %166 = tpu.matmul %162, %165, %cst_148 {dimension_numbers = #tpu.dot_dimension_numbers<[1], [0], [0], [1], [0, 0, 1, 1], [], []>} : vector<2x16xbf16>, vector<16x16xbf16>, vector<2x16xf32> -> vector<2x16xf32>
    %c16_149 = arith.constant 16 : index
    %c0_150 = arith.constant 0 : index
    %c0_151 = arith.constant 0 : index
    %167 = vector.load %arg2[%c16_149, %c0_150, %c0_151] : memref<32x2x16xf32, #tpu.memory_space<vmem>>, vector<1x2x16xf32>
    %168 = vector.shape_cast %167 : vector<1x2x16xf32> to vector<2x16xf32>
    %169 = vector.shape_cast %166 : vector<2x16xf32> to vector<1x2x16xf32>
    tpu.vector_store %arg2[%c16_149, %c0_150, %c0_151], %169 {strides = array<i32>} : memref<32x2x16xf32, #tpu.memory_space<vmem>>, vector<1x2x16xf32>,
    %c17 = arith.constant 17 : index
    %c0_152 = arith.constant 0 : index
    %c0_153 = arith.constant 0 : index
    %170 = vector.load %arg0[%c17, %c0_152, %c0_153] : memref<32x2x16xf32, #tpu.memory_space<vmem>>, vector<1x2x16xf32>
    %171 = vector.shape_cast %170 : vector<1x2x16xf32> to vector<2x16xf32>
    %172 = arith.truncf %171 : vector<2x16xf32> to vector<2x16xbf16>
    %c17_154 = arith.constant 17 : index
    %c0_155 = arith.constant 0 : index
    %c0_156 = arith.constant 0 : index
    %173 = vector.load %arg1[%c17_154, %c0_155, %c0_156] : memref<32x16x16xf32, #tpu.memory_space<vmem>>, vector<1x16x16xf32>
    %174 = vector.shape_cast %173 : vector<1x16x16xf32> to vector<16x16xf32>
    %175 = arith.truncf %174 : vector<16x16xf32> to vector<16x16xbf16>
    %cst_157 = arith.constant dense<0.000000e+00> : vector<2x16xf32>
    %176 = tpu.matmul %172, %175, %cst_157 {dimension_numbers = #tpu.dot_dimension_numbers<[1], [0], [0], [1], [0, 0, 1, 1], [], []>} : vector<2x16xbf16>, vector<16x16xbf16>, vector<2x16xf32> -> vector<2x16xf32>
    %c17_158 = arith.constant 17 : index
    %c0_159 = arith.constant 0 : index
    %c0_160 = arith.constant 0 : index
    %177 = vector.load %arg2[%c17_158, %c0_159, %c0_160] : memref<32x2x16xf32, #tpu.memory_space<vmem>>, vector<1x2x16xf32>
    %178 = vector.shape_cast %177 : vector<1x2x16xf32> to vector<2x16xf32>
    %179 = vector.shape_cast %176 : vector<2x16xf32> to vector<1x2x16xf32>
    tpu.vector_store %arg2[%c17_158, %c0_159, %c0_160], %179 {strides = array<i32>} : memref<32x2x16xf32, #tpu.memory_space<vmem>>, vector<1x2x16xf32>,
    %c18 = arith.constant 18 : index
    %c0_161 = arith.constant 0 : index
    %c0_162 = arith.constant 0 : index
    %180 = vector.load %arg0[%c18, %c0_161, %c0_162] : memref<32x2x16xf32, #tpu.memory_space<vmem>>, vector<1x2x16xf32>
    %181 = vector.shape_cast %180 : vector<1x2x16xf32> to vector<2x16xf32>
    %182 = arith.truncf %181 : vector<2x16xf32> to vector<2x16xbf16>
    %c18_163 = arith.constant 18 : index
    %c0_164 = arith.constant 0 : index
    %c0_165 = arith.constant 0 : index
    %183 = vector.load %arg1[%c18_163, %c0_164, %c0_165] : memref<32x16x16xf32, #tpu.memory_space<vmem>>, vector<1x16x16xf32>
    %184 = vector.shape_cast %183 : vector<1x16x16xf32> to vector<16x16xf32>
    %185 = arith.truncf %184 : vector<16x16xf32> to vector<16x16xbf16>
    %cst_166 = arith.constant dense<0.000000e+00> : vector<2x16xf32>
    %186 = tpu.matmul %182, %185, %cst_166 {dimension_numbers = #tpu.dot_dimension_numbers<[1], [0], [0], [1], [0, 0, 1, 1], [], []>} : vector<2x16xbf16>, vector<16x16xbf16>, vector<2x16xf32> -> vector<2x16xf32>
    %c18_167 = arith.constant 18 : index
    %c0_168 = arith.constant 0 : index
    %c0_169 = arith.constant 0 : index
    %187 = vector.load %arg2[%c18_167, %c0_168, %c0_169] : memref<32x2x16xf32, #tpu.memory_space<vmem>>, vector<1x2x16xf32>
    %188 = vector.shape_cast %187 : vector<1x2x16xf32> to vector<2x16xf32>
    %189 = vector.shape_cast %186 : vector<2x16xf32> to vector<1x2x16xf32>
    tpu.vector_store %arg2[%c18_167, %c0_168, %c0_169], %189 {strides = array<i32>} : memref<32x2x16xf32, #tpu.memory_space<vmem>>, vector<1x2x16xf32>,
    %c19 = arith.constant 19 : index
    %c0_170 = arith.constant 0 : index
    %c0_171 = arith.constant 0 : index
    %190 = vector.load %arg0[%c19, %c0_170, %c0_171] : memref<32x2x16xf32, #tpu.memory_space<vmem>>, vector<1x2x16xf32>
    %191 = vector.shape_cast %190 : vector<1x2x16xf32> to vector<2x16xf32>
    %192 = arith.truncf %191 : vector<2x16xf32> to vector<2x16xbf16>
    %c19_172 = arith.constant 19 : index
    %c0_173 = arith.constant 0 : index
    %c0_174 = arith.constant 0 : index
    %193 = vector.load %arg1[%c19_172, %c0_173, %c0_174] : memref<32x16x16xf32, #tpu.memory_space<vmem>>, vector<1x16x16xf32>
    %194 = vector.shape_cast %193 : vector<1x16x16xf32> to vector<16x16xf32>
    %195 = arith.truncf %194 : vector<16x16xf32> to vector<16x16xbf16>
    %cst_175 = arith.constant dense<0.000000e+00> : vector<2x16xf32>
    %196 = tpu.matmul %192, %195, %cst_175 {dimension_numbers = #tpu.dot_dimension_numbers<[1], [0], [0], [1], [0, 0, 1, 1], [], []>} : vector<2x16xbf16>, vector<16x16xbf16>, vector<2x16xf32> -> vector<2x16xf32>
    %c19_176 = arith.constant 19 : index
    %c0_177 = arith.constant 0 : index
    %c0_178 = arith.constant 0 : index
    %197 = vector.load %arg2[%c19_176, %c0_177, %c0_178] : memref<32x2x16xf32, #tpu.memory_space<vmem>>, vector<1x2x16xf32>
    %198 = vector.shape_cast %197 : vector<1x2x16xf32> to vector<2x16xf32>
    %199 = vector.shape_cast %196 : vector<2x16xf32> to vector<1x2x16xf32>
    tpu.vector_store %arg2[%c19_176, %c0_177, %c0_178], %199 {strides = array<i32>} : memref<32x2x16xf32, #tpu.memory_space<vmem>>, vector<1x2x16xf32>,
    %c20 = arith.constant 20 : index
    %c0_179 = arith.constant 0 : index
    %c0_180 = arith.constant 0 : index
    %200 = vector.load %arg0[%c20, %c0_179, %c0_180] : memref<32x2x16xf32, #tpu.memory_space<vmem>>, vector<1x2x16xf32>
    %201 = vector.shape_cast %200 : vector<1x2x16xf32> to vector<2x16xf32>
    %202 = arith.truncf %201 : vector<2x16xf32> to vector<2x16xbf16>
    %c20_181 = arith.constant 20 : index
    %c0_182 = arith.constant 0 : index
    %c0_183 = arith.constant 0 : index
    %203 = vector.load %arg1[%c20_181, %c0_182, %c0_183] : memref<32x16x16xf32, #tpu.memory_space<vmem>>, vector<1x16x16xf32>
    %204 = vector.shape_cast %203 : vector<1x16x16xf32> to vector<16x16xf32>
    %205 = arith.truncf %204 : vector<16x16xf32> to vector<16x16xbf16>
    %cst_184 = arith.constant dense<0.000000e+00> : vector<2x16xf32>
    %206 = tpu.matmul %202, %205, %cst_184 {dimension_numbers = #tpu.dot_dimension_numbers<[1], [0], [0], [1], [0, 0, 1, 1], [], []>} : vector<2x16xbf16>, vector<16x16xbf16>, vector<2x16xf32> -> vector<2x16xf32>
    %c20_185 = arith.constant 20 : index
    %c0_186 = arith.constant 0 : index
    %c0_187 = arith.constant 0 : index
    %207 = vector.load %arg2[%c20_185, %c0_186, %c0_187] : memref<32x2x16xf32, #tpu.memory_space<vmem>>, vector<1x2x16xf32>
    %208 = vector.shape_cast %207 : vector<1x2x16xf32> to vector<2x16xf32>
    %209 = vector.shape_cast %206 : vector<2x16xf32> to vector<1x2x16xf32>
    tpu.vector_store %arg2[%c20_185, %c0_186, %c0_187], %209 {strides = array<i32>} : memref<32x2x16xf32, #tpu.memory_space<vmem>>, vector<1x2x16xf32>,
    %c21 = arith.constant 21 : index
    %c0_188 = arith.constant 0 : index
    %c0_189 = arith.constant 0 : index
    %210 = vector.load %arg0[%c21, %c0_188, %c0_189] : memref<32x2x16xf32, #tpu.memory_space<vmem>>, vector<1x2x16xf32>
    %211 = vector.shape_cast %210 : vector<1x2x16xf32> to vector<2x16xf32>
    %212 = arith.truncf %211 : vector<2x16xf32> to vector<2x16xbf16>
    %c21_190 = arith.constant 21 : index
    %c0_191 = arith.constant 0 : index
    %c0_192 = arith.constant 0 : index
    %213 = vector.load %arg1[%c21_190, %c0_191, %c0_192] : memref<32x16x16xf32, #tpu.memory_space<vmem>>, vector<1x16x16xf32>
    %214 = vector.shape_cast %213 : vector<1x16x16xf32> to vector<16x16xf32>
    %215 = arith.truncf %214 : vector<16x16xf32> to vector<16x16xbf16>
    %cst_193 = arith.constant dense<0.000000e+00> : vector<2x16xf32>
    %216 = tpu.matmul %212, %215, %cst_193 {dimension_numbers = #tpu.dot_dimension_numbers<[1], [0], [0], [1], [0, 0, 1, 1], [], []>} : vector<2x16xbf16>, vector<16x16xbf16>, vector<2x16xf32> -> vector<2x16xf32>
    %c21_194 = arith.constant 21 : index
    %c0_195 = arith.constant 0 : index
    %c0_196 = arith.constant 0 : index
    %217 = vector.load %arg2[%c21_194, %c0_195, %c0_196] : memref<32x2x16xf32, #tpu.memory_space<vmem>>, vector<1x2x16xf32>
    %218 = vector.shape_cast %217 : vector<1x2x16xf32> to vector<2x16xf32>
    %219 = vector.shape_cast %216 : vector<2x16xf32> to vector<1x2x16xf32>
    tpu.vector_store %arg2[%c21_194, %c0_195, %c0_196], %219 {strides = array<i32>} : memref<32x2x16xf32, #tpu.memory_space<vmem>>, vector<1x2x16xf32>,
    %c22 = arith.constant 22 : index
    %c0_197 = arith.constant 0 : index
    %c0_198 = arith.constant 0 : index
    %220 = vector.load %arg0[%c22, %c0_197, %c0_198] : memref<32x2x16xf32, #tpu.memory_space<vmem>>, vector<1x2x16xf32>
    %221 = vector.shape_cast %220 : vector<1x2x16xf32> to vector<2x16xf32>
    %222 = arith.truncf %221 : vector<2x16xf32> to vector<2x16xbf16>
    %c22_199 = arith.constant 22 : index
    %c0_200 = arith.constant 0 : index
    %c0_201 = arith.constant 0 : index
    %223 = vector.load %arg1[%c22_199, %c0_200, %c0_201] : memref<32x16x16xf32, #tpu.memory_space<vmem>>, vector<1x16x16xf32>
    %224 = vector.shape_cast %223 : vector<1x16x16xf32> to vector<16x16xf32>
    %225 = arith.truncf %224 : vector<16x16xf32> to vector<16x16xbf16>
    %cst_202 = arith.constant dense<0.000000e+00> : vector<2x16xf32>
    %226 = tpu.matmul %222, %225, %cst_202 {dimension_numbers = #tpu.dot_dimension_numbers<[1], [0], [0], [1], [0, 0, 1, 1], [], []>} : vector<2x16xbf16>, vector<16x16xbf16>, vector<2x16xf32> -> vector<2x16xf32>
    %c22_203 = arith.constant 22 : index
    %c0_204 = arith.constant 0 : index
    %c0_205 = arith.constant 0 : index
    %227 = vector.load %arg2[%c22_203, %c0_204, %c0_205] : memref<32x2x16xf32, #tpu.memory_space<vmem>>, vector<1x2x16xf32>
    %228 = vector.shape_cast %227 : vector<1x2x16xf32> to vector<2x16xf32>
    %229 = vector.shape_cast %226 : vector<2x16xf32> to vector<1x2x16xf32>
    tpu.vector_store %arg2[%c22_203, %c0_204, %c0_205], %229 {strides = array<i32>} : memref<32x2x16xf32, #tpu.memory_space<vmem>>, vector<1x2x16xf32>,
    %c23 = arith.constant 23 : index
    %c0_206 = arith.constant 0 : index
    %c0_207 = arith.constant 0 : index
    %230 = vector.load %arg0[%c23, %c0_206, %c0_207] : memref<32x2x16xf32, #tpu.memory_space<vmem>>, vector<1x2x16xf32>
    %231 = vector.shape_cast %230 : vector<1x2x16xf32> to vector<2x16xf32>
    %232 = arith.truncf %231 : vector<2x16xf32> to vector<2x16xbf16>
    %c23_208 = arith.constant 23 : index
    %c0_209 = arith.constant 0 : index
    %c0_210 = arith.constant 0 : index
    %233 = vector.load %arg1[%c23_208, %c0_209, %c0_210] : memref<32x16x16xf32, #tpu.memory_space<vmem>>, vector<1x16x16xf32>
    %234 = vector.shape_cast %233 : vector<1x16x16xf32> to vector<16x16xf32>
    %235 = arith.truncf %234 : vector<16x16xf32> to vector<16x16xbf16>
    %cst_211 = arith.constant dense<0.000000e+00> : vector<2x16xf32>
    %236 = tpu.matmul %232, %235, %cst_211 {dimension_numbers = #tpu.dot_dimension_numbers<[1], [0], [0], [1], [0, 0, 1, 1], [], []>} : vector<2x16xbf16>, vector<16x16xbf16>, vector<2x16xf32> -> vector<2x16xf32>
    %c23_212 = arith.constant 23 : index
    %c0_213 = arith.constant 0 : index
    %c0_214 = arith.constant 0 : index
    %237 = vector.load %arg2[%c23_212, %c0_213, %c0_214] : memref<32x2x16xf32, #tpu.memory_space<vmem>>, vector<1x2x16xf32>
    %238 = vector.shape_cast %237 : vector<1x2x16xf32> to vector<2x16xf32>
    %239 = vector.shape_cast %236 : vector<2x16xf32> to vector<1x2x16xf32>
    tpu.vector_store %arg2[%c23_212, %c0_213, %c0_214], %239 {strides = array<i32>} : memref<32x2x16xf32, #tpu.memory_space<vmem>>, vector<1x2x16xf32>,
    %c24 = arith.constant 24 : index
    %c0_215 = arith.constant 0 : index
    %c0_216 = arith.constant 0 : index
    %240 = vector.load %arg0[%c24, %c0_215, %c0_216] : memref<32x2x16xf32, #tpu.memory_space<vmem>>, vector<1x2x16xf32>
    %241 = vector.shape_cast %240 : vector<1x2x16xf32> to vector<2x16xf32>
    %242 = arith.truncf %241 : vector<2x16xf32> to vector<2x16xbf16>
    %c24_217 = arith.constant 24 : index
    %c0_218 = arith.constant 0 : index
    %c0_219 = arith.constant 0 : index
    %243 = vector.load %arg1[%c24_217, %c0_218, %c0_219] : memref<32x16x16xf32, #tpu.memory_space<vmem>>, vector<1x16x16xf32>
    %244 = vector.shape_cast %243 : vector<1x16x16xf32> to vector<16x16xf32>
    %245 = arith.truncf %244 : vector<16x16xf32> to vector<16x16xbf16>
    %cst_220 = arith.constant dense<0.000000e+00> : vector<2x16xf32>
    %246 = tpu.matmul %242, %245, %cst_220 {dimension_numbers = #tpu.dot_dimension_numbers<[1], [0], [0], [1], [0, 0, 1, 1], [], []>} : vector<2x16xbf16>, vector<16x16xbf16>, vector<2x16xf32> -> vector<2x16xf32>
    %c24_221 = arith.constant 24 : index
    %c0_222 = arith.constant 0 : index
    %c0_223 = arith.constant 0 : index
    %247 = vector.load %arg2[%c24_221, %c0_222, %c0_223] : memref<32x2x16xf32, #tpu.memory_space<vmem>>, vector<1x2x16xf32>
    %248 = vector.shape_cast %247 : vector<1x2x16xf32> to vector<2x16xf32>
    %249 = vector.shape_cast %246 : vector<2x16xf32> to vector<1x2x16xf32>
    tpu.vector_store %arg2[%c24_221, %c0_222, %c0_223], %249 {strides = array<i32>} : memref<32x2x16xf32, #tpu.memory_space<vmem>>, vector<1x2x16xf32>,
    %c25 = arith.constant 25 : index
    %c0_224 = arith.constant 0 : index
    %c0_225 = arith.constant 0 : index
    %250 = vector.load %arg0[%c25, %c0_224, %c0_225] : memref<32x2x16xf32, #tpu.memory_space<vmem>>, vector<1x2x16xf32>
    %251 = vector.shape_cast %250 : vector<1x2x16xf32> to vector<2x16xf32>
    %252 = arith.truncf %251 : vector<2x16xf32> to vector<2x16xbf16>
    %c25_226 = arith.constant 25 : index
    %c0_227 = arith.constant 0 : index
    %c0_228 = arith.constant 0 : index
    %253 = vector.load %arg1[%c25_226, %c0_227, %c0_228] : memref<32x16x16xf32, #tpu.memory_space<vmem>>, vector<1x16x16xf32>
    %254 = vector.shape_cast %253 : vector<1x16x16xf32> to vector<16x16xf32>
    %255 = arith.truncf %254 : vector<16x16xf32> to vector<16x16xbf16>
    %cst_229 = arith.constant dense<0.000000e+00> : vector<2x16xf32>
    %256 = tpu.matmul %252, %255, %cst_229 {dimension_numbers = #tpu.dot_dimension_numbers<[1], [0], [0], [1], [0, 0, 1, 1], [], []>} : vector<2x16xbf16>, vector<16x16xbf16>, vector<2x16xf32> -> vector<2x16xf32>
    %c25_230 = arith.constant 25 : index
    %c0_231 = arith.constant 0 : index
    %c0_232 = arith.constant 0 : index
    %257 = vector.load %arg2[%c25_230, %c0_231, %c0_232] : memref<32x2x16xf32, #tpu.memory_space<vmem>>, vector<1x2x16xf32>
    %258 = vector.shape_cast %257 : vector<1x2x16xf32> to vector<2x16xf32>
    %259 = vector.shape_cast %256 : vector<2x16xf32> to vector<1x2x16xf32>
    tpu.vector_store %arg2[%c25_230, %c0_231, %c0_232], %259 {strides = array<i32>} : memref<32x2x16xf32, #tpu.memory_space<vmem>>, vector<1x2x16xf32>,
    %c26 = arith.constant 26 : index
    %c0_233 = arith.constant 0 : index
    %c0_234 = arith.constant 0 : index
    %260 = vector.load %arg0[%c26, %c0_233, %c0_234] : memref<32x2x16xf32, #tpu.memory_space<vmem>>, vector<1x2x16xf32>
    %261 = vector.shape_cast %260 : vector<1x2x16xf32> to vector<2x16xf32>
    %262 = arith.truncf %261 : vector<2x16xf32> to vector<2x16xbf16>
    %c26_235 = arith.constant 26 : index
    %c0_236 = arith.constant 0 : index
    %c0_237 = arith.constant 0 : index
    %263 = vector.load %arg1[%c26_235, %c0_236, %c0_237] : memref<32x16x16xf32, #tpu.memory_space<vmem>>, vector<1x16x16xf32>
    %264 = vector.shape_cast %263 : vector<1x16x16xf32> to vector<16x16xf32>
    %265 = arith.truncf %264 : vector<16x16xf32> to vector<16x16xbf16>
    %cst_238 = arith.constant dense<0.000000e+00> : vector<2x16xf32>
    %266 = tpu.matmul %262, %265, %cst_238 {dimension_numbers = #tpu.dot_dimension_numbers<[1], [0], [0], [1], [0, 0, 1, 1], [], []>} : vector<2x16xbf16>, vector<16x16xbf16>, vector<2x16xf32> -> vector<2x16xf32>
    %c26_239 = arith.constant 26 : index
    %c0_240 = arith.constant 0 : index
    %c0_241 = arith.constant 0 : index
    %267 = vector.load %arg2[%c26_239, %c0_240, %c0_241] : memref<32x2x16xf32, #tpu.memory_space<vmem>>, vector<1x2x16xf32>
    %268 = vector.shape_cast %267 : vector<1x2x16xf32> to vector<2x16xf32>
    %269 = vector.shape_cast %266 : vector<2x16xf32> to vector<1x2x16xf32>
    tpu.vector_store %arg2[%c26_239, %c0_240, %c0_241], %269 {strides = array<i32>} : memref<32x2x16xf32, #tpu.memory_space<vmem>>, vector<1x2x16xf32>,
    %c27 = arith.constant 27 : index
    %c0_242 = arith.constant 0 : index
    %c0_243 = arith.constant 0 : index
    %270 = vector.load %arg0[%c27, %c0_242, %c0_243] : memref<32x2x16xf32, #tpu.memory_space<vmem>>, vector<1x2x16xf32>
    %271 = vector.shape_cast %270 : vector<1x2x16xf32> to vector<2x16xf32>
    %272 = arith.truncf %271 : vector<2x16xf32> to vector<2x16xbf16>
    %c27_244 = arith.constant 27 : index
    %c0_245 = arith.constant 0 : index
    %c0_246 = arith.constant 0 : index
    %273 = vector.load %arg1[%c27_244, %c0_245, %c0_246] : memref<32x16x16xf32, #tpu.memory_space<vmem>>, vector<1x16x16xf32>
    %274 = vector.shape_cast %273 : vector<1x16x16xf32> to vector<16x16xf32>
    %275 = arith.truncf %274 : vector<16x16xf32> to vector<16x16xbf16>
    %cst_247 = arith.constant dense<0.000000e+00> : vector<2x16xf32>
    %276 = tpu.matmul %272, %275, %cst_247 {dimension_numbers = #tpu.dot_dimension_numbers<[1], [0], [0], [1], [0, 0, 1, 1], [], []>} : vector<2x16xbf16>, vector<16x16xbf16>, vector<2x16xf32> -> vector<2x16xf32>
    %c27_248 = arith.constant 27 : index
    %c0_249 = arith.constant 0 : index
    %c0_250 = arith.constant 0 : index
    %277 = vector.load %arg2[%c27_248, %c0_249, %c0_250] : memref<32x2x16xf32, #tpu.memory_space<vmem>>, vector<1x2x16xf32>
    %278 = vector.shape_cast %277 : vector<1x2x16xf32> to vector<2x16xf32>
    %279 = vector.shape_cast %276 : vector<2x16xf32> to vector<1x2x16xf32>
    tpu.vector_store %arg2[%c27_248, %c0_249, %c0_250], %279 {strides = array<i32>} : memref<32x2x16xf32, #tpu.memory_space<vmem>>, vector<1x2x16xf32>,
    %c28 = arith.constant 28 : index
    %c0_251 = arith.constant 0 : index
    %c0_252 = arith.constant 0 : index
    %280 = vector.load %arg0[%c28, %c0_251, %c0_252] : memref<32x2x16xf32, #tpu.memory_space<vmem>>, vector<1x2x16xf32>
    %281 = vector.shape_cast %280 : vector<1x2x16xf32> to vector<2x16xf32>
    %282 = arith.truncf %281 : vector<2x16xf32> to vector<2x16xbf16>
    %c28_253 = arith.constant 28 : index
    %c0_254 = arith.constant 0 : index
    %c0_255 = arith.constant 0 : index
    %283 = vector.load %arg1[%c28_253, %c0_254, %c0_255] : memref<32x16x16xf32, #tpu.memory_space<vmem>>, vector<1x16x16xf32>
    %284 = vector.shape_cast %283 : vector<1x16x16xf32> to vector<16x16xf32>
    %285 = arith.truncf %284 : vector<16x16xf32> to vector<16x16xbf16>
    %cst_256 = arith.constant dense<0.000000e+00> : vector<2x16xf32>
    %286 = tpu.matmul %282, %285, %cst_256 {dimension_numbers = #tpu.dot_dimension_numbers<[1], [0], [0], [1], [0, 0, 1, 1], [], []>} : vector<2x16xbf16>, vector<16x16xbf16>, vector<2x16xf32> -> vector<2x16xf32>
    %c28_257 = arith.constant 28 : index
    %c0_258 = arith.constant 0 : index
    %c0_259 = arith.constant 0 : index
    %287 = vector.load %arg2[%c28_257, %c0_258, %c0_259] : memref<32x2x16xf32, #tpu.memory_space<vmem>>, vector<1x2x16xf32>
    %288 = vector.shape_cast %287 : vector<1x2x16xf32> to vector<2x16xf32>
    %289 = vector.shape_cast %286 : vector<2x16xf32> to vector<1x2x16xf32>
    tpu.vector_store %arg2[%c28_257, %c0_258, %c0_259], %289 {strides = array<i32>} : memref<32x2x16xf32, #tpu.memory_space<vmem>>, vector<1x2x16xf32>,
    %c29 = arith.constant 29 : index
    %c0_260 = arith.constant 0 : index
    %c0_261 = arith.constant 0 : index
    %290 = vector.load %arg0[%c29, %c0_260, %c0_261] : memref<32x2x16xf32, #tpu.memory_space<vmem>>, vector<1x2x16xf32>
    %291 = vector.shape_cast %290 : vector<1x2x16xf32> to vector<2x16xf32>
    %292 = arith.truncf %291 : vector<2x16xf32> to vector<2x16xbf16>
    %c29_262 = arith.constant 29 : index
    %c0_263 = arith.constant 0 : index
    %c0_264 = arith.constant 0 : index
    %293 = vector.load %arg1[%c29_262, %c0_263, %c0_264] : memref<32x16x16xf32, #tpu.memory_space<vmem>>, vector<1x16x16xf32>
    %294 = vector.shape_cast %293 : vector<1x16x16xf32> to vector<16x16xf32>
    %295 = arith.truncf %294 : vector<16x16xf32> to vector<16x16xbf16>
    %cst_265 = arith.constant dense<0.000000e+00> : vector<2x16xf32>
    %296 = tpu.matmul %292, %295, %cst_265 {dimension_numbers = #tpu.dot_dimension_numbers<[1], [0], [0], [1], [0, 0, 1, 1], [], []>} : vector<2x16xbf16>, vector<16x16xbf16>, vector<2x16xf32> -> vector<2x16xf32>
    %c29_266 = arith.constant 29 : index
    %c0_267 = arith.constant 0 : index
    %c0_268 = arith.constant 0 : index
    %297 = vector.load %arg2[%c29_266, %c0_267, %c0_268] : memref<32x2x16xf32, #tpu.memory_space<vmem>>, vector<1x2x16xf32>
    %298 = vector.shape_cast %297 : vector<1x2x16xf32> to vector<2x16xf32>
    %299 = vector.shape_cast %296 : vector<2x16xf32> to vector<1x2x16xf32>
    tpu.vector_store %arg2[%c29_266, %c0_267, %c0_268], %299 {strides = array<i32>} : memref<32x2x16xf32, #tpu.memory_space<vmem>>, vector<1x2x16xf32>,
    %c30 = arith.constant 30 : index
    %c0_269 = arith.constant 0 : index
    %c0_270 = arith.constant 0 : index
    %300 = vector.load %arg0[%c30, %c0_269, %c0_270] : memref<32x2x16xf32, #tpu.memory_space<vmem>>, vector<1x2x16xf32>
    %301 = vector.shape_cast %300 : vector<1x2x16xf32> to vector<2x16xf32>
    %302 = arith.truncf %301 : vector<2x16xf32> to vector<2x16xbf16>
    %c30_271 = arith.constant 30 : index
    %c0_272 = arith.constant 0 : index
    %c0_273 = arith.constant 0 : index
    %303 = vector.load %arg1[%c30_271, %c0_272, %c0_273] : memref<32x16x16xf32, #tpu.memory_space<vmem>>, vector<1x16x16xf32>
    %304 = vector.shape_cast %303 : vector<1x16x16xf32> to vector<16x16xf32>
    %305 = arith.truncf %304 : vector<16x16xf32> to vector<16x16xbf16>
    %cst_274 = arith.constant dense<0.000000e+00> : vector<2x16xf32>
    %306 = tpu.matmul %302, %305, %cst_274 {dimension_numbers = #tpu.dot_dimension_numbers<[1], [0], [0], [1], [0, 0, 1, 1], [], []>} : vector<2x16xbf16>, vector<16x16xbf16>, vector<2x16xf32> -> vector<2x16xf32>
    %c30_275 = arith.constant 30 : index
    %c0_276 = arith.constant 0 : index
    %c0_277 = arith.constant 0 : index
    %307 = vector.load %arg2[%c30_275, %c0_276, %c0_277] : memref<32x2x16xf32, #tpu.memory_space<vmem>>, vector<1x2x16xf32>
    %308 = vector.shape_cast %307 : vector<1x2x16xf32> to vector<2x16xf32>
    %309 = vector.shape_cast %306 : vector<2x16xf32> to vector<1x2x16xf32>
    tpu.vector_store %arg2[%c30_275, %c0_276, %c0_277], %309 {strides = array<i32>} : memref<32x2x16xf32, #tpu.memory_space<vmem>>, vector<1x2x16xf32>,
    %c31 = arith.constant 31 : index
    %c0_278 = arith.constant 0 : index
    %c0_279 = arith.constant 0 : index
    %310 = vector.load %arg0[%c31, %c0_278, %c0_279] : memref<32x2x16xf32, #tpu.memory_space<vmem>>, vector<1x2x16xf32>
    %311 = vector.shape_cast %310 : vector<1x2x16xf32> to vector<2x16xf32>
    %312 = arith.truncf %311 : vector<2x16xf32> to vector<2x16xbf16>
    %c31_280 = arith.constant 31 : index
    %c0_281 = arith.constant 0 : index
    %c0_282 = arith.constant 0 : index
    %313 = vector.load %arg1[%c31_280, %c0_281, %c0_282] : memref<32x16x16xf32, #tpu.memory_space<vmem>>, vector<1x16x16xf32>
    %314 = vector.shape_cast %313 : vector<1x16x16xf32> to vector<16x16xf32>
    %315 = arith.truncf %314 : vector<16x16xf32> to vector<16x16xbf16>
    %cst_283 = arith.constant dense<0.000000e+00> : vector<2x16xf32>
    %316 = tpu.matmul %312, %315, %cst_283 {dimension_numbers = #tpu.dot_dimension_numbers<[1], [0], [0], [1], [0, 0, 1, 1], [], []>} : vector<2x16xbf16>, vector<16x16xbf16>, vector<2x16xf32> -> vector<2x16xf32>
    %c31_284 = arith.constant 31 : index
    %c0_285 = arith.constant 0 : index
    %c0_286 = arith.constant 0 : index
    %317 = vector.load %arg2[%c31_284, %c0_285, %c0_286] : memref<32x2x16xf32, #tpu.memory_space<vmem>>, vector<1x2x16xf32>
    %318 = vector.shape_cast %317 : vector<1x2x16xf32> to vector<2x16xf32>
    %319 = vector.shape_cast %316 : vector<2x16xf32> to vector<1x2x16xf32>
    tpu.vector_store %arg2[%c31_284, %c0_285, %c0_286], %319 {strides = array<i32>} : memref<32x2x16xf32, #tpu.memory_space<vmem>>, vector<1x2x16xf32>,
    return
  }
}

module attributes {stable_mosaic.version = 11 : i64} {
  func.func @fno_block_hskip_kernel(%arg0: memref<8x512xf32, #tpu.memory_space<vmem>>, %arg1: memref<8x512xf32, #tpu.memory_space<vmem>>, %arg2: memref<8x8xf32, #tpu.memory_space<vmem>>, %arg3: memref<8x1xf32, #tpu.memory_space<vmem>>, %arg4: memref<8x8xf32, #tpu.memory_space<vmem>>, %arg5: memref<8x512xf32, #tpu.memory_space<vmem>>, %arg6: memref<8x512xf32, #tpu.memory_space<vmem>>) attributes {dimension_semantics = [], scalar_prefetch = 0 : i64, scratch_operands = 0 : i64, tpu.core_type = #tpu.core_type<tc>} {
    %c0 = arith.constant 0 : index
    %c0_0 = arith.constant 0 : index
    %0 = vector.load %arg2[%c0, %c0_0] : memref<8x8xf32, #tpu.memory_space<vmem>>, vector<8x8xf32>
    %1 = arith.truncf %0 : vector<8x8xf32> to vector<8x8xbf16>
    %c0_1 = arith.constant 0 : index
    %c0_2 = arith.constant 0 : index
    %2 = vector.load %arg0[%c0_1, %c0_2] : memref<8x512xf32, #tpu.memory_space<vmem>>, vector<8x512xf32>
    %3 = arith.truncf %2 : vector<8x512xf32> to vector<8x512xbf16>
    %cst = arith.constant dense<0.000000e+00> : vector<8x512xf32>
    %4 = tpu.matmul %1, %3, %cst {dimension_numbers = #tpu.dot_dimension_numbers<[1], [0], [0], [1], [0, 0, 1, 1], [], []>} : vector<8x8xbf16>, vector<8x512xbf16>, vector<8x512xf32> -> vector<8x512xf32>
    %c0_3 = arith.constant 0 : index
    %c0_4 = arith.constant 0 : index
    %5 = vector.load %arg1[%c0_3, %c0_4] : memref<8x512xf32, #tpu.memory_space<vmem>>, vector<8x512xf32>
    %6 = arith.addf %4, %5 : vector<8x512xf32>
    %c0_5 = arith.constant 0 : index
    %c0_6 = arith.constant 0 : index
    %7 = vector.load %arg3[%c0_5, %c0_6] : memref<8x1xf32, #tpu.memory_space<vmem>>, vector<8x1xf32>
    %8 = vector.broadcast %7 : vector<8x1xf32> to vector<8x512xf32>
    %9 = arith.addf %6, %8 : vector<8x512xf32>
    %10 = arith.mulf %9, %9 : vector<8x512xf32>
    %11 = arith.mulf %9, %10 : vector<8x512xf32>
    %cst_7 = arith.constant 4.471500e-02 : f32
    %12 = vector.broadcast %cst_7 : f32 to vector<8x512xf32>
    %13 = arith.mulf %12, %11 : vector<8x512xf32>
    %14 = arith.addf %9, %13 : vector<8x512xf32>
    %cst_8 = arith.constant 0.797884583 : f32
    %15 = vector.broadcast %cst_8 : f32 to vector<8x512xf32>
    %16 = arith.mulf %15, %14 : vector<8x512xf32>
    %17 = math.tanh %16 : vector<8x512xf32>
    %cst_9 = arith.constant 1.000000e+00 : f32
    %18 = vector.broadcast %cst_9 : f32 to vector<8x512xf32>
    %19 = arith.addf %18, %17 : vector<8x512xf32>
    %cst_10 = arith.constant 5.000000e-01 : f32
    %20 = vector.broadcast %cst_10 : f32 to vector<8x512xf32>
    %21 = arith.mulf %20, %19 : vector<8x512xf32>
    %22 = arith.mulf %9, %21 : vector<8x512xf32>
    %c0_11 = arith.constant 0 : index
    %c0_12 = arith.constant 0 : index
    %23 = vector.load %arg5[%c0_11, %c0_12] : memref<8x512xf32, #tpu.memory_space<vmem>>, vector<8x512xf32>
    tpu.vector_store %arg5[%c0_11, %c0_12], %22 {strides = array<i32>} : memref<8x512xf32, #tpu.memory_space<vmem>>, vector<8x512xf32>,
    %c0_13 = arith.constant 0 : index
    %c0_14 = arith.constant 0 : index
    %24 = vector.load %arg4[%c0_13, %c0_14] : memref<8x8xf32, #tpu.memory_space<vmem>>, vector<8x8xf32>
    %25 = arith.truncf %24 : vector<8x8xf32> to vector<8x8xbf16>
    %26 = arith.truncf %22 : vector<8x512xf32> to vector<8x512xbf16>
    %cst_15 = arith.constant dense<0.000000e+00> : vector<8x512xf32>
    %27 = tpu.matmul %25, %26, %cst_15 {dimension_numbers = #tpu.dot_dimension_numbers<[1], [0], [0], [1], [0, 0, 1, 1], [], []>} : vector<8x8xbf16>, vector<8x512xbf16>, vector<8x512xf32> -> vector<8x512xf32>
    %c0_16 = arith.constant 0 : index
    %c0_17 = arith.constant 0 : index
    %28 = vector.load %arg6[%c0_16, %c0_17] : memref<8x512xf32, #tpu.memory_space<vmem>>, vector<8x512xf32>
    tpu.vector_store %arg6[%c0_16, %c0_17], %27 {strides = array<i32>} : memref<8x512xf32, #tpu.memory_space<vmem>>, vector<8x512xf32>,
    return
  }
}

module attributes {stable_mosaic.version = 11 : i64} {
  func.func @fno_block_kernel(%arg0: memref<16x512xf32, #tpu.memory_space<vmem>>, %arg1: memref<8x512xf32, #tpu.memory_space<vmem>>, %arg2: memref<8x16xf32, #tpu.memory_space<vmem>>, %arg3: memref<8x1xf32, #tpu.memory_space<vmem>>, %arg4: memref<8x512xf32, #tpu.memory_space<vmem>>) attributes {dimension_semantics = [], scalar_prefetch = 0 : i64, scratch_operands = 0 : i64, tpu.core_type = #tpu.core_type<tc>} {
    %c0 = arith.constant 0 : index
    %c0_0 = arith.constant 0 : index
    %0 = vector.load %arg2[%c0, %c0_0] : memref<8x16xf32, #tpu.memory_space<vmem>>, vector<8x16xf32>
    %1 = arith.truncf %0 : vector<8x16xf32> to vector<8x16xbf16>
    %c0_1 = arith.constant 0 : index
    %c0_2 = arith.constant 0 : index
    %2 = vector.load %arg0[%c0_1, %c0_2] : memref<16x512xf32, #tpu.memory_space<vmem>>, vector<16x512xf32>
    %3 = arith.truncf %2 : vector<16x512xf32> to vector<16x512xbf16>
    %cst = arith.constant dense<0.000000e+00> : vector<8x512xf32>
    %4 = tpu.matmul %1, %3, %cst {dimension_numbers = #tpu.dot_dimension_numbers<[1], [0], [0], [1], [0, 0, 1, 1], [], []>} : vector<8x16xbf16>, vector<16x512xbf16>, vector<8x512xf32> -> vector<8x512xf32>
    %c0_3 = arith.constant 0 : index
    %c0_4 = arith.constant 0 : index
    %5 = vector.load %arg1[%c0_3, %c0_4] : memref<8x512xf32, #tpu.memory_space<vmem>>, vector<8x512xf32>
    %6 = arith.addf %4, %5 : vector<8x512xf32>
    %c0_5 = arith.constant 0 : index
    %c0_6 = arith.constant 0 : index
    %7 = vector.load %arg3[%c0_5, %c0_6] : memref<8x1xf32, #tpu.memory_space<vmem>>, vector<8x1xf32>
    %8 = vector.broadcast %7 : vector<8x1xf32> to vector<8x512xf32>
    %9 = arith.addf %6, %8 : vector<8x512xf32>
    %10 = arith.mulf %9, %9 : vector<8x512xf32>
    %11 = arith.mulf %9, %10 : vector<8x512xf32>
    %cst_7 = arith.constant 4.471500e-02 : f32
    %12 = vector.broadcast %cst_7 : f32 to vector<8x512xf32>
    %13 = arith.mulf %12, %11 : vector<8x512xf32>
    %14 = arith.addf %9, %13 : vector<8x512xf32>
    %cst_8 = arith.constant 0.797884583 : f32
    %15 = vector.broadcast %cst_8 : f32 to vector<8x512xf32>
    %16 = arith.mulf %15, %14 : vector<8x512xf32>
    %17 = math.tanh %16 : vector<8x512xf32>
    %cst_9 = arith.constant 1.000000e+00 : f32
    %18 = vector.broadcast %cst_9 : f32 to vector<8x512xf32>
    %19 = arith.addf %18, %17 : vector<8x512xf32>
    %cst_10 = arith.constant 5.000000e-01 : f32
    %20 = vector.broadcast %cst_10 : f32 to vector<8x512xf32>
    %21 = arith.mulf %20, %19 : vector<8x512xf32>
    %22 = arith.mulf %9, %21 : vector<8x512xf32>
    %c0_11 = arith.constant 0 : index
    %c0_12 = arith.constant 0 : index
    %23 = vector.load %arg4[%c0_11, %c0_12] : memref<8x512xf32, #tpu.memory_space<vmem>>, vector<8x512xf32>
    tpu.vector_store %arg4[%c0_11, %c0_12], %22 {strides = array<i32>} : memref<8x512xf32, #tpu.memory_space<vmem>>, vector<8x512xf32>,
    return
  }
}

module attributes {stable_mosaic.version = 11 : i64} {
  func.func @spectral_mix_kernel(%arg0: memref<32x2x32xf32, #tpu.memory_space<vmem>>, %arg1: memref<32x32x16xf32, #tpu.memory_space<vmem>>, %arg2: memref<32x2x16xf32, #tpu.memory_space<vmem>>) attributes {dimension_semantics = [], scalar_prefetch = 0 : i64, scratch_operands = 0 : i64, tpu.core_type = #tpu.core_type<tc>} {
    %c0 = arith.constant 0 : index
    %c0_0 = arith.constant 0 : index
    %c0_1 = arith.constant 0 : index
    %0 = vector.load %arg0[%c0, %c0_0, %c0_1] : memref<32x2x32xf32, #tpu.memory_space<vmem>>, vector<1x2x32xf32>
    %1 = vector.shape_cast %0 : vector<1x2x32xf32> to vector<2x32xf32>
    %2 = arith.truncf %1 : vector<2x32xf32> to vector<2x32xbf16>
    %c0_2 = arith.constant 0 : index
    %c0_3 = arith.constant 0 : index
    %c0_4 = arith.constant 0 : index
    %3 = vector.load %arg1[%c0_2, %c0_3, %c0_4] : memref<32x32x16xf32, #tpu.memory_space<vmem>>, vector<1x32x16xf32>
    %4 = vector.shape_cast %3 : vector<1x32x16xf32> to vector<32x16xf32>
    %5 = arith.truncf %4 : vector<32x16xf32> to vector<32x16xbf16>
    %cst = arith.constant dense<0.000000e+00> : vector<2x16xf32>
    %6 = tpu.matmul %2, %5, %cst {dimension_numbers = #tpu.dot_dimension_numbers<[1], [0], [0], [1], [0, 0, 1, 1], [], []>} : vector<2x32xbf16>, vector<32x16xbf16>, vector<2x16xf32> -> vector<2x16xf32>
    %c0_5 = arith.constant 0 : index
    %c0_6 = arith.constant 0 : index
    %c0_7 = arith.constant 0 : index
    %7 = vector.load %arg2[%c0_5, %c0_6, %c0_7] : memref<32x2x16xf32, #tpu.memory_space<vmem>>, vector<1x2x16xf32>
    %8 = vector.shape_cast %7 : vector<1x2x16xf32> to vector<2x16xf32>
    %9 = vector.shape_cast %6 : vector<2x16xf32> to vector<1x2x16xf32>
    tpu.vector_store %arg2[%c0_5, %c0_6, %c0_7], %9 {strides = array<i32>} : memref<32x2x16xf32, #tpu.memory_space<vmem>>, vector<1x2x16xf32>,
    %c1 = arith.constant 1 : index
    %c0_8 = arith.constant 0 : index
    %c0_9 = arith.constant 0 : index
    %10 = vector.load %arg0[%c1, %c0_8, %c0_9] : memref<32x2x32xf32, #tpu.memory_space<vmem>>, vector<1x2x32xf32>
    %11 = vector.shape_cast %10 : vector<1x2x32xf32> to vector<2x32xf32>
    %12 = arith.truncf %11 : vector<2x32xf32> to vector<2x32xbf16>
    %c1_10 = arith.constant 1 : index
    %c0_11 = arith.constant 0 : index
    %c0_12 = arith.constant 0 : index
    %13 = vector.load %arg1[%c1_10, %c0_11, %c0_12] : memref<32x32x16xf32, #tpu.memory_space<vmem>>, vector<1x32x16xf32>
    %14 = vector.shape_cast %13 : vector<1x32x16xf32> to vector<32x16xf32>
    %15 = arith.truncf %14 : vector<32x16xf32> to vector<32x16xbf16>
    %cst_13 = arith.constant dense<0.000000e+00> : vector<2x16xf32>
    %16 = tpu.matmul %12, %15, %cst_13 {dimension_numbers = #tpu.dot_dimension_numbers<[1], [0], [0], [1], [0, 0, 1, 1], [], []>} : vector<2x32xbf16>, vector<32x16xbf16>, vector<2x16xf32> -> vector<2x16xf32>
    %c1_14 = arith.constant 1 : index
    %c0_15 = arith.constant 0 : index
    %c0_16 = arith.constant 0 : index
    %17 = vector.load %arg2[%c1_14, %c0_15, %c0_16] : memref<32x2x16xf32, #tpu.memory_space<vmem>>, vector<1x2x16xf32>
    %18 = vector.shape_cast %17 : vector<1x2x16xf32> to vector<2x16xf32>
    %19 = vector.shape_cast %16 : vector<2x16xf32> to vector<1x2x16xf32>
    tpu.vector_store %arg2[%c1_14, %c0_15, %c0_16], %19 {strides = array<i32>} : memref<32x2x16xf32, #tpu.memory_space<vmem>>, vector<1x2x16xf32>,
    %c2 = arith.constant 2 : index
    %c0_17 = arith.constant 0 : index
    %c0_18 = arith.constant 0 : index
    %20 = vector.load %arg0[%c2, %c0_17, %c0_18] : memref<32x2x32xf32, #tpu.memory_space<vmem>>, vector<1x2x32xf32>
    %21 = vector.shape_cast %20 : vector<1x2x32xf32> to vector<2x32xf32>
    %22 = arith.truncf %21 : vector<2x32xf32> to vector<2x32xbf16>
    %c2_19 = arith.constant 2 : index
    %c0_20 = arith.constant 0 : index
    %c0_21 = arith.constant 0 : index
    %23 = vector.load %arg1[%c2_19, %c0_20, %c0_21] : memref<32x32x16xf32, #tpu.memory_space<vmem>>, vector<1x32x16xf32>
    %24 = vector.shape_cast %23 : vector<1x32x16xf32> to vector<32x16xf32>
    %25 = arith.truncf %24 : vector<32x16xf32> to vector<32x16xbf16>
    %cst_22 = arith.constant dense<0.000000e+00> : vector<2x16xf32>
    %26 = tpu.matmul %22, %25, %cst_22 {dimension_numbers = #tpu.dot_dimension_numbers<[1], [0], [0], [1], [0, 0, 1, 1], [], []>} : vector<2x32xbf16>, vector<32x16xbf16>, vector<2x16xf32> -> vector<2x16xf32>
    %c2_23 = arith.constant 2 : index
    %c0_24 = arith.constant 0 : index
    %c0_25 = arith.constant 0 : index
    %27 = vector.load %arg2[%c2_23, %c0_24, %c0_25] : memref<32x2x16xf32, #tpu.memory_space<vmem>>, vector<1x2x16xf32>
    %28 = vector.shape_cast %27 : vector<1x2x16xf32> to vector<2x16xf32>
    %29 = vector.shape_cast %26 : vector<2x16xf32> to vector<1x2x16xf32>
    tpu.vector_store %arg2[%c2_23, %c0_24, %c0_25], %29 {strides = array<i32>} : memref<32x2x16xf32, #tpu.memory_space<vmem>>, vector<1x2x16xf32>,
    %c3 = arith.constant 3 : index
    %c0_26 = arith.constant 0 : index
    %c0_27 = arith.constant 0 : index
    %30 = vector.load %arg0[%c3, %c0_26, %c0_27] : memref<32x2x32xf32, #tpu.memory_space<vmem>>, vector<1x2x32xf32>
    %31 = vector.shape_cast %30 : vector<1x2x32xf32> to vector<2x32xf32>
    %32 = arith.truncf %31 : vector<2x32xf32> to vector<2x32xbf16>
    %c3_28 = arith.constant 3 : index
    %c0_29 = arith.constant 0 : index
    %c0_30 = arith.constant 0 : index
    %33 = vector.load %arg1[%c3_28, %c0_29, %c0_30] : memref<32x32x16xf32, #tpu.memory_space<vmem>>, vector<1x32x16xf32>
    %34 = vector.shape_cast %33 : vector<1x32x16xf32> to vector<32x16xf32>
    %35 = arith.truncf %34 : vector<32x16xf32> to vector<32x16xbf16>
    %cst_31 = arith.constant dense<0.000000e+00> : vector<2x16xf32>
    %36 = tpu.matmul %32, %35, %cst_31 {dimension_numbers = #tpu.dot_dimension_numbers<[1], [0], [0], [1], [0, 0, 1, 1], [], []>} : vector<2x32xbf16>, vector<32x16xbf16>, vector<2x16xf32> -> vector<2x16xf32>
    %c3_32 = arith.constant 3 : index
    %c0_33 = arith.constant 0 : index
    %c0_34 = arith.constant 0 : index
    %37 = vector.load %arg2[%c3_32, %c0_33, %c0_34] : memref<32x2x16xf32, #tpu.memory_space<vmem>>, vector<1x2x16xf32>
    %38 = vector.shape_cast %37 : vector<1x2x16xf32> to vector<2x16xf32>
    %39 = vector.shape_cast %36 : vector<2x16xf32> to vector<1x2x16xf32>
    tpu.vector_store %arg2[%c3_32, %c0_33, %c0_34], %39 {strides = array<i32>} : memref<32x2x16xf32, #tpu.memory_space<vmem>>, vector<1x2x16xf32>,
    %c4 = arith.constant 4 : index
    %c0_35 = arith.constant 0 : index
    %c0_36 = arith.constant 0 : index
    %40 = vector.load %arg0[%c4, %c0_35, %c0_36] : memref<32x2x32xf32, #tpu.memory_space<vmem>>, vector<1x2x32xf32>
    %41 = vector.shape_cast %40 : vector<1x2x32xf32> to vector<2x32xf32>
    %42 = arith.truncf %41 : vector<2x32xf32> to vector<2x32xbf16>
    %c4_37 = arith.constant 4 : index
    %c0_38 = arith.constant 0 : index
    %c0_39 = arith.constant 0 : index
    %43 = vector.load %arg1[%c4_37, %c0_38, %c0_39] : memref<32x32x16xf32, #tpu.memory_space<vmem>>, vector<1x32x16xf32>
    %44 = vector.shape_cast %43 : vector<1x32x16xf32> to vector<32x16xf32>
    %45 = arith.truncf %44 : vector<32x16xf32> to vector<32x16xbf16>
    %cst_40 = arith.constant dense<0.000000e+00> : vector<2x16xf32>
    %46 = tpu.matmul %42, %45, %cst_40 {dimension_numbers = #tpu.dot_dimension_numbers<[1], [0], [0], [1], [0, 0, 1, 1], [], []>} : vector<2x32xbf16>, vector<32x16xbf16>, vector<2x16xf32> -> vector<2x16xf32>
    %c4_41 = arith.constant 4 : index
    %c0_42 = arith.constant 0 : index
    %c0_43 = arith.constant 0 : index
    %47 = vector.load %arg2[%c4_41, %c0_42, %c0_43] : memref<32x2x16xf32, #tpu.memory_space<vmem>>, vector<1x2x16xf32>
    %48 = vector.shape_cast %47 : vector<1x2x16xf32> to vector<2x16xf32>
    %49 = vector.shape_cast %46 : vector<2x16xf32> to vector<1x2x16xf32>
    tpu.vector_store %arg2[%c4_41, %c0_42, %c0_43], %49 {strides = array<i32>} : memref<32x2x16xf32, #tpu.memory_space<vmem>>, vector<1x2x16xf32>,
    %c5 = arith.constant 5 : index
    %c0_44 = arith.constant 0 : index
    %c0_45 = arith.constant 0 : index
    %50 = vector.load %arg0[%c5, %c0_44, %c0_45] : memref<32x2x32xf32, #tpu.memory_space<vmem>>, vector<1x2x32xf32>
    %51 = vector.shape_cast %50 : vector<1x2x32xf32> to vector<2x32xf32>
    %52 = arith.truncf %51 : vector<2x32xf32> to vector<2x32xbf16>
    %c5_46 = arith.constant 5 : index
    %c0_47 = arith.constant 0 : index
    %c0_48 = arith.constant 0 : index
    %53 = vector.load %arg1[%c5_46, %c0_47, %c0_48] : memref<32x32x16xf32, #tpu.memory_space<vmem>>, vector<1x32x16xf32>
    %54 = vector.shape_cast %53 : vector<1x32x16xf32> to vector<32x16xf32>
    %55 = arith.truncf %54 : vector<32x16xf32> to vector<32x16xbf16>
    %cst_49 = arith.constant dense<0.000000e+00> : vector<2x16xf32>
    %56 = tpu.matmul %52, %55, %cst_49 {dimension_numbers = #tpu.dot_dimension_numbers<[1], [0], [0], [1], [0, 0, 1, 1], [], []>} : vector<2x32xbf16>, vector<32x16xbf16>, vector<2x16xf32> -> vector<2x16xf32>
    %c5_50 = arith.constant 5 : index
    %c0_51 = arith.constant 0 : index
    %c0_52 = arith.constant 0 : index
    %57 = vector.load %arg2[%c5_50, %c0_51, %c0_52] : memref<32x2x16xf32, #tpu.memory_space<vmem>>, vector<1x2x16xf32>
    %58 = vector.shape_cast %57 : vector<1x2x16xf32> to vector<2x16xf32>
    %59 = vector.shape_cast %56 : vector<2x16xf32> to vector<1x2x16xf32>
    tpu.vector_store %arg2[%c5_50, %c0_51, %c0_52], %59 {strides = array<i32>} : memref<32x2x16xf32, #tpu.memory_space<vmem>>, vector<1x2x16xf32>,
    %c6 = arith.constant 6 : index
    %c0_53 = arith.constant 0 : index
    %c0_54 = arith.constant 0 : index
    %60 = vector.load %arg0[%c6, %c0_53, %c0_54] : memref<32x2x32xf32, #tpu.memory_space<vmem>>, vector<1x2x32xf32>
    %61 = vector.shape_cast %60 : vector<1x2x32xf32> to vector<2x32xf32>
    %62 = arith.truncf %61 : vector<2x32xf32> to vector<2x32xbf16>
    %c6_55 = arith.constant 6 : index
    %c0_56 = arith.constant 0 : index
    %c0_57 = arith.constant 0 : index
    %63 = vector.load %arg1[%c6_55, %c0_56, %c0_57] : memref<32x32x16xf32, #tpu.memory_space<vmem>>, vector<1x32x16xf32>
    %64 = vector.shape_cast %63 : vector<1x32x16xf32> to vector<32x16xf32>
    %65 = arith.truncf %64 : vector<32x16xf32> to vector<32x16xbf16>
    %cst_58 = arith.constant dense<0.000000e+00> : vector<2x16xf32>
    %66 = tpu.matmul %62, %65, %cst_58 {dimension_numbers = #tpu.dot_dimension_numbers<[1], [0], [0], [1], [0, 0, 1, 1], [], []>} : vector<2x32xbf16>, vector<32x16xbf16>, vector<2x16xf32> -> vector<2x16xf32>
    %c6_59 = arith.constant 6 : index
    %c0_60 = arith.constant 0 : index
    %c0_61 = arith.constant 0 : index
    %67 = vector.load %arg2[%c6_59, %c0_60, %c0_61] : memref<32x2x16xf32, #tpu.memory_space<vmem>>, vector<1x2x16xf32>
    %68 = vector.shape_cast %67 : vector<1x2x16xf32> to vector<2x16xf32>
    %69 = vector.shape_cast %66 : vector<2x16xf32> to vector<1x2x16xf32>
    tpu.vector_store %arg2[%c6_59, %c0_60, %c0_61], %69 {strides = array<i32>} : memref<32x2x16xf32, #tpu.memory_space<vmem>>, vector<1x2x16xf32>,
    %c7 = arith.constant 7 : index
    %c0_62 = arith.constant 0 : index
    %c0_63 = arith.constant 0 : index
    %70 = vector.load %arg0[%c7, %c0_62, %c0_63] : memref<32x2x32xf32, #tpu.memory_space<vmem>>, vector<1x2x32xf32>
    %71 = vector.shape_cast %70 : vector<1x2x32xf32> to vector<2x32xf32>
    %72 = arith.truncf %71 : vector<2x32xf32> to vector<2x32xbf16>
    %c7_64 = arith.constant 7 : index
    %c0_65 = arith.constant 0 : index
    %c0_66 = arith.constant 0 : index
    %73 = vector.load %arg1[%c7_64, %c0_65, %c0_66] : memref<32x32x16xf32, #tpu.memory_space<vmem>>, vector<1x32x16xf32>
    %74 = vector.shape_cast %73 : vector<1x32x16xf32> to vector<32x16xf32>
    %75 = arith.truncf %74 : vector<32x16xf32> to vector<32x16xbf16>
    %cst_67 = arith.constant dense<0.000000e+00> : vector<2x16xf32>
    %76 = tpu.matmul %72, %75, %cst_67 {dimension_numbers = #tpu.dot_dimension_numbers<[1], [0], [0], [1], [0, 0, 1, 1], [], []>} : vector<2x32xbf16>, vector<32x16xbf16>, vector<2x16xf32> -> vector<2x16xf32>
    %c7_68 = arith.constant 7 : index
    %c0_69 = arith.constant 0 : index
    %c0_70 = arith.constant 0 : index
    %77 = vector.load %arg2[%c7_68, %c0_69, %c0_70] : memref<32x2x16xf32, #tpu.memory_space<vmem>>, vector<1x2x16xf32>
    %78 = vector.shape_cast %77 : vector<1x2x16xf32> to vector<2x16xf32>
    %79 = vector.shape_cast %76 : vector<2x16xf32> to vector<1x2x16xf32>
    tpu.vector_store %arg2[%c7_68, %c0_69, %c0_70], %79 {strides = array<i32>} : memref<32x2x16xf32, #tpu.memory_space<vmem>>, vector<1x2x16xf32>,
    %c8 = arith.constant 8 : index
    %c0_71 = arith.constant 0 : index
    %c0_72 = arith.constant 0 : index
    %80 = vector.load %arg0[%c8, %c0_71, %c0_72] : memref<32x2x32xf32, #tpu.memory_space<vmem>>, vector<1x2x32xf32>
    %81 = vector.shape_cast %80 : vector<1x2x32xf32> to vector<2x32xf32>
    %82 = arith.truncf %81 : vector<2x32xf32> to vector<2x32xbf16>
    %c8_73 = arith.constant 8 : index
    %c0_74 = arith.constant 0 : index
    %c0_75 = arith.constant 0 : index
    %83 = vector.load %arg1[%c8_73, %c0_74, %c0_75] : memref<32x32x16xf32, #tpu.memory_space<vmem>>, vector<1x32x16xf32>
    %84 = vector.shape_cast %83 : vector<1x32x16xf32> to vector<32x16xf32>
    %85 = arith.truncf %84 : vector<32x16xf32> to vector<32x16xbf16>
    %cst_76 = arith.constant dense<0.000000e+00> : vector<2x16xf32>
    %86 = tpu.matmul %82, %85, %cst_76 {dimension_numbers = #tpu.dot_dimension_numbers<[1], [0], [0], [1], [0, 0, 1, 1], [], []>} : vector<2x32xbf16>, vector<32x16xbf16>, vector<2x16xf32> -> vector<2x16xf32>
    %c8_77 = arith.constant 8 : index
    %c0_78 = arith.constant 0 : index
    %c0_79 = arith.constant 0 : index
    %87 = vector.load %arg2[%c8_77, %c0_78, %c0_79] : memref<32x2x16xf32, #tpu.memory_space<vmem>>, vector<1x2x16xf32>
    %88 = vector.shape_cast %87 : vector<1x2x16xf32> to vector<2x16xf32>
    %89 = vector.shape_cast %86 : vector<2x16xf32> to vector<1x2x16xf32>
    tpu.vector_store %arg2[%c8_77, %c0_78, %c0_79], %89 {strides = array<i32>} : memref<32x2x16xf32, #tpu.memory_space<vmem>>, vector<1x2x16xf32>,
    %c9 = arith.constant 9 : index
    %c0_80 = arith.constant 0 : index
    %c0_81 = arith.constant 0 : index
    %90 = vector.load %arg0[%c9, %c0_80, %c0_81] : memref<32x2x32xf32, #tpu.memory_space<vmem>>, vector<1x2x32xf32>
    %91 = vector.shape_cast %90 : vector<1x2x32xf32> to vector<2x32xf32>
    %92 = arith.truncf %91 : vector<2x32xf32> to vector<2x32xbf16>
    %c9_82 = arith.constant 9 : index
    %c0_83 = arith.constant 0 : index
    %c0_84 = arith.constant 0 : index
    %93 = vector.load %arg1[%c9_82, %c0_83, %c0_84] : memref<32x32x16xf32, #tpu.memory_space<vmem>>, vector<1x32x16xf32>
    %94 = vector.shape_cast %93 : vector<1x32x16xf32> to vector<32x16xf32>
    %95 = arith.truncf %94 : vector<32x16xf32> to vector<32x16xbf16>
    %cst_85 = arith.constant dense<0.000000e+00> : vector<2x16xf32>
    %96 = tpu.matmul %92, %95, %cst_85 {dimension_numbers = #tpu.dot_dimension_numbers<[1], [0], [0], [1], [0, 0, 1, 1], [], []>} : vector<2x32xbf16>, vector<32x16xbf16>, vector<2x16xf32> -> vector<2x16xf32>
    %c9_86 = arith.constant 9 : index
    %c0_87 = arith.constant 0 : index
    %c0_88 = arith.constant 0 : index
    %97 = vector.load %arg2[%c9_86, %c0_87, %c0_88] : memref<32x2x16xf32, #tpu.memory_space<vmem>>, vector<1x2x16xf32>
    %98 = vector.shape_cast %97 : vector<1x2x16xf32> to vector<2x16xf32>
    %99 = vector.shape_cast %96 : vector<2x16xf32> to vector<1x2x16xf32>
    tpu.vector_store %arg2[%c9_86, %c0_87, %c0_88], %99 {strides = array<i32>} : memref<32x2x16xf32, #tpu.memory_space<vmem>>, vector<1x2x16xf32>,
    %c10 = arith.constant 10 : index
    %c0_89 = arith.constant 0 : index
    %c0_90 = arith.constant 0 : index
    %100 = vector.load %arg0[%c10, %c0_89, %c0_90] : memref<32x2x32xf32, #tpu.memory_space<vmem>>, vector<1x2x32xf32>
    %101 = vector.shape_cast %100 : vector<1x2x32xf32> to vector<2x32xf32>
    %102 = arith.truncf %101 : vector<2x32xf32> to vector<2x32xbf16>
    %c10_91 = arith.constant 10 : index
    %c0_92 = arith.constant 0 : index
    %c0_93 = arith.constant 0 : index
    %103 = vector.load %arg1[%c10_91, %c0_92, %c0_93] : memref<32x32x16xf32, #tpu.memory_space<vmem>>, vector<1x32x16xf32>
    %104 = vector.shape_cast %103 : vector<1x32x16xf32> to vector<32x16xf32>
    %105 = arith.truncf %104 : vector<32x16xf32> to vector<32x16xbf16>
    %cst_94 = arith.constant dense<0.000000e+00> : vector<2x16xf32>
    %106 = tpu.matmul %102, %105, %cst_94 {dimension_numbers = #tpu.dot_dimension_numbers<[1], [0], [0], [1], [0, 0, 1, 1], [], []>} : vector<2x32xbf16>, vector<32x16xbf16>, vector<2x16xf32> -> vector<2x16xf32>
    %c10_95 = arith.constant 10 : index
    %c0_96 = arith.constant 0 : index
    %c0_97 = arith.constant 0 : index
    %107 = vector.load %arg2[%c10_95, %c0_96, %c0_97] : memref<32x2x16xf32, #tpu.memory_space<vmem>>, vector<1x2x16xf32>
    %108 = vector.shape_cast %107 : vector<1x2x16xf32> to vector<2x16xf32>
    %109 = vector.shape_cast %106 : vector<2x16xf32> to vector<1x2x16xf32>
    tpu.vector_store %arg2[%c10_95, %c0_96, %c0_97], %109 {strides = array<i32>} : memref<32x2x16xf32, #tpu.memory_space<vmem>>, vector<1x2x16xf32>,
    %c11 = arith.constant 11 : index
    %c0_98 = arith.constant 0 : index
    %c0_99 = arith.constant 0 : index
    %110 = vector.load %arg0[%c11, %c0_98, %c0_99] : memref<32x2x32xf32, #tpu.memory_space<vmem>>, vector<1x2x32xf32>
    %111 = vector.shape_cast %110 : vector<1x2x32xf32> to vector<2x32xf32>
    %112 = arith.truncf %111 : vector<2x32xf32> to vector<2x32xbf16>
    %c11_100 = arith.constant 11 : index
    %c0_101 = arith.constant 0 : index
    %c0_102 = arith.constant 0 : index
    %113 = vector.load %arg1[%c11_100, %c0_101, %c0_102] : memref<32x32x16xf32, #tpu.memory_space<vmem>>, vector<1x32x16xf32>
    %114 = vector.shape_cast %113 : vector<1x32x16xf32> to vector<32x16xf32>
    %115 = arith.truncf %114 : vector<32x16xf32> to vector<32x16xbf16>
    %cst_103 = arith.constant dense<0.000000e+00> : vector<2x16xf32>
    %116 = tpu.matmul %112, %115, %cst_103 {dimension_numbers = #tpu.dot_dimension_numbers<[1], [0], [0], [1], [0, 0, 1, 1], [], []>} : vector<2x32xbf16>, vector<32x16xbf16>, vector<2x16xf32> -> vector<2x16xf32>
    %c11_104 = arith.constant 11 : index
    %c0_105 = arith.constant 0 : index
    %c0_106 = arith.constant 0 : index
    %117 = vector.load %arg2[%c11_104, %c0_105, %c0_106] : memref<32x2x16xf32, #tpu.memory_space<vmem>>, vector<1x2x16xf32>
    %118 = vector.shape_cast %117 : vector<1x2x16xf32> to vector<2x16xf32>
    %119 = vector.shape_cast %116 : vector<2x16xf32> to vector<1x2x16xf32>
    tpu.vector_store %arg2[%c11_104, %c0_105, %c0_106], %119 {strides = array<i32>} : memref<32x2x16xf32, #tpu.memory_space<vmem>>, vector<1x2x16xf32>,
    %c12 = arith.constant 12 : index
    %c0_107 = arith.constant 0 : index
    %c0_108 = arith.constant 0 : index
    %120 = vector.load %arg0[%c12, %c0_107, %c0_108] : memref<32x2x32xf32, #tpu.memory_space<vmem>>, vector<1x2x32xf32>
    %121 = vector.shape_cast %120 : vector<1x2x32xf32> to vector<2x32xf32>
    %122 = arith.truncf %121 : vector<2x32xf32> to vector<2x32xbf16>
    %c12_109 = arith.constant 12 : index
    %c0_110 = arith.constant 0 : index
    %c0_111 = arith.constant 0 : index
    %123 = vector.load %arg1[%c12_109, %c0_110, %c0_111] : memref<32x32x16xf32, #tpu.memory_space<vmem>>, vector<1x32x16xf32>
    %124 = vector.shape_cast %123 : vector<1x32x16xf32> to vector<32x16xf32>
    %125 = arith.truncf %124 : vector<32x16xf32> to vector<32x16xbf16>
    %cst_112 = arith.constant dense<0.000000e+00> : vector<2x16xf32>
    %126 = tpu.matmul %122, %125, %cst_112 {dimension_numbers = #tpu.dot_dimension_numbers<[1], [0], [0], [1], [0, 0, 1, 1], [], []>} : vector<2x32xbf16>, vector<32x16xbf16>, vector<2x16xf32> -> vector<2x16xf32>
    %c12_113 = arith.constant 12 : index
    %c0_114 = arith.constant 0 : index
    %c0_115 = arith.constant 0 : index
    %127 = vector.load %arg2[%c12_113, %c0_114, %c0_115] : memref<32x2x16xf32, #tpu.memory_space<vmem>>, vector<1x2x16xf32>
    %128 = vector.shape_cast %127 : vector<1x2x16xf32> to vector<2x16xf32>
    %129 = vector.shape_cast %126 : vector<2x16xf32> to vector<1x2x16xf32>
    tpu.vector_store %arg2[%c12_113, %c0_114, %c0_115], %129 {strides = array<i32>} : memref<32x2x16xf32, #tpu.memory_space<vmem>>, vector<1x2x16xf32>,
    %c13 = arith.constant 13 : index
    %c0_116 = arith.constant 0 : index
    %c0_117 = arith.constant 0 : index
    %130 = vector.load %arg0[%c13, %c0_116, %c0_117] : memref<32x2x32xf32, #tpu.memory_space<vmem>>, vector<1x2x32xf32>
    %131 = vector.shape_cast %130 : vector<1x2x32xf32> to vector<2x32xf32>
    %132 = arith.truncf %131 : vector<2x32xf32> to vector<2x32xbf16>
    %c13_118 = arith.constant 13 : index
    %c0_119 = arith.constant 0 : index
    %c0_120 = arith.constant 0 : index
    %133 = vector.load %arg1[%c13_118, %c0_119, %c0_120] : memref<32x32x16xf32, #tpu.memory_space<vmem>>, vector<1x32x16xf32>
    %134 = vector.shape_cast %133 : vector<1x32x16xf32> to vector<32x16xf32>
    %135 = arith.truncf %134 : vector<32x16xf32> to vector<32x16xbf16>
    %cst_121 = arith.constant dense<0.000000e+00> : vector<2x16xf32>
    %136 = tpu.matmul %132, %135, %cst_121 {dimension_numbers = #tpu.dot_dimension_numbers<[1], [0], [0], [1], [0, 0, 1, 1], [], []>} : vector<2x32xbf16>, vector<32x16xbf16>, vector<2x16xf32> -> vector<2x16xf32>
    %c13_122 = arith.constant 13 : index
    %c0_123 = arith.constant 0 : index
    %c0_124 = arith.constant 0 : index
    %137 = vector.load %arg2[%c13_122, %c0_123, %c0_124] : memref<32x2x16xf32, #tpu.memory_space<vmem>>, vector<1x2x16xf32>
    %138 = vector.shape_cast %137 : vector<1x2x16xf32> to vector<2x16xf32>
    %139 = vector.shape_cast %136 : vector<2x16xf32> to vector<1x2x16xf32>
    tpu.vector_store %arg2[%c13_122, %c0_123, %c0_124], %139 {strides = array<i32>} : memref<32x2x16xf32, #tpu.memory_space<vmem>>, vector<1x2x16xf32>,
    %c14 = arith.constant 14 : index
    %c0_125 = arith.constant 0 : index
    %c0_126 = arith.constant 0 : index
    %140 = vector.load %arg0[%c14, %c0_125, %c0_126] : memref<32x2x32xf32, #tpu.memory_space<vmem>>, vector<1x2x32xf32>
    %141 = vector.shape_cast %140 : vector<1x2x32xf32> to vector<2x32xf32>
    %142 = arith.truncf %141 : vector<2x32xf32> to vector<2x32xbf16>
    %c14_127 = arith.constant 14 : index
    %c0_128 = arith.constant 0 : index
    %c0_129 = arith.constant 0 : index
    %143 = vector.load %arg1[%c14_127, %c0_128, %c0_129] : memref<32x32x16xf32, #tpu.memory_space<vmem>>, vector<1x32x16xf32>
    %144 = vector.shape_cast %143 : vector<1x32x16xf32> to vector<32x16xf32>
    %145 = arith.truncf %144 : vector<32x16xf32> to vector<32x16xbf16>
    %cst_130 = arith.constant dense<0.000000e+00> : vector<2x16xf32>
    %146 = tpu.matmul %142, %145, %cst_130 {dimension_numbers = #tpu.dot_dimension_numbers<[1], [0], [0], [1], [0, 0, 1, 1], [], []>} : vector<2x32xbf16>, vector<32x16xbf16>, vector<2x16xf32> -> vector<2x16xf32>
    %c14_131 = arith.constant 14 : index
    %c0_132 = arith.constant 0 : index
    %c0_133 = arith.constant 0 : index
    %147 = vector.load %arg2[%c14_131, %c0_132, %c0_133] : memref<32x2x16xf32, #tpu.memory_space<vmem>>, vector<1x2x16xf32>
    %148 = vector.shape_cast %147 : vector<1x2x16xf32> to vector<2x16xf32>
    %149 = vector.shape_cast %146 : vector<2x16xf32> to vector<1x2x16xf32>
    tpu.vector_store %arg2[%c14_131, %c0_132, %c0_133], %149 {strides = array<i32>} : memref<32x2x16xf32, #tpu.memory_space<vmem>>, vector<1x2x16xf32>,
    %c15 = arith.constant 15 : index
    %c0_134 = arith.constant 0 : index
    %c0_135 = arith.constant 0 : index
    %150 = vector.load %arg0[%c15, %c0_134, %c0_135] : memref<32x2x32xf32, #tpu.memory_space<vmem>>, vector<1x2x32xf32>
    %151 = vector.shape_cast %150 : vector<1x2x32xf32> to vector<2x32xf32>
    %152 = arith.truncf %151 : vector<2x32xf32> to vector<2x32xbf16>
    %c15_136 = arith.constant 15 : index
    %c0_137 = arith.constant 0 : index
    %c0_138 = arith.constant 0 : index
    %153 = vector.load %arg1[%c15_136, %c0_137, %c0_138] : memref<32x32x16xf32, #tpu.memory_space<vmem>>, vector<1x32x16xf32>
    %154 = vector.shape_cast %153 : vector<1x32x16xf32> to vector<32x16xf32>
    %155 = arith.truncf %154 : vector<32x16xf32> to vector<32x16xbf16>
    %cst_139 = arith.constant dense<0.000000e+00> : vector<2x16xf32>
    %156 = tpu.matmul %152, %155, %cst_139 {dimension_numbers = #tpu.dot_dimension_numbers<[1], [0], [0], [1], [0, 0, 1, 1], [], []>} : vector<2x32xbf16>, vector<32x16xbf16>, vector<2x16xf32> -> vector<2x16xf32>
    %c15_140 = arith.constant 15 : index
    %c0_141 = arith.constant 0 : index
    %c0_142 = arith.constant 0 : index
    %157 = vector.load %arg2[%c15_140, %c0_141, %c0_142] : memref<32x2x16xf32, #tpu.memory_space<vmem>>, vector<1x2x16xf32>
    %158 = vector.shape_cast %157 : vector<1x2x16xf32> to vector<2x16xf32>
    %159 = vector.shape_cast %156 : vector<2x16xf32> to vector<1x2x16xf32>
    tpu.vector_store %arg2[%c15_140, %c0_141, %c0_142], %159 {strides = array<i32>} : memref<32x2x16xf32, #tpu.memory_space<vmem>>, vector<1x2x16xf32>,
    %c16 = arith.constant 16 : index
    %c0_143 = arith.constant 0 : index
    %c0_144 = arith.constant 0 : index
    %160 = vector.load %arg0[%c16, %c0_143, %c0_144] : memref<32x2x32xf32, #tpu.memory_space<vmem>>, vector<1x2x32xf32>
    %161 = vector.shape_cast %160 : vector<1x2x32xf32> to vector<2x32xf32>
    %162 = arith.truncf %161 : vector<2x32xf32> to vector<2x32xbf16>
    %c16_145 = arith.constant 16 : index
    %c0_146 = arith.constant 0 : index
    %c0_147 = arith.constant 0 : index
    %163 = vector.load %arg1[%c16_145, %c0_146, %c0_147] : memref<32x32x16xf32, #tpu.memory_space<vmem>>, vector<1x32x16xf32>
    %164 = vector.shape_cast %163 : vector<1x32x16xf32> to vector<32x16xf32>
    %165 = arith.truncf %164 : vector<32x16xf32> to vector<32x16xbf16>
    %cst_148 = arith.constant dense<0.000000e+00> : vector<2x16xf32>
    %166 = tpu.matmul %162, %165, %cst_148 {dimension_numbers = #tpu.dot_dimension_numbers<[1], [0], [0], [1], [0, 0, 1, 1], [], []>} : vector<2x32xbf16>, vector<32x16xbf16>, vector<2x16xf32> -> vector<2x16xf32>
    %c16_149 = arith.constant 16 : index
    %c0_150 = arith.constant 0 : index
    %c0_151 = arith.constant 0 : index
    %167 = vector.load %arg2[%c16_149, %c0_150, %c0_151] : memref<32x2x16xf32, #tpu.memory_space<vmem>>, vector<1x2x16xf32>
    %168 = vector.shape_cast %167 : vector<1x2x16xf32> to vector<2x16xf32>
    %169 = vector.shape_cast %166 : vector<2x16xf32> to vector<1x2x16xf32>
    tpu.vector_store %arg2[%c16_149, %c0_150, %c0_151], %169 {strides = array<i32>} : memref<32x2x16xf32, #tpu.memory_space<vmem>>, vector<1x2x16xf32>,
    %c17 = arith.constant 17 : index
    %c0_152 = arith.constant 0 : index
    %c0_153 = arith.constant 0 : index
    %170 = vector.load %arg0[%c17, %c0_152, %c0_153] : memref<32x2x32xf32, #tpu.memory_space<vmem>>, vector<1x2x32xf32>
    %171 = vector.shape_cast %170 : vector<1x2x32xf32> to vector<2x32xf32>
    %172 = arith.truncf %171 : vector<2x32xf32> to vector<2x32xbf16>
    %c17_154 = arith.constant 17 : index
    %c0_155 = arith.constant 0 : index
    %c0_156 = arith.constant 0 : index
    %173 = vector.load %arg1[%c17_154, %c0_155, %c0_156] : memref<32x32x16xf32, #tpu.memory_space<vmem>>, vector<1x32x16xf32>
    %174 = vector.shape_cast %173 : vector<1x32x16xf32> to vector<32x16xf32>
    %175 = arith.truncf %174 : vector<32x16xf32> to vector<32x16xbf16>
    %cst_157 = arith.constant dense<0.000000e+00> : vector<2x16xf32>
    %176 = tpu.matmul %172, %175, %cst_157 {dimension_numbers = #tpu.dot_dimension_numbers<[1], [0], [0], [1], [0, 0, 1, 1], [], []>} : vector<2x32xbf16>, vector<32x16xbf16>, vector<2x16xf32> -> vector<2x16xf32>
    %c17_158 = arith.constant 17 : index
    %c0_159 = arith.constant 0 : index
    %c0_160 = arith.constant 0 : index
    %177 = vector.load %arg2[%c17_158, %c0_159, %c0_160] : memref<32x2x16xf32, #tpu.memory_space<vmem>>, vector<1x2x16xf32>
    %178 = vector.shape_cast %177 : vector<1x2x16xf32> to vector<2x16xf32>
    %179 = vector.shape_cast %176 : vector<2x16xf32> to vector<1x2x16xf32>
    tpu.vector_store %arg2[%c17_158, %c0_159, %c0_160], %179 {strides = array<i32>} : memref<32x2x16xf32, #tpu.memory_space<vmem>>, vector<1x2x16xf32>,
    %c18 = arith.constant 18 : index
    %c0_161 = arith.constant 0 : index
    %c0_162 = arith.constant 0 : index
    %180 = vector.load %arg0[%c18, %c0_161, %c0_162] : memref<32x2x32xf32, #tpu.memory_space<vmem>>, vector<1x2x32xf32>
    %181 = vector.shape_cast %180 : vector<1x2x32xf32> to vector<2x32xf32>
    %182 = arith.truncf %181 : vector<2x32xf32> to vector<2x32xbf16>
    %c18_163 = arith.constant 18 : index
    %c0_164 = arith.constant 0 : index
    %c0_165 = arith.constant 0 : index
    %183 = vector.load %arg1[%c18_163, %c0_164, %c0_165] : memref<32x32x16xf32, #tpu.memory_space<vmem>>, vector<1x32x16xf32>
    %184 = vector.shape_cast %183 : vector<1x32x16xf32> to vector<32x16xf32>
    %185 = arith.truncf %184 : vector<32x16xf32> to vector<32x16xbf16>
    %cst_166 = arith.constant dense<0.000000e+00> : vector<2x16xf32>
    %186 = tpu.matmul %182, %185, %cst_166 {dimension_numbers = #tpu.dot_dimension_numbers<[1], [0], [0], [1], [0, 0, 1, 1], [], []>} : vector<2x32xbf16>, vector<32x16xbf16>, vector<2x16xf32> -> vector<2x16xf32>
    %c18_167 = arith.constant 18 : index
    %c0_168 = arith.constant 0 : index
    %c0_169 = arith.constant 0 : index
    %187 = vector.load %arg2[%c18_167, %c0_168, %c0_169] : memref<32x2x16xf32, #tpu.memory_space<vmem>>, vector<1x2x16xf32>
    %188 = vector.shape_cast %187 : vector<1x2x16xf32> to vector<2x16xf32>
    %189 = vector.shape_cast %186 : vector<2x16xf32> to vector<1x2x16xf32>
    tpu.vector_store %arg2[%c18_167, %c0_168, %c0_169], %189 {strides = array<i32>} : memref<32x2x16xf32, #tpu.memory_space<vmem>>, vector<1x2x16xf32>,
    %c19 = arith.constant 19 : index
    %c0_170 = arith.constant 0 : index
    %c0_171 = arith.constant 0 : index
    %190 = vector.load %arg0[%c19, %c0_170, %c0_171] : memref<32x2x32xf32, #tpu.memory_space<vmem>>, vector<1x2x32xf32>
    %191 = vector.shape_cast %190 : vector<1x2x32xf32> to vector<2x32xf32>
    %192 = arith.truncf %191 : vector<2x32xf32> to vector<2x32xbf16>
    %c19_172 = arith.constant 19 : index
    %c0_173 = arith.constant 0 : index
    %c0_174 = arith.constant 0 : index
    %193 = vector.load %arg1[%c19_172, %c0_173, %c0_174] : memref<32x32x16xf32, #tpu.memory_space<vmem>>, vector<1x32x16xf32>
    %194 = vector.shape_cast %193 : vector<1x32x16xf32> to vector<32x16xf32>
    %195 = arith.truncf %194 : vector<32x16xf32> to vector<32x16xbf16>
    %cst_175 = arith.constant dense<0.000000e+00> : vector<2x16xf32>
    %196 = tpu.matmul %192, %195, %cst_175 {dimension_numbers = #tpu.dot_dimension_numbers<[1], [0], [0], [1], [0, 0, 1, 1], [], []>} : vector<2x32xbf16>, vector<32x16xbf16>, vector<2x16xf32> -> vector<2x16xf32>
    %c19_176 = arith.constant 19 : index
    %c0_177 = arith.constant 0 : index
    %c0_178 = arith.constant 0 : index
    %197 = vector.load %arg2[%c19_176, %c0_177, %c0_178] : memref<32x2x16xf32, #tpu.memory_space<vmem>>, vector<1x2x16xf32>
    %198 = vector.shape_cast %197 : vector<1x2x16xf32> to vector<2x16xf32>
    %199 = vector.shape_cast %196 : vector<2x16xf32> to vector<1x2x16xf32>
    tpu.vector_store %arg2[%c19_176, %c0_177, %c0_178], %199 {strides = array<i32>} : memref<32x2x16xf32, #tpu.memory_space<vmem>>, vector<1x2x16xf32>,
    %c20 = arith.constant 20 : index
    %c0_179 = arith.constant 0 : index
    %c0_180 = arith.constant 0 : index
    %200 = vector.load %arg0[%c20, %c0_179, %c0_180] : memref<32x2x32xf32, #tpu.memory_space<vmem>>, vector<1x2x32xf32>
    %201 = vector.shape_cast %200 : vector<1x2x32xf32> to vector<2x32xf32>
    %202 = arith.truncf %201 : vector<2x32xf32> to vector<2x32xbf16>
    %c20_181 = arith.constant 20 : index
    %c0_182 = arith.constant 0 : index
    %c0_183 = arith.constant 0 : index
    %203 = vector.load %arg1[%c20_181, %c0_182, %c0_183] : memref<32x32x16xf32, #tpu.memory_space<vmem>>, vector<1x32x16xf32>
    %204 = vector.shape_cast %203 : vector<1x32x16xf32> to vector<32x16xf32>
    %205 = arith.truncf %204 : vector<32x16xf32> to vector<32x16xbf16>
    %cst_184 = arith.constant dense<0.000000e+00> : vector<2x16xf32>
    %206 = tpu.matmul %202, %205, %cst_184 {dimension_numbers = #tpu.dot_dimension_numbers<[1], [0], [0], [1], [0, 0, 1, 1], [], []>} : vector<2x32xbf16>, vector<32x16xbf16>, vector<2x16xf32> -> vector<2x16xf32>
    %c20_185 = arith.constant 20 : index
    %c0_186 = arith.constant 0 : index
    %c0_187 = arith.constant 0 : index
    %207 = vector.load %arg2[%c20_185, %c0_186, %c0_187] : memref<32x2x16xf32, #tpu.memory_space<vmem>>, vector<1x2x16xf32>
    %208 = vector.shape_cast %207 : vector<1x2x16xf32> to vector<2x16xf32>
    %209 = vector.shape_cast %206 : vector<2x16xf32> to vector<1x2x16xf32>
    tpu.vector_store %arg2[%c20_185, %c0_186, %c0_187], %209 {strides = array<i32>} : memref<32x2x16xf32, #tpu.memory_space<vmem>>, vector<1x2x16xf32>,
    %c21 = arith.constant 21 : index
    %c0_188 = arith.constant 0 : index
    %c0_189 = arith.constant 0 : index
    %210 = vector.load %arg0[%c21, %c0_188, %c0_189] : memref<32x2x32xf32, #tpu.memory_space<vmem>>, vector<1x2x32xf32>
    %211 = vector.shape_cast %210 : vector<1x2x32xf32> to vector<2x32xf32>
    %212 = arith.truncf %211 : vector<2x32xf32> to vector<2x32xbf16>
    %c21_190 = arith.constant 21 : index
    %c0_191 = arith.constant 0 : index
    %c0_192 = arith.constant 0 : index
    %213 = vector.load %arg1[%c21_190, %c0_191, %c0_192] : memref<32x32x16xf32, #tpu.memory_space<vmem>>, vector<1x32x16xf32>
    %214 = vector.shape_cast %213 : vector<1x32x16xf32> to vector<32x16xf32>
    %215 = arith.truncf %214 : vector<32x16xf32> to vector<32x16xbf16>
    %cst_193 = arith.constant dense<0.000000e+00> : vector<2x16xf32>
    %216 = tpu.matmul %212, %215, %cst_193 {dimension_numbers = #tpu.dot_dimension_numbers<[1], [0], [0], [1], [0, 0, 1, 1], [], []>} : vector<2x32xbf16>, vector<32x16xbf16>, vector<2x16xf32> -> vector<2x16xf32>
    %c21_194 = arith.constant 21 : index
    %c0_195 = arith.constant 0 : index
    %c0_196 = arith.constant 0 : index
    %217 = vector.load %arg2[%c21_194, %c0_195, %c0_196] : memref<32x2x16xf32, #tpu.memory_space<vmem>>, vector<1x2x16xf32>
    %218 = vector.shape_cast %217 : vector<1x2x16xf32> to vector<2x16xf32>
    %219 = vector.shape_cast %216 : vector<2x16xf32> to vector<1x2x16xf32>
    tpu.vector_store %arg2[%c21_194, %c0_195, %c0_196], %219 {strides = array<i32>} : memref<32x2x16xf32, #tpu.memory_space<vmem>>, vector<1x2x16xf32>,
    %c22 = arith.constant 22 : index
    %c0_197 = arith.constant 0 : index
    %c0_198 = arith.constant 0 : index
    %220 = vector.load %arg0[%c22, %c0_197, %c0_198] : memref<32x2x32xf32, #tpu.memory_space<vmem>>, vector<1x2x32xf32>
    %221 = vector.shape_cast %220 : vector<1x2x32xf32> to vector<2x32xf32>
    %222 = arith.truncf %221 : vector<2x32xf32> to vector<2x32xbf16>
    %c22_199 = arith.constant 22 : index
    %c0_200 = arith.constant 0 : index
    %c0_201 = arith.constant 0 : index
    %223 = vector.load %arg1[%c22_199, %c0_200, %c0_201] : memref<32x32x16xf32, #tpu.memory_space<vmem>>, vector<1x32x16xf32>
    %224 = vector.shape_cast %223 : vector<1x32x16xf32> to vector<32x16xf32>
    %225 = arith.truncf %224 : vector<32x16xf32> to vector<32x16xbf16>
    %cst_202 = arith.constant dense<0.000000e+00> : vector<2x16xf32>
    %226 = tpu.matmul %222, %225, %cst_202 {dimension_numbers = #tpu.dot_dimension_numbers<[1], [0], [0], [1], [0, 0, 1, 1], [], []>} : vector<2x32xbf16>, vector<32x16xbf16>, vector<2x16xf32> -> vector<2x16xf32>
    %c22_203 = arith.constant 22 : index
    %c0_204 = arith.constant 0 : index
    %c0_205 = arith.constant 0 : index
    %227 = vector.load %arg2[%c22_203, %c0_204, %c0_205] : memref<32x2x16xf32, #tpu.memory_space<vmem>>, vector<1x2x16xf32>
    %228 = vector.shape_cast %227 : vector<1x2x16xf32> to vector<2x16xf32>
    %229 = vector.shape_cast %226 : vector<2x16xf32> to vector<1x2x16xf32>
    tpu.vector_store %arg2[%c22_203, %c0_204, %c0_205], %229 {strides = array<i32>} : memref<32x2x16xf32, #tpu.memory_space<vmem>>, vector<1x2x16xf32>,
    %c23 = arith.constant 23 : index
    %c0_206 = arith.constant 0 : index
    %c0_207 = arith.constant 0 : index
    %230 = vector.load %arg0[%c23, %c0_206, %c0_207] : memref<32x2x32xf32, #tpu.memory_space<vmem>>, vector<1x2x32xf32>
    %231 = vector.shape_cast %230 : vector<1x2x32xf32> to vector<2x32xf32>
    %232 = arith.truncf %231 : vector<2x32xf32> to vector<2x32xbf16>
    %c23_208 = arith.constant 23 : index
    %c0_209 = arith.constant 0 : index
    %c0_210 = arith.constant 0 : index
    %233 = vector.load %arg1[%c23_208, %c0_209, %c0_210] : memref<32x32x16xf32, #tpu.memory_space<vmem>>, vector<1x32x16xf32>
    %234 = vector.shape_cast %233 : vector<1x32x16xf32> to vector<32x16xf32>
    %235 = arith.truncf %234 : vector<32x16xf32> to vector<32x16xbf16>
    %cst_211 = arith.constant dense<0.000000e+00> : vector<2x16xf32>
    %236 = tpu.matmul %232, %235, %cst_211 {dimension_numbers = #tpu.dot_dimension_numbers<[1], [0], [0], [1], [0, 0, 1, 1], [], []>} : vector<2x32xbf16>, vector<32x16xbf16>, vector<2x16xf32> -> vector<2x16xf32>
    %c23_212 = arith.constant 23 : index
    %c0_213 = arith.constant 0 : index
    %c0_214 = arith.constant 0 : index
    %237 = vector.load %arg2[%c23_212, %c0_213, %c0_214] : memref<32x2x16xf32, #tpu.memory_space<vmem>>, vector<1x2x16xf32>
    %238 = vector.shape_cast %237 : vector<1x2x16xf32> to vector<2x16xf32>
    %239 = vector.shape_cast %236 : vector<2x16xf32> to vector<1x2x16xf32>
    tpu.vector_store %arg2[%c23_212, %c0_213, %c0_214], %239 {strides = array<i32>} : memref<32x2x16xf32, #tpu.memory_space<vmem>>, vector<1x2x16xf32>,
    %c24 = arith.constant 24 : index
    %c0_215 = arith.constant 0 : index
    %c0_216 = arith.constant 0 : index
    %240 = vector.load %arg0[%c24, %c0_215, %c0_216] : memref<32x2x32xf32, #tpu.memory_space<vmem>>, vector<1x2x32xf32>
    %241 = vector.shape_cast %240 : vector<1x2x32xf32> to vector<2x32xf32>
    %242 = arith.truncf %241 : vector<2x32xf32> to vector<2x32xbf16>
    %c24_217 = arith.constant 24 : index
    %c0_218 = arith.constant 0 : index
    %c0_219 = arith.constant 0 : index
    %243 = vector.load %arg1[%c24_217, %c0_218, %c0_219] : memref<32x32x16xf32, #tpu.memory_space<vmem>>, vector<1x32x16xf32>
    %244 = vector.shape_cast %243 : vector<1x32x16xf32> to vector<32x16xf32>
    %245 = arith.truncf %244 : vector<32x16xf32> to vector<32x16xbf16>
    %cst_220 = arith.constant dense<0.000000e+00> : vector<2x16xf32>
    %246 = tpu.matmul %242, %245, %cst_220 {dimension_numbers = #tpu.dot_dimension_numbers<[1], [0], [0], [1], [0, 0, 1, 1], [], []>} : vector<2x32xbf16>, vector<32x16xbf16>, vector<2x16xf32> -> vector<2x16xf32>
    %c24_221 = arith.constant 24 : index
    %c0_222 = arith.constant 0 : index
    %c0_223 = arith.constant 0 : index
    %247 = vector.load %arg2[%c24_221, %c0_222, %c0_223] : memref<32x2x16xf32, #tpu.memory_space<vmem>>, vector<1x2x16xf32>
    %248 = vector.shape_cast %247 : vector<1x2x16xf32> to vector<2x16xf32>
    %249 = vector.shape_cast %246 : vector<2x16xf32> to vector<1x2x16xf32>
    tpu.vector_store %arg2[%c24_221, %c0_222, %c0_223], %249 {strides = array<i32>} : memref<32x2x16xf32, #tpu.memory_space<vmem>>, vector<1x2x16xf32>,
    %c25 = arith.constant 25 : index
    %c0_224 = arith.constant 0 : index
    %c0_225 = arith.constant 0 : index
    %250 = vector.load %arg0[%c25, %c0_224, %c0_225] : memref<32x2x32xf32, #tpu.memory_space<vmem>>, vector<1x2x32xf32>
    %251 = vector.shape_cast %250 : vector<1x2x32xf32> to vector<2x32xf32>
    %252 = arith.truncf %251 : vector<2x32xf32> to vector<2x32xbf16>
    %c25_226 = arith.constant 25 : index
    %c0_227 = arith.constant 0 : index
    %c0_228 = arith.constant 0 : index
    %253 = vector.load %arg1[%c25_226, %c0_227, %c0_228] : memref<32x32x16xf32, #tpu.memory_space<vmem>>, vector<1x32x16xf32>
    %254 = vector.shape_cast %253 : vector<1x32x16xf32> to vector<32x16xf32>
    %255 = arith.truncf %254 : vector<32x16xf32> to vector<32x16xbf16>
    %cst_229 = arith.constant dense<0.000000e+00> : vector<2x16xf32>
    %256 = tpu.matmul %252, %255, %cst_229 {dimension_numbers = #tpu.dot_dimension_numbers<[1], [0], [0], [1], [0, 0, 1, 1], [], []>} : vector<2x32xbf16>, vector<32x16xbf16>, vector<2x16xf32> -> vector<2x16xf32>
    %c25_230 = arith.constant 25 : index
    %c0_231 = arith.constant 0 : index
    %c0_232 = arith.constant 0 : index
    %257 = vector.load %arg2[%c25_230, %c0_231, %c0_232] : memref<32x2x16xf32, #tpu.memory_space<vmem>>, vector<1x2x16xf32>
    %258 = vector.shape_cast %257 : vector<1x2x16xf32> to vector<2x16xf32>
    %259 = vector.shape_cast %256 : vector<2x16xf32> to vector<1x2x16xf32>
    tpu.vector_store %arg2[%c25_230, %c0_231, %c0_232], %259 {strides = array<i32>} : memref<32x2x16xf32, #tpu.memory_space<vmem>>, vector<1x2x16xf32>,
    %c26 = arith.constant 26 : index
    %c0_233 = arith.constant 0 : index
    %c0_234 = arith.constant 0 : index
    %260 = vector.load %arg0[%c26, %c0_233, %c0_234] : memref<32x2x32xf32, #tpu.memory_space<vmem>>, vector<1x2x32xf32>
    %261 = vector.shape_cast %260 : vector<1x2x32xf32> to vector<2x32xf32>
    %262 = arith.truncf %261 : vector<2x32xf32> to vector<2x32xbf16>
    %c26_235 = arith.constant 26 : index
    %c0_236 = arith.constant 0 : index
    %c0_237 = arith.constant 0 : index
    %263 = vector.load %arg1[%c26_235, %c0_236, %c0_237] : memref<32x32x16xf32, #tpu.memory_space<vmem>>, vector<1x32x16xf32>
    %264 = vector.shape_cast %263 : vector<1x32x16xf32> to vector<32x16xf32>
    %265 = arith.truncf %264 : vector<32x16xf32> to vector<32x16xbf16>
    %cst_238 = arith.constant dense<0.000000e+00> : vector<2x16xf32>
    %266 = tpu.matmul %262, %265, %cst_238 {dimension_numbers = #tpu.dot_dimension_numbers<[1], [0], [0], [1], [0, 0, 1, 1], [], []>} : vector<2x32xbf16>, vector<32x16xbf16>, vector<2x16xf32> -> vector<2x16xf32>
    %c26_239 = arith.constant 26 : index
    %c0_240 = arith.constant 0 : index
    %c0_241 = arith.constant 0 : index
    %267 = vector.load %arg2[%c26_239, %c0_240, %c0_241] : memref<32x2x16xf32, #tpu.memory_space<vmem>>, vector<1x2x16xf32>
    %268 = vector.shape_cast %267 : vector<1x2x16xf32> to vector<2x16xf32>
    %269 = vector.shape_cast %266 : vector<2x16xf32> to vector<1x2x16xf32>
    tpu.vector_store %arg2[%c26_239, %c0_240, %c0_241], %269 {strides = array<i32>} : memref<32x2x16xf32, #tpu.memory_space<vmem>>, vector<1x2x16xf32>,
    %c27 = arith.constant 27 : index
    %c0_242 = arith.constant 0 : index
    %c0_243 = arith.constant 0 : index
    %270 = vector.load %arg0[%c27, %c0_242, %c0_243] : memref<32x2x32xf32, #tpu.memory_space<vmem>>, vector<1x2x32xf32>
    %271 = vector.shape_cast %270 : vector<1x2x32xf32> to vector<2x32xf32>
    %272 = arith.truncf %271 : vector<2x32xf32> to vector<2x32xbf16>
    %c27_244 = arith.constant 27 : index
    %c0_245 = arith.constant 0 : index
    %c0_246 = arith.constant 0 : index
    %273 = vector.load %arg1[%c27_244, %c0_245, %c0_246] : memref<32x32x16xf32, #tpu.memory_space<vmem>>, vector<1x32x16xf32>
    %274 = vector.shape_cast %273 : vector<1x32x16xf32> to vector<32x16xf32>
    %275 = arith.truncf %274 : vector<32x16xf32> to vector<32x16xbf16>
    %cst_247 = arith.constant dense<0.000000e+00> : vector<2x16xf32>
    %276 = tpu.matmul %272, %275, %cst_247 {dimension_numbers = #tpu.dot_dimension_numbers<[1], [0], [0], [1], [0, 0, 1, 1], [], []>} : vector<2x32xbf16>, vector<32x16xbf16>, vector<2x16xf32> -> vector<2x16xf32>
    %c27_248 = arith.constant 27 : index
    %c0_249 = arith.constant 0 : index
    %c0_250 = arith.constant 0 : index
    %277 = vector.load %arg2[%c27_248, %c0_249, %c0_250] : memref<32x2x16xf32, #tpu.memory_space<vmem>>, vector<1x2x16xf32>
    %278 = vector.shape_cast %277 : vector<1x2x16xf32> to vector<2x16xf32>
    %279 = vector.shape_cast %276 : vector<2x16xf32> to vector<1x2x16xf32>
    tpu.vector_store %arg2[%c27_248, %c0_249, %c0_250], %279 {strides = array<i32>} : memref<32x2x16xf32, #tpu.memory_space<vmem>>, vector<1x2x16xf32>,
    %c28 = arith.constant 28 : index
    %c0_251 = arith.constant 0 : index
    %c0_252 = arith.constant 0 : index
    %280 = vector.load %arg0[%c28, %c0_251, %c0_252] : memref<32x2x32xf32, #tpu.memory_space<vmem>>, vector<1x2x32xf32>
    %281 = vector.shape_cast %280 : vector<1x2x32xf32> to vector<2x32xf32>
    %282 = arith.truncf %281 : vector<2x32xf32> to vector<2x32xbf16>
    %c28_253 = arith.constant 28 : index
    %c0_254 = arith.constant 0 : index
    %c0_255 = arith.constant 0 : index
    %283 = vector.load %arg1[%c28_253, %c0_254, %c0_255] : memref<32x32x16xf32, #tpu.memory_space<vmem>>, vector<1x32x16xf32>
    %284 = vector.shape_cast %283 : vector<1x32x16xf32> to vector<32x16xf32>
    %285 = arith.truncf %284 : vector<32x16xf32> to vector<32x16xbf16>
    %cst_256 = arith.constant dense<0.000000e+00> : vector<2x16xf32>
    %286 = tpu.matmul %282, %285, %cst_256 {dimension_numbers = #tpu.dot_dimension_numbers<[1], [0], [0], [1], [0, 0, 1, 1], [], []>} : vector<2x32xbf16>, vector<32x16xbf16>, vector<2x16xf32> -> vector<2x16xf32>
    %c28_257 = arith.constant 28 : index
    %c0_258 = arith.constant 0 : index
    %c0_259 = arith.constant 0 : index
    %287 = vector.load %arg2[%c28_257, %c0_258, %c0_259] : memref<32x2x16xf32, #tpu.memory_space<vmem>>, vector<1x2x16xf32>
    %288 = vector.shape_cast %287 : vector<1x2x16xf32> to vector<2x16xf32>
    %289 = vector.shape_cast %286 : vector<2x16xf32> to vector<1x2x16xf32>
    tpu.vector_store %arg2[%c28_257, %c0_258, %c0_259], %289 {strides = array<i32>} : memref<32x2x16xf32, #tpu.memory_space<vmem>>, vector<1x2x16xf32>,
    %c29 = arith.constant 29 : index
    %c0_260 = arith.constant 0 : index
    %c0_261 = arith.constant 0 : index
    %290 = vector.load %arg0[%c29, %c0_260, %c0_261] : memref<32x2x32xf32, #tpu.memory_space<vmem>>, vector<1x2x32xf32>
    %291 = vector.shape_cast %290 : vector<1x2x32xf32> to vector<2x32xf32>
    %292 = arith.truncf %291 : vector<2x32xf32> to vector<2x32xbf16>
    %c29_262 = arith.constant 29 : index
    %c0_263 = arith.constant 0 : index
    %c0_264 = arith.constant 0 : index
    %293 = vector.load %arg1[%c29_262, %c0_263, %c0_264] : memref<32x32x16xf32, #tpu.memory_space<vmem>>, vector<1x32x16xf32>
    %294 = vector.shape_cast %293 : vector<1x32x16xf32> to vector<32x16xf32>
    %295 = arith.truncf %294 : vector<32x16xf32> to vector<32x16xbf16>
    %cst_265 = arith.constant dense<0.000000e+00> : vector<2x16xf32>
    %296 = tpu.matmul %292, %295, %cst_265 {dimension_numbers = #tpu.dot_dimension_numbers<[1], [0], [0], [1], [0, 0, 1, 1], [], []>} : vector<2x32xbf16>, vector<32x16xbf16>, vector<2x16xf32> -> vector<2x16xf32>
    %c29_266 = arith.constant 29 : index
    %c0_267 = arith.constant 0 : index
    %c0_268 = arith.constant 0 : index
    %297 = vector.load %arg2[%c29_266, %c0_267, %c0_268] : memref<32x2x16xf32, #tpu.memory_space<vmem>>, vector<1x2x16xf32>
    %298 = vector.shape_cast %297 : vector<1x2x16xf32> to vector<2x16xf32>
    %299 = vector.shape_cast %296 : vector<2x16xf32> to vector<1x2x16xf32>
    tpu.vector_store %arg2[%c29_266, %c0_267, %c0_268], %299 {strides = array<i32>} : memref<32x2x16xf32, #tpu.memory_space<vmem>>, vector<1x2x16xf32>,
    %c30 = arith.constant 30 : index
    %c0_269 = arith.constant 0 : index
    %c0_270 = arith.constant 0 : index
    %300 = vector.load %arg0[%c30, %c0_269, %c0_270] : memref<32x2x32xf32, #tpu.memory_space<vmem>>, vector<1x2x32xf32>
    %301 = vector.shape_cast %300 : vector<1x2x32xf32> to vector<2x32xf32>
    %302 = arith.truncf %301 : vector<2x32xf32> to vector<2x32xbf16>
    %c30_271 = arith.constant 30 : index
    %c0_272 = arith.constant 0 : index
    %c0_273 = arith.constant 0 : index
    %303 = vector.load %arg1[%c30_271, %c0_272, %c0_273] : memref<32x32x16xf32, #tpu.memory_space<vmem>>, vector<1x32x16xf32>
    %304 = vector.shape_cast %303 : vector<1x32x16xf32> to vector<32x16xf32>
    %305 = arith.truncf %304 : vector<32x16xf32> to vector<32x16xbf16>
    %cst_274 = arith.constant dense<0.000000e+00> : vector<2x16xf32>
    %306 = tpu.matmul %302, %305, %cst_274 {dimension_numbers = #tpu.dot_dimension_numbers<[1], [0], [0], [1], [0, 0, 1, 1], [], []>} : vector<2x32xbf16>, vector<32x16xbf16>, vector<2x16xf32> -> vector<2x16xf32>
    %c30_275 = arith.constant 30 : index
    %c0_276 = arith.constant 0 : index
    %c0_277 = arith.constant 0 : index
    %307 = vector.load %arg2[%c30_275, %c0_276, %c0_277] : memref<32x2x16xf32, #tpu.memory_space<vmem>>, vector<1x2x16xf32>
    %308 = vector.shape_cast %307 : vector<1x2x16xf32> to vector<2x16xf32>
    %309 = vector.shape_cast %306 : vector<2x16xf32> to vector<1x2x16xf32>
    tpu.vector_store %arg2[%c30_275, %c0_276, %c0_277], %309 {strides = array<i32>} : memref<32x2x16xf32, #tpu.memory_space<vmem>>, vector<1x2x16xf32>,
    %c31 = arith.constant 31 : index
    %c0_278 = arith.constant 0 : index
    %c0_279 = arith.constant 0 : index
    %310 = vector.load %arg0[%c31, %c0_278, %c0_279] : memref<32x2x32xf32, #tpu.memory_space<vmem>>, vector<1x2x32xf32>
    %311 = vector.shape_cast %310 : vector<1x2x32xf32> to vector<2x32xf32>
    %312 = arith.truncf %311 : vector<2x32xf32> to vector<2x32xbf16>
    %c31_280 = arith.constant 31 : index
    %c0_281 = arith.constant 0 : index
    %c0_282 = arith.constant 0 : index
    %313 = vector.load %arg1[%c31_280, %c0_281, %c0_282] : memref<32x32x16xf32, #tpu.memory_space<vmem>>, vector<1x32x16xf32>
    %314 = vector.shape_cast %313 : vector<1x32x16xf32> to vector<32x16xf32>
    %315 = arith.truncf %314 : vector<32x16xf32> to vector<32x16xbf16>
    %cst_283 = arith.constant dense<0.000000e+00> : vector<2x16xf32>
    %316 = tpu.matmul %312, %315, %cst_283 {dimension_numbers = #tpu.dot_dimension_numbers<[1], [0], [0], [1], [0, 0, 1, 1], [], []>} : vector<2x32xbf16>, vector<32x16xbf16>, vector<2x16xf32> -> vector<2x16xf32>
    %c31_284 = arith.constant 31 : index
    %c0_285 = arith.constant 0 : index
    %c0_286 = arith.constant 0 : index
    %317 = vector.load %arg2[%c31_284, %c0_285, %c0_286] : memref<32x2x16xf32, #tpu.memory_space<vmem>>, vector<1x2x16xf32>
    %318 = vector.shape_cast %317 : vector<1x2x16xf32> to vector<2x16xf32>
    %319 = vector.shape_cast %316 : vector<2x16xf32> to vector<1x2x16xf32>
    tpu.vector_store %arg2[%c31_284, %c0_285, %c0_286], %319 {strides = array<i32>} : memref<32x2x16xf32, #tpu.memory_space<vmem>>, vector<1x2x16xf32>,
    return
  }
}

module attributes {stable_mosaic.version = 11 : i64} {
  func.func @fno_block_kernel(%arg0: memref<16x512xf32, #tpu.memory_space<vmem>>, %arg1: memref<8x512xf32, #tpu.memory_space<vmem>>, %arg2: memref<8x16xf32, #tpu.memory_space<vmem>>, %arg3: memref<8x1xf32, #tpu.memory_space<vmem>>, %arg4: memref<8x512xf32, #tpu.memory_space<vmem>>) attributes {dimension_semantics = [], scalar_prefetch = 0 : i64, scratch_operands = 0 : i64, tpu.core_type = #tpu.core_type<tc>} {
    %c0 = arith.constant 0 : index
    %c0_0 = arith.constant 0 : index
    %0 = vector.load %arg2[%c0, %c0_0] : memref<8x16xf32, #tpu.memory_space<vmem>>, vector<8x16xf32>
    %1 = arith.truncf %0 : vector<8x16xf32> to vector<8x16xbf16>
    %c0_1 = arith.constant 0 : index
    %c0_2 = arith.constant 0 : index
    %2 = vector.load %arg0[%c0_1, %c0_2] : memref<16x512xf32, #tpu.memory_space<vmem>>, vector<16x512xf32>
    %3 = arith.truncf %2 : vector<16x512xf32> to vector<16x512xbf16>
    %cst = arith.constant dense<0.000000e+00> : vector<8x512xf32>
    %4 = tpu.matmul %1, %3, %cst {dimension_numbers = #tpu.dot_dimension_numbers<[1], [0], [0], [1], [0, 0, 1, 1], [], []>} : vector<8x16xbf16>, vector<16x512xbf16>, vector<8x512xf32> -> vector<8x512xf32>
    %c0_3 = arith.constant 0 : index
    %c0_4 = arith.constant 0 : index
    %5 = vector.load %arg1[%c0_3, %c0_4] : memref<8x512xf32, #tpu.memory_space<vmem>>, vector<8x512xf32>
    %6 = arith.addf %4, %5 : vector<8x512xf32>
    %c0_5 = arith.constant 0 : index
    %c0_6 = arith.constant 0 : index
    %7 = vector.load %arg3[%c0_5, %c0_6] : memref<8x1xf32, #tpu.memory_space<vmem>>, vector<8x1xf32>
    %8 = vector.broadcast %7 : vector<8x1xf32> to vector<8x512xf32>
    %9 = arith.addf %6, %8 : vector<8x512xf32>
    %c0_7 = arith.constant 0 : index
    %c0_8 = arith.constant 0 : index
    %10 = vector.load %arg4[%c0_7, %c0_8] : memref<8x512xf32, #tpu.memory_space<vmem>>, vector<8x512xf32>
    tpu.vector_store %arg4[%c0_7, %c0_8], %9 {strides = array<i32>} : memref<8x512xf32, #tpu.memory_space<vmem>>, vector<8x512xf32>,
    return
  }
}

module attributes {stable_mosaic.version = 11 : i64} {
  func.func @heads_kernel(%arg0: memref<8x512xf32, #tpu.memory_space<vmem>>, %arg1: memref<32x8xf32, #tpu.memory_space<vmem>>, %arg2: memref<32x1xf32, #tpu.memory_space<vmem>>, %arg3: memref<1x16xf32, #tpu.memory_space<vmem>>, %arg4: memref<1x1xf32, #tpu.memory_space<vmem>>, %arg5: memref<1x16xf32, #tpu.memory_space<vmem>>, %arg6: memref<1x1xf32, #tpu.memory_space<vmem>>, %arg7: memref<1x512xf32, #tpu.memory_space<vmem>>, %arg8: memref<1x512xf32, #tpu.memory_space<vmem>>) attributes {dimension_semantics = [], scalar_prefetch = 0 : i64, scratch_operands = 0 : i64, tpu.core_type = #tpu.core_type<tc>} {
    %c0 = arith.constant 0 : index
    %c0_0 = arith.constant 0 : index
    %0 = vector.load %arg1[%c0, %c0_0] : memref<32x8xf32, #tpu.memory_space<vmem>>, vector<32x8xf32>
    %1 = arith.truncf %0 : vector<32x8xf32> to vector<32x8xbf16>
    %c0_1 = arith.constant 0 : index
    %c0_2 = arith.constant 0 : index
    %2 = vector.load %arg0[%c0_1, %c0_2] : memref<8x512xf32, #tpu.memory_space<vmem>>, vector<8x512xf32>
    %3 = arith.truncf %2 : vector<8x512xf32> to vector<8x512xbf16>
    %cst = arith.constant dense<0.000000e+00> : vector<32x512xf32>
    %4 = tpu.matmul %1, %3, %cst {dimension_numbers = #tpu.dot_dimension_numbers<[1], [0], [0], [1], [0, 0, 1, 1], [], []>} : vector<32x8xbf16>, vector<8x512xbf16>, vector<32x512xf32> -> vector<32x512xf32>
    %c0_3 = arith.constant 0 : index
    %c0_4 = arith.constant 0 : index
    %5 = vector.load %arg2[%c0_3, %c0_4] : memref<32x1xf32, #tpu.memory_space<vmem>>, vector<32x1xf32>
    %6 = vector.broadcast %5 : vector<32x1xf32> to vector<32x512xf32>
    %7 = arith.addf %4, %6 : vector<32x512xf32>
    %8 = arith.mulf %7, %7 : vector<32x512xf32>
    %9 = arith.mulf %7, %8 : vector<32x512xf32>
    %cst_5 = arith.constant 4.471500e-02 : f32
    %10 = vector.broadcast %cst_5 : f32 to vector<32x512xf32>
    %11 = arith.mulf %10, %9 : vector<32x512xf32>
    %12 = arith.addf %7, %11 : vector<32x512xf32>
    %cst_6 = arith.constant 0.797884583 : f32
    %13 = vector.broadcast %cst_6 : f32 to vector<32x512xf32>
    %14 = arith.mulf %13, %12 : vector<32x512xf32>
    %15 = math.tanh %14 : vector<32x512xf32>
    %cst_7 = arith.constant 1.000000e+00 : f32
    %16 = vector.broadcast %cst_7 : f32 to vector<32x512xf32>
    %17 = arith.addf %16, %15 : vector<32x512xf32>
    %cst_8 = arith.constant 5.000000e-01 : f32
    %18 = vector.broadcast %cst_8 : f32 to vector<32x512xf32>
    %19 = arith.mulf %18, %17 : vector<32x512xf32>
    %20 = arith.mulf %7, %19 : vector<32x512xf32>
    %21 = vector.extract_strided_slice %20 {offsets = [0, 0], sizes = [16, 512], strides = [1, 1]} : vector<32x512xf32> to vector<16x512xf32>
    %22 = vector.extract_strided_slice %20 {offsets = [16, 0], sizes = [16, 512], strides = [1, 1]} : vector<32x512xf32> to vector<16x512xf32>
    %c0_9 = arith.constant 0 : index
    %c0_10 = arith.constant 0 : index
    %23 = vector.load %arg3[%c0_9, %c0_10] : memref<1x16xf32, #tpu.memory_space<vmem>>, vector<1x16xf32>
    %24 = arith.truncf %23 : vector<1x16xf32> to vector<1x16xbf16>
    %25 = arith.truncf %21 : vector<16x512xf32> to vector<16x512xbf16>
    %cst_11 = arith.constant dense<0.000000e+00> : vector<1x512xf32>
    %26 = tpu.matmul %24, %25, %cst_11 {dimension_numbers = #tpu.dot_dimension_numbers<[1], [0], [0], [1], [0, 0, 1, 1], [], []>} : vector<1x16xbf16>, vector<16x512xbf16>, vector<1x512xf32> -> vector<1x512xf32>
    %c0_12 = arith.constant 0 : index
    %c0_13 = arith.constant 0 : index
    %27 = vector.load %arg4[%c0_12, %c0_13] : memref<1x1xf32, #tpu.memory_space<vmem>>, vector<1x1xf32>
    %28 = vector.broadcast %27 : vector<1x1xf32> to vector<1x512xf32>
    %29 = arith.addf %26, %28 : vector<1x512xf32>
    %c0_14 = arith.constant 0 : index
    %c0_15 = arith.constant 0 : index
    %30 = vector.load %arg5[%c0_14, %c0_15] : memref<1x16xf32, #tpu.memory_space<vmem>>, vector<1x16xf32>
    %31 = arith.truncf %30 : vector<1x16xf32> to vector<1x16xbf16>
    %32 = arith.truncf %22 : vector<16x512xf32> to vector<16x512xbf16>
    %cst_16 = arith.constant dense<0.000000e+00> : vector<1x512xf32>
    %33 = tpu.matmul %31, %32, %cst_16 {dimension_numbers = #tpu.dot_dimension_numbers<[1], [0], [0], [1], [0, 0, 1, 1], [], []>} : vector<1x16xbf16>, vector<16x512xbf16>, vector<1x512xf32> -> vector<1x512xf32>
    %c0_17 = arith.constant 0 : index
    %c0_18 = arith.constant 0 : index
    %34 = vector.load %arg6[%c0_17, %c0_18] : memref<1x1xf32, #tpu.memory_space<vmem>>, vector<1x1xf32>
    %35 = vector.broadcast %34 : vector<1x1xf32> to vector<1x512xf32>
    %36 = arith.addf %33, %35 : vector<1x512xf32>
    %c0_19 = arith.constant 0 : index
    %c0_20 = arith.constant 0 : index
    %37 = vector.load %arg7[%c0_19, %c0_20] : memref<1x512xf32, #tpu.memory_space<vmem>>, vector<1x512xf32>
    tpu.vector_store %arg7[%c0_19, %c0_20], %29 {strides = array<i32>} : memref<1x512xf32, #tpu.memory_space<vmem>>, vector<1x512xf32>,
    %cst_21 = arith.constant 0.000000e+00 : f32
    %38 = vector.broadcast %cst_21 : f32 to vector<1x512xf32>
    %39 = arith.maximumf %36, %38 : vector<1x512xf32>
    %40 = math.absf %36 : vector<1x512xf32>
    %cst_22 = arith.constant 0.000000e+00 : f32
    %41 = vector.broadcast %cst_22 : f32 to vector<1x512xf32>
    %42 = arith.subf %41, %40 : vector<1x512xf32>
    %43 = math.exp %42 : vector<1x512xf32>
    %cst_23 = arith.constant 1.000000e+00 : f32
    %44 = vector.broadcast %cst_23 : f32 to vector<1x512xf32>
    %45 = arith.addf %44, %43 : vector<1x512xf32>
    %46 = math.log %45 : vector<1x512xf32>
    %47 = arith.addf %39, %46 : vector<1x512xf32>
    %cst_24 = arith.constant 9.99999997E-7 : f32
    %48 = vector.broadcast %cst_24 : f32 to vector<1x512xf32>
    %49 = arith.addf %47, %48 : vector<1x512xf32>
    %c0_25 = arith.constant 0 : index
    %c0_26 = arith.constant 0 : index
    %50 = vector.load %arg8[%c0_25, %c0_26] : memref<1x512xf32, #tpu.memory_space<vmem>>, vector<1x512xf32>
    tpu.vector_store %arg8[%c0_25, %c0_26], %49 {strides = array<i32>} : memref<1x512xf32, #tpu.memory_space<vmem>>, vector<1x512xf32>,
    return
  }
}

</mosaic_0001>

<bundles_post_ra>
// kernel: puno_forward.10
= control target key start
LH: loop header
LB: loop body
LE: loop exit
PB: predicated region body
PF: predicated region fallthrough
CT: control target
= control target key end

     0   :  { %vm59_vm0 = vcmask 1040384   ;;  %v307_v3 = vmov 0   ;;  %vm60_vm1 = vcmask 1041408   ;;  %v308_v4 = vmov 65535   ;;  %s424_s0 = inlined_call_operand.vmem [shape: f32[3,512], index: 0, kind: input, shape index: {}]   ;;  %s425_s2 = inlined_call_operand.vmem [shape: f32[16,1], index: 2, kind: input, shape index: {}]   ;;  %s426_s1 = inlined_call_operand.vmem [shape: f32[16,3], index: 1, kind: input, shape index: {}]   ;;  %s427_s4 = inlined_call_operand.vmem [shape: f32[8,1], index: 4, kind: input, shape index: {}]   ;;  %s428_s3 = inlined_call_operand.vmem [shape: f32[8,16], index: 3, kind: input, shape index: {}]   ;;  %s429_s5 = inlined_call_operand.vmem [shape: f32[8,512], index: 5, kind: output, shape index: {}]  }
   0x1   :  { %v24_v0 = vld [vmem:[%s424_s0] sm:$0x77]  ;;  %v25_v1 = vld [vmem:[%s424_s0 + $0x8] sm:$0x77]  ;;  %289 = vset.pattern.permute.xlu0 %v307_v3  ;;  %290 = vset.pattern.permute.xlu1 %v307_v3  ;;  %v61_v5 = vsel %vm59_vm0, 4294967295, %v308_v4  ;;  %vm55_vm2 = vcmask 23552  }
   0x2   :  { %28 = vst [vmem:[#allocation1] ss:$2 sm:$0xff] %v24_v0  ;;  %v43_v2 = vld [vmem:[%s425_s2] sm:$0xff]  ;;  %v62_v6 = vsel %vm60_vm1, %v61_v5, 0  ;;  %v22_v8 = vld [vmem:[%s426_s1 + $0x8] sm:$0xff]  ;;  %vm215_vm3 = vcmask 130048  }
   0x3   :  { %30 = vst [vmem:[#allocation1 + $0x10] ss:$2 sm:$0xff] %v25_v1  ;;  %47 = vperm.xlu0 %289, %v43_v2   ;;  %v21_v7 = vld [vmem:[%s426_s1] sm:$0xff]  ;;  %v44_v9 = vld [vmem:[%s425_s2 + $0x8] sm:$0xff] }
   0x4   :  { %v23_v22 = vpack.c.bf16 %v22_v8, %v21_v7  ;;  %v209_v61 = vld [vmem:[%s427_s4] sm:$0xff] }
   0x5   :  { %212 = vperm.xlu1 %290, %v209_v61  }
   0x9   :  { %v31_v10 = vld.sshfl [vmem:[#allocation1] sm:$0xff pattern:$0x75316420]  ;;  %v32_v11 = vld.sshfl [vmem:[#allocation1 + $0x8] sm:$0xff pattern:$0x75316420] }
   0xa   :  { %v39_v12 = vpack.c.bf16 %v31_v10, %v31_v10  ;;  %v40_v13 = vpack.c.bf16 %v32_v11, %v32_v11  ;;  %v33_v14 = vld.sshfl [vmem:[#allocation1 + $0x10] sm:$0xff pattern:$0x75316420]  ;;  %v34_v15 = vld.sshfl [vmem:[#allocation1 + $0x18] sm:$0xff pattern:$0x75316420] }
   0xb   :  { %v41_v16 = vpack.c.bf16 %v33_v14, %v33_v14  ;;  %v42_v17 = vpack.c.bf16 %v34_v15, %v34_v15  ;;  %52 = vperm.xlu0 %289, %v44_v9  }
   0xc   :  { %v64_v18 = vand.u32 %v62_v6, %v39_v12  ;;  %v67_v19 = vand.u32 %v62_v6, %v40_v13 }
   0xd   :  { %v70_v20 = vand.u32 %v62_v6, %v41_v16  ;;  %v73_v21 = vand.u32 %v62_v6, %v42_v17 }
   0xe   :  { %82 = vmatpush.bf16.msra.mxu0 %v64_v18  ;;  %96 = vmatpush.bf16.msra.mxu1 %v67_v19 }
   0xf   :  { %110 = vmatpush.bf16.msra.mxu2 %v70_v20  ;;  %124 = vmatpush.bf16.msra.mxu3 %v73_v21 }
  0x11   :  { %279 = vmatmul.msk.bf16.vlgmr.msra.gmra.mxu0 %vm55_vm2, %v23_v22  ;;  %280 = vmatmul.msk.bf16.vlgmr.msra.gmra.mxu1 %vm55_vm2, %v23_v22 }
  0x12   :  { %281 = vmatmul.msk.bf16.vlgmr.msra.gmra.mxu2 %vm55_vm2, %v23_v22  ;;  %282 = vmatmul.msk.bf16.vlgmr.msra.gmra.mxu3 %vm55_vm2, %v23_v22 }
  0x75   :  { %v48_v23 = vpop.permute.xlu0 %47 }
  0x7d   :  { %v53_v32 = vpop.permute.xlu0 %52 }
  0x8e   :  { %v84_v24 = vpop.f32.mrf.mxu0  ;;  %v98_v25 = vpop.f32.mrf.mxu1 }
  0x8f   :  { %v357_v26 = vadd.f32 %v84_v24, %v48_v23  ;;  %v359_v27 = vadd.f32 %v98_v25, %v48_v23 }
  0x91   :  { %v131_v28 = vmul.f32 %v357_v26, %v357_v26  ;;  %v132_v29 = vmul.f32 %v359_v27, %v359_v27 }
  0x93   :  { %v139_v30 = vmul.f32 %v131_v28, %v357_v26  ;;  %v140_v31 = vmul.f32 %v132_v29, %v359_v27 }
  0x95   :  { %v147_v33 = vmul.f32 0.044715, %v139_v30  ;;  %v148_v34 = vmul.f32 0.044715, %v140_v31  ;;  %v112_v35 = vpop.f32.mrf.mxu2  ;;  %v126_v36 = vpop.f32.mrf.mxu3 }
  0x96   :  { %v367_v37 = vadd.f32 %v112_v35, %v48_v23  ;;  %v369_v38 = vadd.f32 %v126_v36, %v48_v23  ;;  %v86_v39 = vpop.f32.mrf.mxu0  ;;  %v100_v40 = vpop.f32.mrf.mxu1 }
  0x97   :  { %v155_v41 = vadd.f32 %v147_v33, %v357_v26  ;;  %v156_v42 = vadd.f32 %v148_v34, %v359_v27  ;;  %v373_v43 = vadd.f32 %v86_v39, %v53_v32  ;;  %v375_v44 = vadd.f32 %v100_v40, %v53_v32  ;;  %v203_v40 = vld [vmem:[%s428_s3] sm:$0xff] }
  0x98   :  { %v133_v45 = vmul.f32 %v367_v37, %v367_v37  ;;  %v134_v46 = vmul.f32 %v369_v38, %v369_v38 }
  0x99   :  { %v135_v47 = vmul.f32 %v373_v43, %v373_v43  ;;  %v136_v48 = vmul.f32 %v375_v44, %v375_v44  ;;  %v163_v49 = vmul.f32 0.7978846, %v155_v41  ;;  %v164_v50 = vmul.f32 0.7978846, %v156_v42 }
  0x9a   :  { %v141_v51 = vmul.f32 %v133_v45, %v367_v37  ;;  %v142_v52 = vmul.f32 %v134_v46, %v369_v38 }
  0x9b   :  { %v143_v53 = vmul.f32 %v135_v47, %v373_v43  ;;  %v144_v54 = vmul.f32 %v136_v48, %v375_v44  ;;  %291 = vtanh.f32 %v163_v49 }
  0x9c   :  { %v149_v55 = vmul.f32 0.044715, %v141_v51  ;;  %v150_v56 = vmul.f32 0.044715, %v142_v52  ;;  %293 = vtanh.f32 %v164_v50  ;;  %v204_v51 = vpack.c.bf16 %v203_v40, %v203_v40 }
  0x9d   :  { %v151_v57 = vmul.f32 0.044715, %v143_v53  ;;  %v152_v58 = vmul.f32 0.044715, %v144_v54  ;;  %v114_v59 = vpop.f32.mrf.mxu2  ;;  %v128_v60 = vpop.f32.mrf.mxu3 }
  0x9e   :  { %v157_v62 = vadd.f32 %v149_v55, %v367_v37  ;;  %v158_v63 = vadd.f32 %v150_v56, %v369_v38  ;;  %v115_v0 = vadd.f32 %v114_v59, %v53_v32  ;;  %v394_v1 = vadd.f32 %v128_v60, %v53_v32 }
  0x9f   :  { %v159_v2 = vadd.f32 %v151_v57, %v373_v43  ;;  %v160_v3 = vadd.f32 %v152_v58, %v375_v44  ;;  %v213_v58 = vpop.permute.xlu1 %212 }
  0xa0   :  { %v137_v4 = vmul.f32 %v115_v0, %v115_v0  ;;  %v138_v5 = vmul.f32 %v394_v1, %v394_v1  ;;  %v165_v6 = vmul.f32 0.7978846, %v157_v62  ;;  %v166_v9 = vmul.f32 0.7978846, %v158_v63 }
  0xa1   :  { %v167_v7 = vmul.f32 0.7978846, %v159_v2  ;;  %v168_v8 = vmul.f32 0.7978846, %v160_v3  ;;  %v292_v10 = vpop.eup %291 }
  0xa2   :  { %v145_v11 = vmul.f32 %v137_v4, %v115_v0  ;;  %v146_v12 = vmul.f32 %v138_v5, %v394_v1  ;;  %295 = vtanh.f32 %v165_v6  ;;  %v294_v13 = vpop.eup %293  ;;  %v179_v18 = vadd.f32 1.0, %v292_v10 }
  0xa3   :  { %297 = vtanh.f32 %v167_v7  ;;  %v180_v19 = vadd.f32 1.0, %v294_v13 }
  0xa4   :  { %v153_v14 = vmul.f32 0.044715, %v145_v11  ;;  %v154_v15 = vmul.f32 0.044715, %v146_v12  ;;  %299 = vtanh.f32 %v168_v8  ;;  %v187_v28 = vmul.f32 0.5, %v179_v18 }
  0xa5   :  { %301 = vtanh.f32 %v166_v9  ;;  %v188_v31 = vmul.f32 0.5, %v180_v19 }
  0xa6   :  { %v161_v16 = vadd.f32 %v153_v14, %v115_v0  ;;  %v162_v17 = vadd.f32 %v154_v15, %v394_v1  ;;  %v195_v35 = vmul.f32 %v187_v28, %v357_v26 }
  0xa7   :  { %v196_v41 = vmul.f32 %v188_v31, %v359_v27 }
  0xa8   :  { %v296_v20 = vpop.eup %295  ;;  %v169_v21 = vmul.f32 0.7978846, %v161_v16  ;;  %v170_v22 = vmul.f32 0.7978846, %v162_v17 }
  0xa9   :  { %v298_v23 = vpop.eup %297  ;;  %v181_v34 = vadd.f32 1.0, %v296_v20 }
  0xaa   :  { %v300_v24 = vpop.eup %299  ;;  %v183_v25 = vadd.f32 1.0, %v298_v23  ;;  %303 = vtanh.f32 %v169_v21 }
  0xab   :  { %v302_v29 = vpop.eup %301  ;;  %v184_v30 = vadd.f32 1.0, %v300_v24  ;;  %305 = vtanh.f32 %v170_v22  ;;  %v189_v50 = vmul.f32 0.5, %v181_v34 }
  0xac   :  { %v191_v32 = vmul.f32 0.5, %v183_v25  ;;  %v182_v39 = vadd.f32 1.0, %v302_v29 }
  0xad   :  { %v192_v33 = vmul.f32 0.5, %v184_v30  ;;  %v197_v54 = vmul.f32 %v189_v50, %v367_v37 }
  0xae   :  { %v199_v36 = vmul.f32 %v191_v32, %v373_v43  ;;  %v190_v52 = vmul.f32 0.5, %v182_v39 }
  0xaf   :  { %v200_v42 = vmul.f32 %v192_v33, %v375_v44 }
  0xb0   :  { %v304_v45 = vpop.eup %303  ;;  %v205_v46 = vpack.c.bf16 %v199_v36, %v195_v35  ;;  %v198_v27 = vmul.f32 %v190_v52, %v369_v38 }
  0xb1   :  { %v306_v47 = vpop.eup %305  ;;  %v206_v48 = vpack.c.bf16 %v200_v42, %v196_v41  ;;  %v185_v49 = vadd.f32 1.0, %v304_v45 }
  0xb2   :  { %226 = vmatpush.bf16.msrb.mxu0 %v205_v46  ;;  %v186_v26 = vadd.f32 1.0, %v306_v47 }
  0xb3   :  { %239 = vmatpush.bf16.msrb.mxu1 %v206_v48  ;;  %v193_v43 = vmul.f32 0.5, %v185_v49 }
  0xb4   :  { %v194_v53 = vmul.f32 0.5, %v186_v26 }
  0xb5   :  { %v201_v55 = vmul.f32 %v193_v43, %v115_v0  ;;  %283 = vmatmul.msk.bf16.vlgmr.msrb.gmra.mxu0 %vm215_vm3, %v204_v51 }
  0xb6   :  { %v202_v44 = vmul.f32 %v194_v53, %v394_v1  ;;  %284 = vmatmul.msk.bf16.vlgmr.msrb.gmra.mxu1 %vm215_vm3, %v204_v51 }
  0xb7   :  { %v207_v56 = vpack.c.bf16 %v201_v55, %v197_v54 }
  0xb8   :  { %v208_v57 = vpack.c.bf16 %v202_v44, %v198_v27 }
  0xb9   :  { %252 = vmatpush.bf16.msrb.mxu2 %v207_v56 }
  0xba   :  { %265 = vmatpush.bf16.msrb.mxu3 %v208_v57 }
  0xbc   :  { %285 = vmatmul.msk.bf16.vlgmr.msrb.gmra.mxu2 %vm215_vm3, %v204_v51 }
  0xbd   :  { %286 = vmatmul.msk.bf16.vlgmr.msrb.gmra.mxu3 %vm215_vm3, %v204_v51 }
 0x132   :  { %v228_v59 = vpop.f32.mrf.mxu0 }
 0x133   :  { %v241_v60 = vpop.f32.mrf.mxu1  ;;  %v229_v61 = vadd.f32 %v228_v59, %v213_v58 }
 0x134   :  { %v242_v62 = vadd.f32 %v241_v60, %v213_v58 }
 0x135   :  { %271 = vst [vmem:[%s429_s5] sm:$0xff] %v229_v61 }
 0x136   :  { %272 = vst [vmem:[%s429_s5 + $0x8] sm:$0xff] %v242_v62 }
 0x13a   :  { %v230_v37 = vpop.f32.mrf.mxu0 }
 0x13b   :  { %v243_v38 = vpop.f32.mrf.mxu1 }
 0x13f   :  { %v254_v63 = vpop.f32.mrf.mxu2 }
 0x140   :  { %v267_v0 = vpop.f32.mrf.mxu3  ;;  %v255_v1 = vadd.f32 %v254_v63, %v213_v58 }
 0x141   :  { %v268_v2 = vadd.f32 %v267_v0, %v213_v58 }
 0x142   :  { %273 = vst [vmem:[%s429_s5 + $0x10] sm:$0xff] %v255_v1 }
 0x143   :  { %274 = vst [vmem:[%s429_s5 + $0x18] sm:$0xff] %v268_v2 }
 0x147   :  { %v256_v3 = vpop.f32.mrf.mxu2 }
 0x148   :  { %v269_v4 = vpop.f32.mrf.mxu3 }

// kernel: reverse.9
= control target key start
LH: loop header
LB: loop body
LE: loop exit
PB: predicated region body
PF: predicated region fallthrough
CT: control target
= control target key end

     0   :  { %v104_v10 = vlaneseq  ;;  %v97_v14 = vld [vmem:[#allocation0 + $0x7] ss:$-1 sm:$0xff]  ;;  %v111_v19 = vld [vmem:[#allocation0 + $0x17] ss:$-1 sm:$0xff]  ;;  %s606_s0 = inlined_call_operand.vmem [shape: f32[8,2,16,7], index: 0, kind: input, shape index: {}]   ;;  %s607_s1 = inlined_call_operand.vmem [shape: f32[8,2,16,7], index: 1, kind: output, shape index: {}]  }
   0x1   :  { %v61_v0 = vld [vmem:[%s606_s0] sm:$0xff]  ;;  %v63_v1 = vld [vmem:[%s606_s0 + $0x8] sm:$0xff]  ;;  %v65_v2 = vld [vmem:[%s606_s0 + $0x10] sm:$0xff]  ;;  %v98_v21 = vrot.slane %v97_v14, 1  ;;  %v112_v25 = vrot.slane %v111_v19, 1 }
   0x2   :  { %62 = vst [vmem:[#allocation0 + $0x8] sm:$0xff] %v61_v0  ;;  %v67_v3 = vld [vmem:[%s606_s0 + $0x18] sm:$0xff]  ;;  %v69_v4 = vld [vmem:[%s606_s0 + $0x20] sm:$0xff]  ;;  %v71_v5 = vld [vmem:[%s606_s0 + $0x28] sm:$0xff]  ;;  %v517_v17 = vshrl.u32 %v104_v10, 7 }
   0x3   :  { %64 = vst [vmem:[#allocation0 + $0x18] sm:$0xff] %v63_v1  ;;  %v73_v6 = vld [vmem:[%s606_s0 + $0x30] sm:$0xff]  ;;  %v75_v7 = vld [vmem:[%s606_s0 + $0x38] sm:$0xff]  ;;  %v77_v8 = vld [vmem:[%s606_s0 + $0x40] sm:$0xff] }
   0x4   :  { %66 = vst [vmem:[#allocation0 + $0x28] sm:$0xff] %v65_v2  ;;  %v79_v9 = vld [vmem:[%s606_s0 + $0x48] sm:$0xff]  ;;  %v81_v11 = vld [vmem:[%s606_s0 + $0x50] sm:$0xff]  ;;  %v83_v12 = vld [vmem:[%s606_s0 + $0x58] sm:$0xff]  ;;  %vm106_vm0 = vcmp.lt.s32.totalorder %v517_v17, 7 }
   0x5   :  { %68 = vst [vmem:[#allocation0 + $0x38] sm:$0xff] %v67_v3  ;;  %v85_v13 = vld [vmem:[%s606_s0 + $0x60] sm:$0xff]  ;;  %v87_v15 = vld [vmem:[%s606_s0 + $0x68] sm:$0xff]  ;;  %v89_v18 = vld [vmem:[%s606_s0 + $0x70] sm:$0xff] }
   0x6   :  { %70 = vst [vmem:[#allocation0 + $0x48] sm:$0xff] %v69_v4  ;;  %v91_v20 = vld [vmem:[%s606_s0 + $0x78] sm:$0xff]  ;;  %v125_v24 = vld [vmem:[#allocation0 + $0x27] ss:$-1 sm:$0xff]  ;;  %v139_v28 = vld [vmem:[#allocation0 + $0x37] ss:$-1 sm:$0xff] }
   0x7   :  { %72 = vst [vmem:[#allocation0 + $0x58] sm:$0xff] %v71_v5  ;;  %v126_v29 = vrot.slane %v125_v24, 1  ;;  %v153_v32 = vld [vmem:[#allocation0 + $0x47] ss:$-1 sm:$0xff]  ;;  %v140_v33 = vrot.slane %v139_v28, 1 }
   0x8   :  { %74 = vst [vmem:[#allocation0 + $0x68] sm:$0xff] %v73_v6  ;;  %v167_v36 = vld [vmem:[#allocation0 + $0x57] ss:$-1 sm:$0xff]  ;;  %v154_v37 = vrot.slane %v153_v32, 1  ;;  %v181_v40 = vld [vmem:[#allocation0 + $0x67] ss:$-1 sm:$0xff] }
   0x9   :  { %76 = vst [vmem:[#allocation0 + $0x78] sm:$0xff] %v75_v7  ;;  %v102_v16 = vld [vmem:[#allocation0 + $0xf] ss:$-1 sm:$0xff]  ;;  %v168_v41 = vrot.slane %v167_v36, 1  ;;  %v195_v44 = vld [vmem:[#allocation0 + $0x77] ss:$-1 sm:$0xff] }
   0xa   :  { %78 = vst [vmem:[#allocation0 + $0x88] sm:$0xff] %v77_v8  ;;  %v116_v22 = vld [vmem:[#allocation0 + $0x1f] ss:$-1 sm:$0xff]  ;;  %v103_v23 = vrot.slane %v102_v16, 1  ;;  %v182_v45 = vrot.slane %v181_v40, 1  ;;  %v196_v49 = vrot.slane %v195_v44, 1 }
   0xb   :  { %80 = vst [vmem:[#allocation0 + $0x98] sm:$0xff] %v79_v9  ;;  %v130_v26 = vld [vmem:[#allocation0 + $0x2f] ss:$-1 sm:$0xff]  ;;  %v117_v27 = vrot.slane %v116_v22, 1  ;;  %v209_v48 = vld [vmem:[#allocation0 + $0x87] ss:$-1 sm:$0xff] }
   0xc   :  { %82 = vst [vmem:[#allocation0 + $0xa8] sm:$0xff] %v81_v11  ;;  %v144_v30 = vld [vmem:[#allocation0 + $0x3f] ss:$-1 sm:$0xff]  ;;  %v131_v31 = vrot.slane %v130_v26, 1  ;;  %v223_v52 = vld [vmem:[#allocation0 + $0x97] ss:$-1 sm:$0xff] }
   0xd   :  { %84 = vst [vmem:[#allocation0 + $0xb8] sm:$0xff] %v83_v12  ;;  %v158_v34 = vld [vmem:[#allocation0 + $0x4f] ss:$-1 sm:$0xff]  ;;  %v145_v35 = vrot.slane %v144_v30, 1  ;;  %v210_v53 = vrot.slane %v209_v48, 1  ;;  %v224_v57 = vrot.slane %v223_v52, 1 }
   0xe   :  { %86 = vst [vmem:[#allocation0 + $0xc8] sm:$0xff] %v85_v13  ;;  %v172_v38 = vld [vmem:[#allocation0 + $0x5f] ss:$-1 sm:$0xff]  ;;  %v159_v39 = vrot.slane %v158_v34, 1  ;;  %v237_v56 = vld [vmem:[#allocation0 + $0xa7] ss:$-1 sm:$0xff] }
   0xf   :  { %88 = vst [vmem:[#allocation0 + $0xd8] sm:$0xff] %v87_v15  ;;  %v186_v42 = vld [vmem:[#allocation0 + $0x6f] ss:$-1 sm:$0xff]  ;;  %v173_v43 = vrot.slane %v172_v38, 1  ;;  %v251_v60 = vld [vmem:[#allocation0 + $0xb7] ss:$-1 sm:$0xff] }
  0x10   :  { %90 = vst [vmem:[#allocation0 + $0xe8] sm:$0xff] %v89_v18  ;;  %v200_v46 = vld [vmem:[#allocation0 + $0x7f] ss:$-1 sm:$0xff]  ;;  %v187_v47 = vrot.slane %v186_v42, 1  ;;  %v238_v61 = vrot.slane %v237_v56, 1  ;;  %v252_v1 = vrot.slane %v251_v60, 1 }
  0x11   :  { %92 = vst [vmem:[#allocation0 + $0xf8] sm:$0xff] %v91_v20  ;;  %v214_v50 = vld [vmem:[#allocation0 + $0x8f] ss:$-1 sm:$0xff]  ;;  %v201_v51 = vrot.slane %v200_v46, 1  ;;  %v265_v0 = vld [vmem:[#allocation0 + $0xc7] ss:$-1 sm:$0xff] }
  0x12   :  { %99 = vst [vmem:[#allocation1] sm:$0xff] %v98_v21  ;;  %v228_v54 = vld [vmem:[#allocation0 + $0x9f] ss:$-1 sm:$0xff]  ;;  %v215_v55 = vrot.slane %v214_v50, 1  ;;  %v279_v4 = vld [vmem:[#allocation0 + $0xd7] ss:$-1 sm:$0xff] }
  0x13   :  { %107 = vst.msk [vmem:[#allocation1] sm:$0xff] %vm106_vm0, %v103_v23  ;;  %v242_v58 = vld [vmem:[#allocation0 + $0xaf] ss:$-1 sm:$0xff]  ;;  %v229_v59 = vrot.slane %v228_v54, 1  ;;  %v266_v5 = vrot.slane %v265_v0, 1  ;;  %v280_v9 = vrot.slane %v279_v4, 1 }
  0x14   :  { %113 = vst [vmem:[#allocation1 + $0x8] sm:$0xff] %v112_v25  ;;  %v256_v62 = vld [vmem:[#allocation0 + $0xbf] ss:$-1 sm:$0xff]  ;;  %v243_v63 = vrot.slane %v242_v58, 1  ;;  %v293_v8 = vld [vmem:[#allocation0 + $0xe7] ss:$-1 sm:$0xff] }
  0x15   :  { %121 = vst.msk [vmem:[#allocation1 + $0x8] sm:$0xff] %vm106_vm0, %v117_v27  ;;  %v270_v2 = vld [vmem:[#allocation0 + $0xcf] ss:$-1 sm:$0xff]  ;;  %v257_v3 = vrot.slane %v256_v62, 1  ;;  %v307_v12 = vld [vmem:[#allocation0 + $0xf7] ss:$-1 sm:$0xff] }
  0x16   :  { %127 = vst [vmem:[#allocation1 + $0x10] sm:$0xff] %v126_v29  ;;  %v284_v6 = vld [vmem:[#allocation0 + $0xdf] ss:$-1 sm:$0xff]  ;;  %v271_v7 = vrot.slane %v270_v2, 1  ;;  %v294_v13 = vrot.slane %v293_v8, 1  ;;  %v308_v16 = vrot.slane %v307_v12, 1 }
  0x17   :  { %135 = vst.msk [vmem:[#allocation1 + $0x10] sm:$0xff] %vm106_vm0, %v131_v31  ;;  %v298_v10 = vld [vmem:[#allocation0 + $0xef] ss:$-1 sm:$0xff]  ;;  %v285_v11 = vrot.slane %v284_v6, 1 }
  0x18   :  { %141 = vst [vmem:[#allocation1 + $0x18] sm:$0xff] %v140_v33  ;;  %v312_v14 = vld [vmem:[#allocation0 + $0xff] ss:$-1 sm:$0xff]  ;;  %v299_v15 = vrot.slane %v298_v10, 1 }
  0x19   :  { %149 = vst.msk [vmem:[#allocation1 + $0x18] sm:$0xff] %vm106_vm0, %v145_v35  ;;  %v313_v18 = vrot.slane %v312_v14, 1 }
  0x1a   :  { %155 = vst [vmem:[#allocation1 + $0x20] sm:$0xff] %v154_v37  ;;  %v376_v19 = vld [vmem:[#allocation1] sm:$0xff] }
  0x1b   :  { %163 = vst.msk [vmem:[#allocation1 + $0x20] sm:$0xff] %vm106_vm0, %v159_v39 }
  0x1c   :  { %169 = vst [vmem:[#allocation1 + $0x28] sm:$0xff] %v168_v41  ;;  %v378_v20 = vld [vmem:[#allocation1 + $0x8] sm:$0xff] }
  0x1d   :  { %177 = vst.msk [vmem:[#allocation1 + $0x28] sm:$0xff] %vm106_vm0, %v173_v43 }
  0x1e   :  { %183 = vst [vmem:[#allocation1 + $0x30] sm:$0xff] %v182_v45  ;;  %v380_v17 = vld [vmem:[#allocation1 + $0x10] sm:$0xff] }
  0x1f   :  { %191 = vst.msk [vmem:[#allocation1 + $0x30] sm:$0xff] %vm106_vm0, %v187_v47 }
  0x20   :  { %197 = vst [vmem:[#allocation1 + $0x38] sm:$0xff] %v196_v49  ;;  %v382_v21 = vld [vmem:[#allocation1 + $0x18] sm:$0xff] }
  0x21   :  { %205 = vst.msk [vmem:[#allocation1 + $0x38] sm:$0xff] %vm106_vm0, %v201_v51 }
  0x22   :  { %211 = vst [vmem:[#allocation1 + $0x40] sm:$0xff] %v210_v53  ;;  %v384_v22 = vld [vmem:[#allocation1 + $0x20] sm:$0xff] }
  0x23   :  { %219 = vst.msk [vmem:[#allocation1 + $0x40] sm:$0xff] %vm106_vm0, %v215_v55 }
  0x24   :  { %225 = vst [vmem:[#allocation1 + $0x48] sm:$0xff] %v224_v57  ;;  %v386_v23 = vld [vmem:[#allocation1 + $0x28] sm:$0xff] }
  0x25   :  { %233 = vst.msk [vmem:[#allocation1 + $0x48] sm:$0xff] %vm106_vm0, %v229_v59 }
  0x26   :  { %239 = vst [vmem:[#allocation1 + $0x50] sm:$0xff] %v238_v61  ;;  %v388_v24 = vld [vmem:[#allocation1 + $0x30] sm:$0xff] }
  0x27   :  { %247 = vst.msk [vmem:[#allocation1 + $0x50] sm:$0xff] %vm106_vm0, %v243_v63 }
  0x28   :  { %253 = vst [vmem:[#allocation1 + $0x58] sm:$0xff] %v252_v1  ;;  %v390_v25 = vld [vmem:[#allocation1 + $0x38] sm:$0xff] }
  0x29   :  { %261 = vst.msk [vmem:[#allocation1 + $0x58] sm:$0xff] %vm106_vm0, %v257_v3 }
  0x2a   :  { %267 = vst [vmem:[#allocation1 + $0x60] sm:$0xff] %v266_v5  ;;  %v392_v26 = vld [vmem:[#allocation1 + $0x40] sm:$0xff] }
  0x2b   :  { %275 = vst.msk [vmem:[#allocation1 + $0x60] sm:$0xff] %vm106_vm0, %v271_v7 }
  0x2c   :  { %281 = vst [vmem:[#allocation1 + $0x68] sm:$0xff] %v280_v9  ;;  %v394_v27 = vld [vmem:[#allocation1 + $0x48] sm:$0xff] }
  0x2d   :  { %289 = vst.msk [vmem:[#allocation1 + $0x68] sm:$0xff] %vm106_vm0, %v285_v11 }
  0x2e   :  { %295 = vst [vmem:[#allocation1 + $0x70] sm:$0xff] %v294_v13  ;;  %v396_v28 = vld [vmem:[#allocation1 + $0x50] sm:$0xff] }
  0x2f   :  { %303 = vst.msk [vmem:[#allocation1 + $0x70] sm:$0xff] %vm106_vm0, %v299_v15 }
  0x30   :  { %309 = vst [vmem:[#allocation1 + $0x78] sm:$0xff] %v308_v16  ;;  %v398_v29 = vld [vmem:[#allocation1 + $0x58] sm:$0xff] }
  0x31   :  { %317 = vst.msk [vmem:[#allocation1 + $0x78] sm:$0xff] %vm106_vm0, %v313_v18 }
  0x32   :  { %377 = vst [vmem:[%s607_s1] sm:$0xff] %v376_v19  ;;  %v400_v30 = vld [vmem:[#allocation1 + $0x60] sm:$0xff] }
  0x33   :  { %379 = vst [vmem:[%s607_s1 + $0x8] sm:$0xff] %v378_v20 }
  0x34   :  { %381 = vst [vmem:[%s607_s1 + $0x10] sm:$0xff] %v380_v17  ;;  %v402_v31 = vld [vmem:[#allocation1 + $0x68] sm:$0xff] }
  0x35   :  { %383 = vst [vmem:[%s607_s1 + $0x18] sm:$0xff] %v382_v21 }
  0x36   :  { %385 = vst [vmem:[%s607_s1 + $0x20] sm:$0xff] %v384_v22  ;;  %v404_v32 = vld [vmem:[#allocation1 + $0x70] sm:$0xff] }
  0x37   :  { %387 = vst [vmem:[%s607_s1 + $0x28] sm:$0xff] %v386_v23 }
  0x38   :  { %389 = vst [vmem:[%s607_s1 + $0x30] sm:$0xff] %v388_v24  ;;  %v406_v33 = vld [vmem:[#allocation1 + $0x78] sm:$0xff] }
  0x39   :  { %391 = vst [vmem:[%s607_s1 + $0x38] sm:$0xff] %v390_v25 }
  0x3a   :  { %393 = vst [vmem:[%s607_s1 + $0x40] sm:$0xff] %v392_v26 }
  0x3b   :  { %395 = vst [vmem:[%s607_s1 + $0x48] sm:$0xff] %v394_v27 }
  0x3c   :  { %397 = vst [vmem:[%s607_s1 + $0x50] sm:$0xff] %v396_v28 }
  0x3d   :  { %399 = vst [vmem:[%s607_s1 + $0x58] sm:$0xff] %v398_v29 }
  0x3e   :  { %401 = vst [vmem:[%s607_s1 + $0x60] sm:$0xff] %v400_v30 }
  0x3f   :  { %403 = vst [vmem:[%s607_s1 + $0x68] sm:$0xff] %v402_v31 }
  0x40   :  { %405 = vst [vmem:[%s607_s1 + $0x70] sm:$0xff] %v404_v32 }
  0x41   :  { %407 = vst [vmem:[%s607_s1 + $0x78] sm:$0xff] %v406_v33 }

// kernel: puno_forward.11
= control target key start
LH: loop header
LB: loop body
LE: loop exit
PB: predicated region body
PF: predicated region fallthrough
CT: control target
= control target key end

     0   :  { %vm17_vm0 = vcmask 130048   ;;  %vm34_vm1 = vcmask 123904   ;;  %s1434_s1 = inlined_call_operand.vmem [shape: f32[32,16,16], index: 1, kind: input, shape index: {}]   ;;  %s1435_s0 = inlined_call_operand.vmem [shape: f32[32,2,16], index: 0, kind: input, shape index: {}]   ;;  %s1436_s2 = inlined_call_operand.vmem [shape: f32[32,2,16], index: 2, kind: output, shape index: {}]  }
   0x1   :  { %v14_v0 = vld [vmem:[%s1434_s1] sm:$0xff]  ;;  %v15_v1 = vld [vmem:[%s1434_s1 + $0x8] sm:$0xff]  ;;  %v817_v2 = vld [vmem:[%s1434_s1 + $0x10] sm:$0xff] }
   0x2   :  { %v16_v3 = vpack.c.bf16 %v15_v1, %v14_v0  ;;  %v818_v4 = vld [vmem:[%s1434_s1 + $0x18] sm:$0xff]  ;;  %v822_v5 = vld [vmem:[%s1434_s1 + $0x20] sm:$0xff]  ;;  %v823_v6 = vld [vmem:[%s1434_s1 + $0x28] sm:$0xff] }
   0x3   :  { %v42_v7 = vpack.c.bf16 %v818_v4, %v817_v2  ;;  %v67_v8 = vpack.c.bf16 %v823_v6, %v822_v5  ;;  %v827_v9 = vld [vmem:[%s1434_s1 + $0x30] sm:$0xff]  ;;  %v828_v10 = vld [vmem:[%s1434_s1 + $0x38] sm:$0xff]  ;;  %v12_v11 = vld [vmem:[%s1435_s0] sm:$0x3] }
   0x4   :  { %28 = vmatpush.bf16.msra.mxu0 %v16_v3  ;;  %v92_v12 = vpack.c.bf16 %v828_v10, %v827_v9  ;;  %v13_v13 = vpack.c.bf16 %v12_v11, %v12_v11  ;;  %v816_v14 = vld [vmem:[%s1435_s0 + $0x2] sm:$0x3]  ;;  %v821_v15 = vld [vmem:[%s1435_s0 + $0x4] sm:$0x3]  ;;  %v826_v16 = vld [vmem:[%s1435_s0 + $0x6] sm:$0x3] }
   0x5   :  { %53 = vmatpush.bf16.msra.mxu1 %v42_v7  ;;  %78 = vmatpush.bf16.msra.mxu2 %v67_v8  ;;  %v38_v17 = vpack.c.bf16 %v816_v14, %v816_v14  ;;  %v63_v18 = vpack.c.bf16 %v821_v15, %v821_v15  ;;  %v88_v19 = vpack.c.bf16 %v826_v16, %v826_v16  ;;  %v842_v20 = vld [vmem:[%s1434_s1 + $0x60] sm:$0xff]  ;;  %v843_v21 = vld [vmem:[%s1434_s1 + $0x68] sm:$0xff]  ;;  %v847_v22 = vld [vmem:[%s1434_s1 + $0x70] sm:$0xff] }
   0x6   :  { %103 = vmatpush.bf16.msra.mxu3 %v92_v12  ;;  %v167_v23 = vpack.c.bf16 %v843_v21, %v842_v20  ;;  %v848_v24 = vld [vmem:[%s1434_s1 + $0x78] sm:$0xff]  ;;  %v832_v25 = vld [vmem:[%s1434_s1 + $0x40] sm:$0xff]  ;;  %v833_v26 = vld [vmem:[%s1434_s1 + $0x48] sm:$0xff] }
   0x7   :  { %815 = vmatmul.msk.bf16.vlgmr.msra.gmra.mxu0 %vm17_vm0, %v13_v13  ;;  %v192_v27 = vpack.c.bf16 %v848_v24, %v847_v22  ;;  %v117_v28 = vpack.c.bf16 %v833_v26, %v832_v25  ;;  %v837_v29 = vld [vmem:[%s1434_s1 + $0x50] sm:$0xff]  ;;  %v838_v30 = vld [vmem:[%s1434_s1 + $0x58] sm:$0xff]  ;;  %v862_v32 = vld [vmem:[%s1434_s1 + $0xa0] sm:$0xff] }
   0x8   :  { %819 = vmatmul.msk.bf16.vlgmr.msra.gmra.mxu1 %vm17_vm0, %v38_v17  ;;  %824 = vmatmul.msk.bf16.vlgmr.msra.gmra.mxu2 %vm17_vm0, %v63_v18  ;;  %v142_v31 = vpack.c.bf16 %v838_v30, %v837_v29  ;;  %v863_v33 = vld [vmem:[%s1434_s1 + $0xa8] sm:$0xff]  ;;  %v867_v34 = vld [vmem:[%s1434_s1 + $0xb0] sm:$0xff]  ;;  %v868_v36 = vld [vmem:[%s1434_s1 + $0xb8] sm:$0xff] }
   0x9   :  { %829 = vmatmul.msk.bf16.vlgmr.msra.gmra.mxu3 %vm17_vm0, %v88_v19  ;;  %178 = vmatpush.bf16.msrb.mxu2 %v167_v23  ;;  %v267_v35 = vpack.c.bf16 %v863_v33, %v862_v32  ;;  %v852_v37 = vld [vmem:[%s1434_s1 + $0x80] sm:$0xff]  ;;  %v853_v38 = vld [vmem:[%s1434_s1 + $0x88] sm:$0xff]  ;;  %v292_v39 = vpack.c.bf16 %v868_v36, %v867_v34  ;;  %v857_v41 = vld [vmem:[%s1434_s1 + $0x90] sm:$0xff] }
   0xa   :  { %203 = vmatpush.bf16.msrb.mxu3 %v192_v27  ;;  %128 = vmatpush.bf16.msrb.mxu0 %v117_v28  ;;  %v217_v40 = vpack.c.bf16 %v853_v38, %v852_v37  ;;  %v858_v42 = vld [vmem:[%s1434_s1 + $0x98] sm:$0xff]  ;;  %v831_v44 = vld [vmem:[%s1435_s0 + $0x8] sm:$0x3]  ;;  %v836_v45 = vld [vmem:[%s1435_s0 + $0xa] sm:$0x3] }
   0xb   :  { %153 = vmatpush.bf16.msrb.mxu1 %v142_v31  ;;  %v242_v43 = vpack.c.bf16 %v858_v42, %v857_v41  ;;  %v841_v46 = vld [vmem:[%s1435_s0 + $0xc] sm:$0x3]  ;;  %v846_v47 = vld [vmem:[%s1435_s0 + $0xe] sm:$0x3]  ;;  %v882_v48 = vld [vmem:[%s1434_s1 + $0xe0] sm:$0xff]  ;;  %v113_v51 = vpack.c.bf16 %v831_v44, %v831_v44  ;;  %v138_v55 = vpack.c.bf16 %v836_v45, %v836_v45 }
   0xc   :  { %v883_v49 = vld [vmem:[%s1434_s1 + $0xe8] sm:$0xff]  ;;  %v887_v50 = vld [vmem:[%s1434_s1 + $0xf0] sm:$0xff]  ;;  %v888_v52 = vld [vmem:[%s1434_s1 + $0xf8] sm:$0xff]  ;;  %v163_v56 = vpack.c.bf16 %v841_v46, %v841_v46  ;;  %v188_v59 = vpack.c.bf16 %v846_v47, %v846_v47 }
   0xd   :  { %278 = vmatpush.bf16.msra.mxu2 %v267_v35  ;;  %v872_v53 = vld [vmem:[%s1434_s1 + $0xc0] sm:$0xff]  ;;  %v873_v54 = vld [vmem:[%s1434_s1 + $0xc8] sm:$0xff]  ;;  %v877_v57 = vld [vmem:[%s1434_s1 + $0xd0] sm:$0xff]  ;;  %v367_v60 = vpack.c.bf16 %v883_v49, %v882_v48  ;;  %v392_v61 = vpack.c.bf16 %v888_v52, %v887_v50 }
   0xe   :  { %303 = vmatpush.bf16.msra.mxu3 %v292_v39  ;;  %228 = vmatpush.bf16.msra.mxu0 %v217_v40  ;;  %v878_v58 = vld [vmem:[%s1434_s1 + $0xd8] sm:$0xff]  ;;  %v317_v62 = vpack.c.bf16 %v873_v54, %v872_v53  ;;  %v851_v0 = vld [vmem:[%s1435_s0 + $0x10] sm:$0x3]  ;;  %v856_v1 = vld [vmem:[%s1435_s0 + $0x12] sm:$0x3] }
   0xf   :  { %253 = vmatpush.bf16.msra.mxu1 %v242_v43  ;;  %v342_v63 = vpack.c.bf16 %v878_v58, %v877_v57  ;;  %v861_v2 = vld [vmem:[%s1435_s0 + $0x14] sm:$0x3]  ;;  %v866_v3 = vld [vmem:[%s1435_s0 + $0x16] sm:$0x3]  ;;  %v902_v4 = vld [vmem:[%s1434_s1 + $0x120] sm:$0xff]  ;;  %v213_v7 = vpack.c.bf16 %v851_v0, %v851_v0  ;;  %v238_v11 = vpack.c.bf16 %v856_v1, %v856_v1 }
  0x10   :  { %v903_v5 = vld [vmem:[%s1434_s1 + $0x128] sm:$0xff]  ;;  %v907_v6 = vld [vmem:[%s1434_s1 + $0x130] sm:$0xff]  ;;  %v908_v8 = vld [vmem:[%s1434_s1 + $0x138] sm:$0xff]  ;;  %v263_v12 = vpack.c.bf16 %v861_v2, %v861_v2  ;;  %v288_v15 = vpack.c.bf16 %v866_v3, %v866_v3 }
  0x11   :  { %v892_v9 = vld [vmem:[%s1434_s1 + $0x100] sm:$0xff]  ;;  %v893_v10 = vld [vmem:[%s1434_s1 + $0x108] sm:$0xff]  ;;  %v897_v13 = vld [vmem:[%s1434_s1 + $0x110] sm:$0xff]  ;;  %v467_v16 = vpack.c.bf16 %v903_v5, %v902_v4  ;;  %v492_v17 = vpack.c.bf16 %v908_v8, %v907_v6 }
  0x12   :  { %v898_v14 = vld [vmem:[%s1434_s1 + $0x118] sm:$0xff]  ;;  %v417_v18 = vpack.c.bf16 %v893_v10, %v892_v9  ;;  %v922_v24 = vld [vmem:[%s1434_s1 + $0x160] sm:$0xff]  ;;  %v923_v25 = vld [vmem:[%s1434_s1 + $0x168] sm:$0xff] }
  0x13   :  { %v442_v19 = vpack.c.bf16 %v898_v14, %v897_v13  ;;  %v871_v20 = vld [vmem:[%s1435_s0 + $0x18] sm:$0x3]  ;;  %v876_v21 = vld [vmem:[%s1435_s0 + $0x1a] sm:$0x3]  ;;  %v881_v22 = vld [vmem:[%s1435_s0 + $0x1c] sm:$0x3]  ;;  %v567_v36 = vpack.c.bf16 %v923_v25, %v922_v24 }
  0x14   :  { %v886_v23 = vld [vmem:[%s1435_s0 + $0x1e] sm:$0x3]  ;;  %v927_v26 = vld [vmem:[%s1434_s1 + $0x170] sm:$0xff]  ;;  %v313_v27 = vpack.c.bf16 %v871_v20, %v871_v20  ;;  %v912_v29 = vld [vmem:[%s1434_s1 + $0x140] sm:$0xff]  ;;  %v338_v31 = vpack.c.bf16 %v876_v21, %v876_v21  ;;  %v363_v32 = vpack.c.bf16 %v881_v22, %v881_v22 }
  0x15   :  { %v928_v28 = vld [vmem:[%s1434_s1 + $0x178] sm:$0xff]  ;;  %v913_v30 = vld [vmem:[%s1434_s1 + $0x148] sm:$0xff]  ;;  %v917_v33 = vld [vmem:[%s1434_s1 + $0x150] sm:$0xff]  ;;  %v388_v35 = vpack.c.bf16 %v886_v23, %v886_v23 }
  0x16   :  { %v918_v34 = vld [vmem:[%s1434_s1 + $0x158] sm:$0xff]  ;;  %v592_v37 = vpack.c.bf16 %v928_v28, %v927_v26  ;;  %v517_v38 = vpack.c.bf16 %v913_v30, %v912_v29  ;;  %v891_v40 = vld [vmem:[%s1435_s0 + $0x20] sm:$0x3]  ;;  %v896_v41 = vld [vmem:[%s1435_s0 + $0x22] sm:$0x3] }
  0x17   :  { %834 = vmatmul.msk.bf16.vlgmr.msrb.gmra.mxu0 %vm17_vm0, %v113_v51  ;;  %v542_v39 = vpack.c.bf16 %v918_v34, %v917_v33  ;;  %v901_v42 = vld [vmem:[%s1435_s0 + $0x24] sm:$0x3]  ;;  %v906_v43 = vld [vmem:[%s1435_s0 + $0x26] sm:$0x3]  ;;  %v943_v45 = vld [vmem:[%s1434_s1 + $0x1a8] sm:$0xff]  ;;  %v413_v47 = vpack.c.bf16 %v891_v40, %v891_v40  ;;  %v438_v51 = vpack.c.bf16 %v896_v41, %v896_v41 }
  0x18   :  { %839 = vmatmul.msk.bf16.vlgmr.msrb.gmra.mxu1 %vm17_vm0, %v138_v55  ;;  %844 = vmatmul.msk.bf16.vlgmr.msrb.gmra.mxu2 %vm17_vm0, %v163_v56  ;;  %v942_v44 = vld [vmem:[%s1434_s1 + $0x1a0] sm:$0xff]  ;;  %v947_v46 = vld [vmem:[%s1434_s1 + $0x1b0] sm:$0xff]  ;;  %v948_v48 = vld [vmem:[%s1434_s1 + $0x1b8] sm:$0xff]  ;;  %v463_v52 = vpack.c.bf16 %v901_v42, %v901_v42  ;;  %v488_v55 = vpack.c.bf16 %v906_v43, %v906_v43 }
  0x19   :  { %849 = vmatmul.msk.bf16.vlgmr.msrb.gmra.mxu3 %vm17_vm0, %v188_v59  ;;  %378 = vmatpush.bf16.msrb.mxu2 %v367_v60  ;;  %v932_v49 = vld [vmem:[%s1434_s1 + $0x180] sm:$0xff]  ;;  %v933_v50 = vld [vmem:[%s1434_s1 + $0x188] sm:$0xff]  ;;  %v937_v53 = vld [vmem:[%s1434_s1 + $0x190] sm:$0xff]  ;;  %v667_v56 = vpack.c.bf16 %v943_v45, %v942_v44  ;;  %v692_v57 = vpack.c.bf16 %v948_v48, %v947_v46 }
  0x1a   :  { %403 = vmatpush.bf16.msrb.mxu3 %v392_v61  ;;  %328 = vmatpush.bf16.msrb.mxu0 %v317_v62  ;;  %v938_v54 = vld [vmem:[%s1434_s1 + $0x198] sm:$0xff]  ;;  %v617_v58 = vpack.c.bf16 %v933_v50, %v932_v49  ;;  %v911_v60 = vld [vmem:[%s1435_s0 + $0x28] sm:$0x3]  ;;  %v916_v61 = vld [vmem:[%s1435_s0 + $0x2a] sm:$0x3] }
  0x1b   :  { %353 = vmatpush.bf16.msrb.mxu1 %v342_v63  ;;  %v642_v59 = vpack.c.bf16 %v938_v54, %v937_v53  ;;  %v921_v62 = vld [vmem:[%s1435_s0 + $0x2c] sm:$0x3]  ;;  %v926_v63 = vld [vmem:[%s1435_s0 + $0x2e] sm:$0x3]  ;;  %v962_v0 = vld [vmem:[%s1434_s1 + $0x1e0] sm:$0xff]  ;;  %v513_v3 = vpack.c.bf16 %v911_v60, %v911_v60 }
  0x1c   :  { %v963_v1 = vld [vmem:[%s1434_s1 + $0x1e8] sm:$0xff]  ;;  %v967_v2 = vld [vmem:[%s1434_s1 + $0x1f0] sm:$0xff]  ;;  %v968_v4 = vld [vmem:[%s1434_s1 + $0x1f8] sm:$0xff]  ;;  %v563_v8 = vpack.c.bf16 %v921_v62, %v921_v62 }
  0x1d   :  { %v952_v5 = vld [vmem:[%s1434_s1 + $0x1c0] sm:$0xff]  ;;  %v953_v6 = vld [vmem:[%s1434_s1 + $0x1c8] sm:$0xff]  ;;  %v957_v9 = vld [vmem:[%s1434_s1 + $0x1d0] sm:$0xff]  ;;  %v792_v13 = vpack.c.bf16 %v968_v4, %v967_v2 }
  0x1e   :  { %v958_v10 = vld [vmem:[%s1434_s1 + $0x1d8] sm:$0xff]  ;;  %v717_v14 = vpack.c.bf16 %v953_v6, %v952_v5 }
  0x1f   :  { %v951_v24 = vld [vmem:[%s1435_s0 + $0x38] sm:$0x3]  ;;  %v956_v25 = vld [vmem:[%s1435_s0 + $0x3a] sm:$0x3]  ;;  %v961_v26 = vld [vmem:[%s1435_s0 + $0x3c] sm:$0x3] }
  0x20   :  { %v713_v28 = vpack.c.bf16 %v951_v24, %v951_v24  ;;  %v738_v29 = vpack.c.bf16 %v956_v25, %v956_v25  ;;  %v763_v30 = vpack.c.bf16 %v961_v26, %v961_v26 }
  0x27   :  { %854 = vmatmul.msk.bf16.vlgmr.msra.gmra.mxu0 %vm17_vm0, %v213_v7  ;;  %v538_v7 = vpack.c.bf16 %v916_v61, %v916_v61 }
  0x28   :  { %859 = vmatmul.msk.bf16.vlgmr.msra.gmra.mxu1 %vm17_vm0, %v238_v11  ;;  %864 = vmatmul.msk.bf16.vlgmr.msra.gmra.mxu2 %vm17_vm0, %v263_v12  ;;  %v588_v11 = vpack.c.bf16 %v926_v63, %v926_v63  ;;  %v767_v12 = vpack.c.bf16 %v963_v1, %v962_v0 }
  0x29   :  { %869 = vmatmul.msk.bf16.vlgmr.msra.gmra.mxu3 %vm17_vm0, %v288_v15  ;;  %478 = vmatpush.bf16.msra.mxu2 %v467_v16  ;;  %v742_v15 = vpack.c.bf16 %v958_v10, %v957_v9  ;;  %v931_v16 = vld [vmem:[%s1435_s0 + $0x30] sm:$0x3] }
  0x2a   :  { %503 = vmatpush.bf16.msra.mxu3 %v492_v17  ;;  %428 = vmatpush.bf16.msra.mxu0 %v417_v18  ;;  %v936_v17 = vld [vmem:[%s1435_s0 + $0x32] sm:$0x3]  ;;  %v941_v18 = vld [vmem:[%s1435_s0 + $0x34] sm:$0x3]  ;;  %v613_v20 = vpack.c.bf16 %v931_v16, %v931_v16 }
  0x2b   :  { %453 = vmatpush.bf16.msra.mxu1 %v442_v19  ;;  %v946_v19 = vld [vmem:[%s1435_s0 + $0x36] sm:$0x3]  ;;  %v638_v21 = vpack.c.bf16 %v936_v17, %v936_v17  ;;  %v663_v22 = vpack.c.bf16 %v941_v18, %v941_v18 }
  0x2c   :  { %v688_v23 = vpack.c.bf16 %v946_v19, %v946_v19 }
  0x37   :  { %874 = vmatmul.msk.bf16.vlgmr.msrb.gmra.mxu0 %vm17_vm0, %v313_v27  ;;  %v966_v27 = vld [vmem:[%s1435_s0 + $0x3e] sm:$0x3] }
  0x38   :  { %879 = vmatmul.msk.bf16.vlgmr.msrb.gmra.mxu1 %vm17_vm0, %v338_v31  ;;  %884 = vmatmul.msk.bf16.vlgmr.msrb.gmra.mxu2 %vm17_vm0, %v363_v32  ;;  %v788_v31 = vpack.c.bf16 %v966_v27, %v966_v27 }
  0x39   :  { %889 = vmatmul.msk.bf16.vlgmr.msrb.gmra.mxu3 %vm17_vm0, %v388_v35  ;;  %578 = vmatpush.bf16.msrb.mxu2 %v567_v36 }
  0x3a   :  { %603 = vmatpush.bf16.msrb.mxu3 %v592_v37  ;;  %528 = vmatpush.bf16.msrb.mxu0 %v517_v38 }
  0x3b   :  { %553 = vmatpush.bf16.msrb.mxu1 %v542_v39 }
  0x47   :  { %894 = vmatmul.msk.bf16.vlgmr.msra.gmra.mxu0 %vm17_vm0, %v413_v47 }
  0x48   :  { %899 = vmatmul.msk.bf16.vlgmr.msra.gmra.mxu1 %vm17_vm0, %v438_v51  ;;  %904 = vmatmul.msk.bf16.vlgmr.msra.gmra.mxu2 %vm17_vm0, %v463_v52 }
  0x49   :  { %909 = vmatmul.msk.bf16.vlgmr.msra.gmra.mxu3 %vm17_vm0, %v488_v55  ;;  %678 = vmatpush.bf16.msra.mxu2 %v667_v56 }
  0x4a   :  { %703 = vmatpush.bf16.msra.mxu3 %v692_v57  ;;  %628 = vmatpush.bf16.msra.mxu0 %v617_v58 }
  0x4b   :  { %653 = vmatpush.bf16.msra.mxu1 %v642_v59 }
  0x57   :  { %914 = vmatmul.msk.bf16.vlgmr.msrb.gmra.mxu0 %vm17_vm0, %v513_v3 }
  0x58   :  { %919 = vmatmul.msk.bf16.vlgmr.msrb.gmra.mxu1 %vm17_vm0, %v538_v7  ;;  %924 = vmatmul.msk.bf16.vlgmr.msrb.gmra.mxu2 %vm17_vm0, %v563_v8 }
  0x59   :  { %929 = vmatmul.msk.bf16.vlgmr.msrb.gmra.mxu3 %vm17_vm0, %v588_v11  ;;  %778 = vmatpush.bf16.msrb.mxu2 %v767_v12 }
  0x5a   :  { %803 = vmatpush.bf16.msrb.mxu3 %v792_v13  ;;  %728 = vmatpush.bf16.msrb.mxu0 %v717_v14 }
  0x5b   :  { %753 = vmatpush.bf16.msrb.mxu1 %v742_v15 }
  0x67   :  { %934 = vmatmul.msk.bf16.vlgmr.msra.gmra.mxu0 %vm17_vm0, %v613_v20 }
  0x68   :  { %939 = vmatmul.msk.bf16.vlgmr.msra.gmra.mxu1 %vm17_vm0, %v638_v21  ;;  %944 = vmatmul.msk.bf16.vlgmr.msra.gmra.mxu2 %vm17_vm0, %v663_v22 }
  0x69   :  { %949 = vmatmul.msk.bf16.vlgmr.msra.gmra.mxu3 %vm17_vm0, %v688_v23 }
  0x77   :  { %954 = vmatmul.msk.bf16.vlgmr.msrb.gmra.mxu0 %vm17_vm0, %v713_v28 }
  0x78   :  { %959 = vmatmul.msk.bf16.vlgmr.msrb.gmra.mxu1 %vm17_vm0, %v738_v29  ;;  %964 = vmatmul.msk.bf16.vlgmr.msrb.gmra.mxu2 %vm17_vm0, %v763_v30 }
  0x79   :  { %969 = vmatmul.msk.bf16.vlgmr.msrb.gmra.mxu3 %vm17_vm0, %v788_v31 }
  0x84   :  { %v30_v32 = vpop.f32.mrf.mxu0 }
  0x85   :  { %35 = vst.msk [vmem:[%s1436_s2] sm:$0x3] %vm34_vm1, %v30_v32  ;;  %v55_v33 = vpop.f32.mrf.mxu1 }
  0x86   :  { %820 = vst.msk [vmem:[%s1436_s2 + $0x2] sm:$0x3] %vm34_vm1, %v55_v33 }
  0x8b   :  { %v80_v34 = vpop.f32.mrf.mxu2 }
  0x8c   :  { %825 = vst.msk [vmem:[%s1436_s2 + $0x4] sm:$0x3] %vm34_vm1, %v80_v34  ;;  %v105_v35 = vpop.f32.mrf.mxu3  ;;  %v32_v36 = vpop.f32.mrf.mxu0 }
  0x8d   :  { %830 = vst.msk [vmem:[%s1436_s2 + $0x6] sm:$0x3] %vm34_vm1, %v105_v35  ;;  %v57_v37 = vpop.f32.mrf.mxu1 }
  0x93   :  { %v82_v38 = vpop.f32.mrf.mxu2 }
  0x94   :  { %v107_v39 = vpop.f32.mrf.mxu3  ;;  %v130_v40 = vpop.f32.mrf.mxu0 }
  0x95   :  { %835 = vst.msk [vmem:[%s1436_s2 + $0x8] sm:$0x3] %vm34_vm1, %v130_v40  ;;  %v155_v41 = vpop.f32.mrf.mxu1 }
  0x96   :  { %840 = vst.msk [vmem:[%s1436_s2 + $0xa] sm:$0x3] %vm34_vm1, %v155_v41 }
  0x9b   :  { %v180_v42 = vpop.f32.mrf.mxu2 }
  0x9c   :  { %845 = vst.msk [vmem:[%s1436_s2 + $0xc] sm:$0x3] %vm34_vm1, %v180_v42  ;;  %v205_v43 = vpop.f32.mrf.mxu3  ;;  %v132_v44 = vpop.f32.mrf.mxu0 }
  0x9d   :  { %850 = vst.msk [vmem:[%s1436_s2 + $0xe] sm:$0x3] %vm34_vm1, %v205_v43  ;;  %v157_v45 = vpop.f32.mrf.mxu1 }
  0xa3   :  { %v182_v46 = vpop.f32.mrf.mxu2 }
  0xa4   :  { %v207_v47 = vpop.f32.mrf.mxu3  ;;  %v230_v48 = vpop.f32.mrf.mxu0 }
  0xa5   :  { %855 = vst.msk [vmem:[%s1436_s2 + $0x10] sm:$0x3] %vm34_vm1, %v230_v48  ;;  %v255_v49 = vpop.f32.mrf.mxu1 }
  0xa6   :  { %860 = vst.msk [vmem:[%s1436_s2 + $0x12] sm:$0x3] %vm34_vm1, %v255_v49 }
  0xab   :  { %v280_v50 = vpop.f32.mrf.mxu2 }
  0xac   :  { %865 = vst.msk [vmem:[%s1436_s2 + $0x14] sm:$0x3] %vm34_vm1, %v280_v50  ;;  %v305_v51 = vpop.f32.mrf.mxu3  ;;  %v232_v52 = vpop.f32.mrf.mxu0 }
  0xad   :  { %870 = vst.msk [vmem:[%s1436_s2 + $0x16] sm:$0x3] %vm34_vm1, %v305_v51  ;;  %v257_v53 = vpop.f32.mrf.mxu1 }
  0xb3   :  { %v282_v54 = vpop.f32.mrf.mxu2 }
  0xb4   :  { %v307_v55 = vpop.f32.mrf.mxu3  ;;  %v330_v56 = vpop.f32.mrf.mxu0 }
  0xb5   :  { %875 = vst.msk [vmem:[%s1436_s2 + $0x18] sm:$0x3] %vm34_vm1, %v330_v56  ;;  %v355_v57 = vpop.f32.mrf.mxu1 }
  0xb6   :  { %880 = vst.msk [vmem:[%s1436_s2 + $0x1a] sm:$0x3] %vm34_vm1, %v355_v57 }
  0xbb   :  { %v380_v58 = vpop.f32.mrf.mxu2 }
  0xbc   :  { %885 = vst.msk [vmem:[%s1436_s2 + $0x1c] sm:$0x3] %vm34_vm1, %v380_v58  ;;  %v405_v59 = vpop.f32.mrf.mxu3  ;;  %v332_v60 = vpop.f32.mrf.mxu0 }
  0xbd   :  { %890 = vst.msk [vmem:[%s1436_s2 + $0x1e] sm:$0x3] %vm34_vm1, %v405_v59  ;;  %v357_v61 = vpop.f32.mrf.mxu1 }
  0xc3   :  { %v382_v62 = vpop.f32.mrf.mxu2 }
  0xc4   :  { %v407_v63 = vpop.f32.mrf.mxu3  ;;  %v430_v0 = vpop.f32.mrf.mxu0 }
  0xc5   :  { %895 = vst.msk [vmem:[%s1436_s2 + $0x20] sm:$0x3] %vm34_vm1, %v430_v0  ;;  %v455_v1 = vpop.f32.mrf.mxu1 }
  0xc6   :  { %900 = vst.msk [vmem:[%s1436_s2 + $0x22] sm:$0x3] %vm34_vm1, %v455_v1 }
  0xcb   :  { %v480_v2 = vpop.f32.mrf.mxu2 }
  0xcc   :  { %905 = vst.msk [vmem:[%s1436_s2 + $0x24] sm:$0x3] %vm34_vm1, %v480_v2  ;;  %v505_v3 = vpop.f32.mrf.mxu3  ;;  %v432_v4 = vpop.f32.mrf.mxu0 }
  0xcd   :  { %910 = vst.msk [vmem:[%s1436_s2 + $0x26] sm:$0x3] %vm34_vm1, %v505_v3  ;;  %v457_v5 = vpop.f32.mrf.mxu1 }
  0xd3   :  { %v482_v6 = vpop.f32.mrf.mxu2 }
  0xd4   :  { %v507_v7 = vpop.f32.mrf.mxu3  ;;  %v530_v8 = vpop.f32.mrf.mxu0 }
  0xd5   :  { %915 = vst.msk [vmem:[%s1436_s2 + $0x28] sm:$0x3] %vm34_vm1, %v530_v8  ;;  %v555_v9 = vpop.f32.mrf.mxu1 }
  0xd6   :  { %920 = vst.msk [vmem:[%s1436_s2 + $0x2a] sm:$0x3] %vm34_vm1, %v555_v9 }
  0xdb   :  { %v580_v10 = vpop.f32.mrf.mxu2 }
  0xdc   :  { %925 = vst.msk [vmem:[%s1436_s2 + $0x2c] sm:$0x3] %vm34_vm1, %v580_v10  ;;  %v605_v11 = vpop.f32.mrf.mxu3  ;;  %v532_v12 = vpop.f32.mrf.mxu0 }
  0xdd   :  { %930 = vst.msk [vmem:[%s1436_s2 + $0x2e] sm:$0x3] %vm34_vm1, %v605_v11  ;;  %v557_v13 = vpop.f32.mrf.mxu1 }
  0xe3   :  { %v582_v14 = vpop.f32.mrf.mxu2 }
  0xe4   :  { %v607_v15 = vpop.f32.mrf.mxu3  ;;  %v630_v16 = vpop.f32.mrf.mxu0 }
  0xe5   :  { %935 = vst.msk [vmem:[%s1436_s2 + $0x30] sm:$0x3] %vm34_vm1, %v630_v16  ;;  %v655_v17 = vpop.f32.mrf.mxu1 }
  0xe6   :  { %940 = vst.msk [vmem:[%s1436_s2 + $0x32] sm:$0x3] %vm34_vm1, %v655_v17 }
  0xeb   :  { %v680_v18 = vpop.f32.mrf.mxu2 }
  0xec   :  { %945 = vst.msk [vmem:[%s1436_s2 + $0x34] sm:$0x3] %vm34_vm1, %v680_v18  ;;  %v705_v19 = vpop.f32.mrf.mxu3  ;;  %v632_v20 = vpop.f32.mrf.mxu0 }
  0xed   :  { %950 = vst.msk [vmem:[%s1436_s2 + $0x36] sm:$0x3] %vm34_vm1, %v705_v19  ;;  %v657_v21 = vpop.f32.mrf.mxu1 }
  0xf3   :  { %v682_v22 = vpop.f32.mrf.mxu2 }
  0xf4   :  { %v707_v23 = vpop.f32.mrf.mxu3  ;;  %v730_v24 = vpop.f32.mrf.mxu0 }
  0xf5   :  { %955 = vst.msk [vmem:[%s1436_s2 + $0x38] sm:$0x3] %vm34_vm1, %v730_v24  ;;  %v755_v25 = vpop.f32.mrf.mxu1 }
  0xf6   :  { %960 = vst.msk [vmem:[%s1436_s2 + $0x3a] sm:$0x3] %vm34_vm1, %v755_v25 }
  0xfb   :  { %v780_v26 = vpop.f32.mrf.mxu2 }
  0xfc   :  { %965 = vst.msk [vmem:[%s1436_s2 + $0x3c] sm:$0x3] %vm34_vm1, %v780_v26  ;;  %v805_v27 = vpop.f32.mrf.mxu3  ;;  %v732_v28 = vpop.f32.mrf.mxu0 }
  0xfd   :  { %970 = vst.msk [vmem:[%s1436_s2 + $0x3e] sm:$0x3] %vm34_vm1, %v805_v27  ;;  %v757_v29 = vpop.f32.mrf.mxu1 }
 0x103   :  { %v782_v30 = vpop.f32.mrf.mxu2 }
 0x104   :  { %v807_v31 = vpop.f32.mrf.mxu3 }

// kernel: puno_forward.12
= control target key start
LH: loop header
LB: loop body
LE: loop exit
PB: predicated region body
PF: predicated region fallthrough
CT: control target
= control target key end

     0   :  { %vm41_vm0 = vcmask 1043456   ;;  %v259_v3 = vmov 0   ;;  %vm37_vm1 = vcmask 64512   ;;  %s368_s0 = inlined_call_operand.vmem [shape: f32[8,512], index: 0, kind: input, shape index: {}]   ;;  %s369_s2 = inlined_call_operand.vmem [shape: f32[8,8], index: 2, kind: input, shape index: {}]   ;;  %s370_s3 = inlined_call_operand.vmem [shape: f32[8,1], index: 3, kind: input, shape index: {}]   ;;  %s371_s1 = inlined_call_operand.vmem [shape: f32[8,512], index: 1, kind: input, shape index: {}]   ;;  %s372_s4 = inlined_call_operand.vmem [shape: f32[8,8], index: 4, kind: input, shape index: {}]   ;;  %s373_s5 = inlined_call_operand.vmem [shape: f32[8,512], index: 5, kind: output, shape index: {0}]   ;;  %s374_s6 = inlined_call_operand.vmem [shape: f32[8,512], index: 6, kind: output, shape index: {1}]  }
   0x1   :  { %v25_v0 = vld [vmem:[%s368_s0] sm:$0xff]  ;;  %v26_v1 = vld [vmem:[%s368_s0 + $0x8] sm:$0xff]  ;;  %v27_v2 = vld [vmem:[%s368_s0 + $0x10] sm:$0xff]  ;;  %250 = vset.pattern.permute.xlu0 %v259_v3 }
   0x2   :  { %v29_v4 = vpack.c.bf16 %v25_v0, %v25_v0  ;;  %v30_v5 = vpack.c.bf16 %v26_v1, %v26_v1  ;;  %v31_v6 = vpack.c.bf16 %v27_v2, %v27_v2  ;;  %v28_v7 = vld [vmem:[%s368_s0 + $0x18] sm:$0xff]  ;;  %v23_v8 = vld [vmem:[%s369_s2] sm:$0xff]  ;;  %v34_v17 = vld [vmem:[%s371_s1 + $0x8] sm:$0xff] }
   0x3   :  { %v106_v9 = vld [vmem:[%s370_s3] sm:$0xff]  ;;  %v32_v10 = vpack.c.bf16 %v28_v7, %v28_v7  ;;  %v24_v14 = vpack.c.bf16 %v23_v8, %v23_v8  ;;  %v35_v27 = vld [vmem:[%s371_s1 + $0x10] sm:$0xff]  ;;  %v36_v28 = vld [vmem:[%s371_s1 + $0x18] sm:$0xff] }
   0x4   :  { %109 = vperm.xlu0 %250, %v106_v9   ;;  %v43_v11 = vsel %vm41_vm0, %v29_v4, 0  ;;  %v46_v12 = vsel %vm41_vm0, %v30_v5, 0  ;;  %v49_v13 = vsel %vm41_vm0, %v31_v6, 0  ;;  %v33_v16 = vld [vmem:[%s371_s1] sm:$0xff] }
   0x5   :  { %61 = vmatpush.bf16.msra.mxu0 %v43_v11  ;;  %74 = vmatpush.bf16.msra.mxu1 %v46_v12  ;;  %v52_v15 = vsel %vm41_vm0, %v32_v10, 0  ;;  %v156_v1 = vld [vmem:[%s372_s4] sm:$0xff] }
   0x6   :  { %87 = vmatpush.bf16.msra.mxu2 %v49_v13  ;;  %100 = vmatpush.bf16.msra.mxu3 %v52_v15  ;;  %v157_v9 = vpack.c.bf16 %v156_v1, %v156_v1 }
   0x8   :  { %241 = vmatmul.msk.bf16.vlgmr.msra.gmra.mxu0 %vm37_vm1, %v24_v14  ;;  %242 = vmatmul.msk.bf16.vlgmr.msra.gmra.mxu1 %vm37_vm1, %v24_v14 }
   0x9   :  { %243 = vmatmul.msk.bf16.vlgmr.msra.gmra.mxu2 %vm37_vm1, %v24_v14  ;;  %244 = vmatmul.msk.bf16.vlgmr.msra.gmra.mxu3 %vm37_vm1, %v24_v14 }
  0x76   :  { %v110_v18 = vpop.permute.xlu0 %109 }
  0x85   :  { %v63_v19 = vpop.f32.mrf.mxu0  ;;  %v76_v20 = vpop.f32.mrf.mxu1 }
  0x86   :  { %v64_v21 = vadd.f32 %v63_v19, %v33_v16  ;;  %v77_v22 = vadd.f32 %v76_v20, %v34_v17 }
  0x88   :  { %v112_v23 = vadd.f32 %v110_v18, %v64_v21  ;;  %v113_v24 = vadd.f32 %v110_v18, %v77_v22 }
  0x8a   :  { %v116_v25 = vmul.f32 %v112_v23, %v112_v23  ;;  %v117_v26 = vmul.f32 %v113_v24, %v113_v24 }
  0x8c   :  { %v120_v29 = vmul.f32 %v116_v25, %v112_v23  ;;  %v121_v30 = vmul.f32 %v117_v26, %v113_v24  ;;  %v89_v31 = vpop.f32.mrf.mxu2  ;;  %v102_v32 = vpop.f32.mrf.mxu3 }
  0x8d   :  { %v90_v33 = vadd.f32 %v89_v31, %v35_v27  ;;  %v103_v34 = vadd.f32 %v102_v32, %v36_v28  ;;  %v65_v35 = vpop.f32.mrf.mxu0  ;;  %v78_v36 = vpop.f32.mrf.mxu1 }
  0x8e   :  { %v124_v37 = vmul.f32 0.044715, %v120_v29  ;;  %v125_v38 = vmul.f32 0.044715, %v121_v30 }
  0x8f   :  { %v114_v39 = vadd.f32 %v110_v18, %v90_v33  ;;  %v115_v40 = vadd.f32 %v110_v18, %v103_v34 }
  0x90   :  { %v128_v41 = vadd.f32 %v124_v37, %v112_v23  ;;  %v129_v42 = vadd.f32 %v125_v38, %v113_v24 }
  0x91   :  { %v118_v43 = vmul.f32 %v114_v39, %v114_v39  ;;  %v119_v44 = vmul.f32 %v115_v40, %v115_v40 }
  0x92   :  { %v132_v45 = vmul.f32 0.7978846, %v128_v41  ;;  %v133_v46 = vmul.f32 0.7978846, %v129_v42 }
  0x93   :  { %v122_v47 = vmul.f32 %v118_v43, %v114_v39  ;;  %v123_v48 = vmul.f32 %v119_v44, %v115_v40 }
  0x94   :  { %v91_v49 = vpop.f32.mrf.mxu2  ;;  %v104_v50 = vpop.f32.mrf.mxu3  ;;  %251 = vtanh.f32 %v132_v45 }
  0x95   :  { %v126_v51 = vmul.f32 0.044715, %v122_v47  ;;  %v127_v52 = vmul.f32 0.044715, %v123_v48  ;;  %253 = vtanh.f32 %v133_v46 }
  0x97   :  { %v130_v53 = vadd.f32 %v126_v51, %v114_v39  ;;  %v131_v54 = vadd.f32 %v127_v52, %v115_v40 }
  0x99   :  { %v134_v55 = vmul.f32 0.7978846, %v130_v53  ;;  %v135_v56 = vmul.f32 0.7978846, %v131_v54 }
  0x9a   :  { %v252_v57 = vpop.eup %251 }
  0x9b   :  { %v254_v58 = vpop.eup %253  ;;  %v140_v59 = vadd.f32 1.0, %v252_v57  ;;  %255 = vtanh.f32 %v134_v55 }
  0x9c   :  { %v141_v60 = vadd.f32 1.0, %v254_v58  ;;  %257 = vtanh.f32 %v135_v56 }
  0x9d   :  { %v144_v61 = vmul.f32 0.5, %v140_v59 }
  0x9e   :  { %v145_v62 = vmul.f32 0.5, %v141_v60 }
  0x9f   :  { %v148_v63 = vmul.f32 %v144_v61, %v112_v23 }
  0xa0   :  { %v149_v0 = vmul.f32 %v145_v62, %v113_v24 }
  0xa1   :  { %v256_v2 = vpop.eup %255  ;;  %152 = vst [vmem:[%s373_s5] sm:$0xff] %v148_v63  ;;  %v158_v3 = vpack.c.bf16 %v148_v63, %v148_v63 }
  0xa2   :  { %v258_v4 = vpop.eup %257  ;;  %153 = vst [vmem:[%s373_s5 + $0x8] sm:$0xff] %v149_v0  ;;  %v159_v5 = vpack.c.bf16 %v149_v0, %v149_v0  ;;  %v142_v6 = vadd.f32 1.0, %v256_v2 }
  0xa3   :  { %v166_v7 = vsel %vm41_vm0, %v158_v3, 0  ;;  %v143_v8 = vadd.f32 1.0, %v258_v4 }
  0xa4   :  { %184 = vmatpush.bf16.msrb.mxu0 %v166_v7  ;;  %v169_v10 = vsel %vm41_vm0, %v159_v5, 0  ;;  %v146_v11 = vmul.f32 0.5, %v142_v6 }
  0xa5   :  { %197 = vmatpush.bf16.msrb.mxu1 %v169_v10  ;;  %v147_v12 = vmul.f32 0.5, %v143_v8 }
  0xa6   :  { %v150_v13 = vmul.f32 %v146_v11, %v114_v39 }
  0xa7   :  { %v151_v14 = vmul.f32 %v147_v12, %v115_v40  ;;  %245 = vmatmul.msk.bf16.vlgmr.msrb.gmra.mxu0 %vm37_vm1, %v157_v9 }
  0xa8   :  { %154 = vst [vmem:[%s373_s5 + $0x10] sm:$0xff] %v150_v13  ;;  %v160_v15 = vpack.c.bf16 %v150_v13, %v150_v13  ;;  %246 = vmatmul.msk.bf16.vlgmr.msrb.gmra.mxu1 %vm37_vm1, %v157_v9 }
  0xa9   :  { %155 = vst [vmem:[%s373_s5 + $0x18] sm:$0xff] %v151_v14  ;;  %v161_v16 = vpack.c.bf16 %v151_v14, %v151_v14 }
  0xaa   :  { %v172_v17 = vsel %vm41_vm0, %v160_v15, 0 }
  0xab   :  { %210 = vmatpush.bf16.msrb.mxu2 %v172_v17  ;;  %v175_v18 = vsel %vm41_vm0, %v161_v16, 0 }
  0xac   :  { %223 = vmatpush.bf16.msrb.mxu3 %v175_v18 }
  0xae   :  { %247 = vmatmul.msk.bf16.vlgmr.msrb.gmra.mxu2 %vm37_vm1, %v157_v9 }
  0xaf   :  { %248 = vmatmul.msk.bf16.vlgmr.msrb.gmra.mxu3 %vm37_vm1, %v157_v9 }
 0x124   :  { %v186_v19 = vpop.f32.mrf.mxu0 }
 0x125   :  { %229 = vst [vmem:[%s374_s6] sm:$0xff] %v186_v19  ;;  %v199_v20 = vpop.f32.mrf.mxu1 }
 0x126   :  { %230 = vst [vmem:[%s374_s6 + $0x8] sm:$0xff] %v199_v20 }
 0x12c   :  { %v188_v21 = vpop.f32.mrf.mxu0 }
 0x12d   :  { %v201_v22 = vpop.f32.mrf.mxu1 }
 0x131   :  { %v212_v23 = vpop.f32.mrf.mxu2 }
 0x132   :  { %231 = vst [vmem:[%s374_s6 + $0x10] sm:$0xff] %v212_v23  ;;  %v225_v24 = vpop.f32.mrf.mxu3 }
 0x133   :  { %232 = vst [vmem:[%s374_s6 + $0x18] sm:$0xff] %v225_v24 }
 0x139   :  { %v214_v25 = vpop.f32.mrf.mxu2 }
 0x13a   :  { %v227_v26 = vpop.f32.mrf.mxu3 }

// kernel: puno_forward.16
= control target key start
LH: loop header
LB: loop body
LE: loop exit
PB: predicated region body
PF: predicated region fallthrough
CT: control target
= control target key end

     0   :  { %v160_v3 = vmov 0   ;;  %vm36_vm0 = vcmask 130048   ;;  %s240_s0 = inlined_call_operand.vmem [shape: f32[16,512], index: 0, kind: input, shape index: {}]   ;;  %s241_s2 = inlined_call_operand.vmem [shape: f32[8,16], index: 2, kind: input, shape index: {}]   ;;  %s242_s3 = inlined_call_operand.vmem [shape: f32[8,1], index: 3, kind: input, shape index: {}]   ;;  %s243_s1 = inlined_call_operand.vmem [shape: f32[8,512], index: 1, kind: input, shape index: {}]   ;;  %s244_s4 = inlined_call_operand.vmem [shape: f32[8,512], index: 4, kind: output, shape index: {}]  }
   0x1   :  { %v20_v0 = vld [vmem:[%s240_s0] sm:$0xff]  ;;  %v21_v2 = vld [vmem:[%s240_s0 + $0x8] sm:$0xff]  ;;  %151 = vset.pattern.permute.xlu0 %v160_v3  ;;  %v22_v6 = vld [vmem:[%s240_s0 + $0x10] sm:$0xff] }
   0x2   :  { %v24_v1 = vld [vmem:[%s240_s0 + $0x20] sm:$0xff]  ;;  %v25_v5 = vld [vmem:[%s240_s0 + $0x28] sm:$0xff]  ;;  %v26_v7 = vld [vmem:[%s240_s0 + $0x30] sm:$0xff] }
   0x3   :  { %v28_v4 = vpack.c.bf16 %v24_v1, %v20_v0  ;;  %v29_v8 = vpack.c.bf16 %v25_v5, %v21_v2  ;;  %v30_v9 = vpack.c.bf16 %v26_v7, %v22_v6  ;;  %v23_v10 = vld [vmem:[%s240_s0 + $0x18] sm:$0xff]  ;;  %v18_v12 = vld [vmem:[%s241_s2] sm:$0xff]  ;;  %v33_v17 = vld [vmem:[%s243_s1 + $0x8] sm:$0xff] }
   0x4   :  { %v27_v11 = vld [vmem:[%s240_s0 + $0x38] sm:$0xff]  ;;  %v19_v14 = vpack.c.bf16 %v18_v12, %v18_v12  ;;  %v92_v15 = vld [vmem:[%s242_s3] sm:$0xff]  ;;  %v34_v26 = vld [vmem:[%s243_s1 + $0x10] sm:$0xff] }
   0x5   :  { %47 = vmatpush.bf16.msra.mxu0 %v28_v4  ;;  %v31_v13 = vpack.c.bf16 %v27_v11, %v23_v10  ;;  %60 = vmatpush.bf16.msra.mxu1 %v29_v8  ;;  %v32_v16 = vld [vmem:[%s243_s1] sm:$0xff]  ;;  %v35_v28 = vld [vmem:[%s243_s1 + $0x18] sm:$0xff] }
   0x6   :  { %73 = vmatpush.bf16.msra.mxu2 %v30_v9  ;;  %95 = vperm.xlu0 %151, %v92_v15  }
   0x7   :  { %86 = vmatpush.bf16.msra.mxu3 %v31_v13 }
   0x8   :  { %146 = vmatmul.msk.bf16.vlgmr.msra.gmra.mxu0 %vm36_vm0, %v19_v14  ;;  %147 = vmatmul.msk.bf16.vlgmr.msra.gmra.mxu1 %vm36_vm0, %v19_v14 }
   0x9   :  { %148 = vmatmul.msk.bf16.vlgmr.msra.gmra.mxu2 %vm36_vm0, %v19_v14 }
   0xa   :  { %149 = vmatmul.msk.bf16.vlgmr.msra.gmra.mxu3 %vm36_vm0, %v19_v14 }
  0x78   :  { %v96_v19 = vpop.permute.xlu0 %95 }
  0x85   :  { %v49_v18 = vpop.f32.mrf.mxu0  ;;  %v62_v21 = vpop.f32.mrf.mxu1 }
  0x86   :  { %v50_v20 = vadd.f32 %v49_v18, %v32_v16  ;;  %v63_v22 = vadd.f32 %v62_v21, %v33_v17 }
  0x88   :  { %v98_v23 = vadd.f32 %v96_v19, %v50_v20  ;;  %v99_v24 = vadd.f32 %v96_v19, %v63_v22 }
  0x8a   :  { %v102_v25 = vmul.f32 %v98_v23, %v98_v23  ;;  %v103_v27 = vmul.f32 %v99_v24, %v99_v24 }
  0x8c   :  { %v106_v29 = vmul.f32 %v102_v25, %v98_v23  ;;  %v75_v30 = vpop.f32.mrf.mxu2  ;;  %v107_v31 = vmul.f32 %v103_v27, %v99_v24 }
  0x8d   :  { %v76_v32 = vadd.f32 %v75_v30, %v34_v26  ;;  %v88_v33 = vpop.f32.mrf.mxu3  ;;  %v51_v34 = vpop.f32.mrf.mxu0 }
  0x8e   :  { %v110_v35 = vmul.f32 0.044715, %v106_v29  ;;  %v89_v36 = vadd.f32 %v88_v33, %v35_v28  ;;  %v64_v37 = vpop.f32.mrf.mxu1  ;;  %v111_v38 = vmul.f32 0.044715, %v107_v31 }
  0x8f   :  { %v100_v39 = vadd.f32 %v96_v19, %v76_v32 }
  0x90   :  { %v114_v40 = vadd.f32 %v110_v35, %v98_v23  ;;  %v101_v41 = vadd.f32 %v96_v19, %v89_v36  ;;  %v115_v42 = vadd.f32 %v111_v38, %v99_v24 }
  0x91   :  { %v104_v43 = vmul.f32 %v100_v39, %v100_v39 }
  0x92   :  { %v118_v44 = vmul.f32 0.7978846, %v114_v40  ;;  %v105_v45 = vmul.f32 %v101_v41, %v101_v41  ;;  %v119_v46 = vmul.f32 0.7978846, %v115_v42 }
  0x93   :  { %v108_v47 = vmul.f32 %v104_v43, %v100_v39 }
  0x94   :  { %152 = vtanh.f32 %v118_v44  ;;  %v109_v48 = vmul.f32 %v105_v45, %v101_v41  ;;  %v77_v49 = vpop.f32.mrf.mxu2 }
  0x95   :  { %154 = vtanh.f32 %v119_v46  ;;  %v112_v50 = vmul.f32 0.044715, %v108_v47  ;;  %v90_v51 = vpop.f32.mrf.mxu3 }
  0x96   :  { %v113_v52 = vmul.f32 0.044715, %v109_v48 }
  0x97   :  { %v116_v53 = vadd.f32 %v112_v50, %v100_v39 }
  0x98   :  { %v117_v54 = vadd.f32 %v113_v52, %v101_v41 }
  0x99   :  { %v120_v55 = vmul.f32 0.7978846, %v116_v53 }
  0x9a   :  { %v153_v56 = vpop.eup %152  ;;  %v121_v57 = vmul.f32 0.7978846, %v117_v54 }
  0x9b   :  { %v155_v58 = vpop.eup %154  ;;  %v126_v59 = vadd.f32 1.0, %v153_v56  ;;  %156 = vtanh.f32 %v120_v55 }
  0x9c   :  { %v127_v60 = vadd.f32 1.0, %v155_v58  ;;  %158 = vtanh.f32 %v121_v57 }
  0x9d   :  { %v130_v61 = vmul.f32 0.5, %v126_v59 }
  0x9e   :  { %v131_v62 = vmul.f32 0.5, %v127_v60 }
  0x9f   :  { %v134_v63 = vmul.f32 %v130_v61, %v98_v23 }
  0xa0   :  { %v135_v0 = vmul.f32 %v131_v62, %v99_v24 }
  0xa1   :  { %v157_v1 = vpop.eup %156  ;;  %138 = vst [vmem:[%s244_s4] sm:$0xff] %v134_v63 }
  0xa2   :  { %v159_v2 = vpop.eup %158  ;;  %139 = vst [vmem:[%s244_s4 + $0x8] sm:$0xff] %v135_v0  ;;  %v128_v3 = vadd.f32 1.0, %v157_v1 }
  0xa3   :  { %v129_v4 = vadd.f32 1.0, %v159_v2 }
  0xa4   :  { %v132_v5 = vmul.f32 0.5, %v128_v3 }
  0xa5   :  { %v133_v6 = vmul.f32 0.5, %v129_v4 }
  0xa6   :  { %v136_v7 = vmul.f32 %v132_v5, %v100_v39 }
  0xa7   :  { %v137_v8 = vmul.f32 %v133_v6, %v101_v41 }
  0xa8   :  { %140 = vst [vmem:[%s244_s4 + $0x10] sm:$0xff] %v136_v7 }
  0xa9   :  { %141 = vst [vmem:[%s244_s4 + $0x18] sm:$0xff] %v137_v8 }

// kernel: puno_forward.18
= control target key start
LH: loop header
LB: loop body
LE: loop exit
PB: predicated region body
PF: predicated region fallthrough
CT: control target
= control target key end

     0   :  { %v116_v3 = vmov 0   ;;  %vm36_vm0 = vcmask 130048   ;;  %s196_s0 = inlined_call_operand.vmem [shape: f32[16,512], index: 0, kind: input, shape index: {}]   ;;  %s197_s2 = inlined_call_operand.vmem [shape: f32[8,16], index: 2, kind: input, shape index: {}]   ;;  %s198_s3 = inlined_call_operand.vmem [shape: f32[8,1], index: 3, kind: input, shape index: {}]   ;;  %s199_s1 = inlined_call_operand.vmem [shape: f32[8,512], index: 1, kind: input, shape index: {}]   ;;  %s200_s4 = inlined_call_operand.vmem [shape: f32[8,512], index: 4, kind: output, shape index: {}]  }
   0x1   :  { %v20_v0 = vld [vmem:[%s196_s0] sm:$0xff]  ;;  %v21_v2 = vld [vmem:[%s196_s0 + $0x8] sm:$0xff]  ;;  %115 = vset.pattern.permute.xlu0 %v116_v3  ;;  %v22_v6 = vld [vmem:[%s196_s0 + $0x10] sm:$0xff] }
   0x2   :  { %v24_v1 = vld [vmem:[%s196_s0 + $0x20] sm:$0xff]  ;;  %v25_v5 = vld [vmem:[%s196_s0 + $0x28] sm:$0xff]  ;;  %v26_v7 = vld [vmem:[%s196_s0 + $0x30] sm:$0xff] }
   0x3   :  { %v28_v4 = vpack.c.bf16 %v24_v1, %v20_v0  ;;  %v29_v8 = vpack.c.bf16 %v25_v5, %v21_v2  ;;  %v30_v9 = vpack.c.bf16 %v26_v7, %v22_v6  ;;  %v23_v10 = vld [vmem:[%s196_s0 + $0x18] sm:$0xff]  ;;  %v18_v12 = vld [vmem:[%s197_s2] sm:$0xff]  ;;  %v33_v17 = vld [vmem:[%s199_s1 + $0x8] sm:$0xff] }
   0x4   :  { %v27_v11 = vld [vmem:[%s196_s0 + $0x38] sm:$0xff]  ;;  %v19_v14 = vpack.c.bf16 %v18_v12, %v18_v12  ;;  %v92_v15 = vld [vmem:[%s198_s3] sm:$0xff]  ;;  %v34_v25 = vld [vmem:[%s199_s1 + $0x10] sm:$0xff] }
   0x5   :  { %47 = vmatpush.bf16.msra.mxu0 %v28_v4  ;;  %v31_v13 = vpack.c.bf16 %v27_v11, %v23_v10  ;;  %60 = vmatpush.bf16.msra.mxu1 %v29_v8  ;;  %v32_v16 = vld [vmem:[%s199_s1] sm:$0xff]  ;;  %v35_v26 = vld [vmem:[%s199_s1 + $0x18] sm:$0xff] }
   0x6   :  { %73 = vmatpush.bf16.msra.mxu2 %v30_v9  ;;  %95 = vperm.xlu0 %115, %v92_v15  }
   0x7   :  { %86 = vmatpush.bf16.msra.mxu3 %v31_v13 }
   0x8   :  { %110 = vmatmul.msk.bf16.vlgmr.msra.gmra.mxu0 %vm36_vm0, %v19_v14  ;;  %111 = vmatmul.msk.bf16.vlgmr.msra.gmra.mxu1 %vm36_vm0, %v19_v14 }
   0x9   :  { %112 = vmatmul.msk.bf16.vlgmr.msra.gmra.mxu2 %vm36_vm0, %v19_v14 }
   0xa   :  { %113 = vmatmul.msk.bf16.vlgmr.msra.gmra.mxu3 %vm36_vm0, %v19_v14 }
  0x78   :  { %v96_v19 = vpop.permute.xlu0 %95 }
  0x85   :  { %v49_v18 = vpop.f32.mrf.mxu0  ;;  %v62_v21 = vpop.f32.mrf.mxu1 }
  0x86   :  { %v50_v20 = vadd.f32 %v49_v18, %v32_v16  ;;  %v63_v22 = vadd.f32 %v62_v21, %v33_v17 }
  0x88   :  { %v98_v23 = vadd.f32 %v96_v19, %v50_v20  ;;  %v99_v24 = vadd.f32 %v96_v19, %v63_v22 }
  0x8a   :  { %102 = vst [vmem:[%s200_s4] sm:$0xff] %v98_v23 }
  0x8b   :  { %103 = vst [vmem:[%s200_s4 + $0x8] sm:$0xff] %v99_v24 }
  0x8c   :  { %v75_v27 = vpop.f32.mrf.mxu2 }
  0x8d   :  { %v76_v28 = vadd.f32 %v75_v27, %v34_v25  ;;  %v88_v29 = vpop.f32.mrf.mxu3  ;;  %v51_v30 = vpop.f32.mrf.mxu0 }
  0x8e   :  { %v89_v31 = vadd.f32 %v88_v29, %v35_v26  ;;  %v64_v32 = vpop.f32.mrf.mxu1 }
  0x8f   :  { %v100_v33 = vadd.f32 %v96_v19, %v76_v28 }
  0x90   :  { %v101_v34 = vadd.f32 %v96_v19, %v89_v31 }
  0x91   :  { %104 = vst [vmem:[%s200_s4 + $0x10] sm:$0xff] %v100_v33 }
  0x92   :  { %105 = vst [vmem:[%s200_s4 + $0x18] sm:$0xff] %v101_v34 }
  0x94   :  { %v77_v35 = vpop.f32.mrf.mxu2 }
  0x95   :  { %v90_v36 = vpop.f32.mrf.mxu3 }

// kernel: puno_forward.19
= control target key start
LH: loop header
LB: loop body
LE: loop exit
PB: predicated region body
PF: predicated region fallthrough
CT: control target
= control target key end

     0   :  { %vm78_vm0 = vcmask 1043456   ;;  %v595_v3 = vmov 0   ;;  %vm71_vm1 = vcmask 64512   ;;  %vm324_vm2 = vcmask 130048   ;;  %s855_s0 = inlined_call_operand.vmem [shape: f32[8,512], index: 0, kind: input, shape index: {}]   ;;  %s856_s1 = inlined_call_operand.vmem [shape: f32[32,8], index: 1, kind: input, shape index: {}]   ;;  %s857_s2 = inlined_call_operand.vmem [shape: f32[32,1], index: 2, kind: input, shape index: {}]   ;;  %s858_s3 = inlined_call_operand.vmem [shape: f32[1,16], index: 3, kind: input, shape index: {}]   ;;  %s859_s6 = inlined_call_operand.<no memory space> [shape: f32[1,1], index: 6, kind: input, shape index: {}]   ;;  %s860_s4 = inlined_call_operand.<no memory space> [shape: f32[1,1], index: 4, kind: input, shape index: {}]   ;;  %s861_s5 = inlined_call_operand.vmem [shape: f32[1,16], index: 5, kind: input, shape index: {}]   ;;  %s862_s7 = inlined_call_operand.vmem [shape: f32[1,512], index: 7, kind: output, shape index: {0}]   ;;  %s863_s8 = inlined_call_operand.vmem [shape: f32[1,512], index: 8, kind: output, shape index: {1}]  }
   0x1   :  { %v39_v0 = vld [vmem:[%s855_s0] sm:$0xff]  ;;  %v40_v1 = vld [vmem:[%s855_s0 + $0x8] sm:$0xff]  ;;  %v41_v2 = vld [vmem:[%s855_s0 + $0x10] sm:$0xff]  ;;  %544 = vset.pattern.permute.xlu0 %v595_v3  ;;  %545 = vset.pattern.permute.xlu1 %v595_v3  ;;  %vm455_vm3 = vcmask 1040384   ;;  %vm457_vm4 = vcmask 1042434   ;;  %vm459_vm5 = vcmask 1041408  }
   0x2   :  { %v43_v4 = vpack.c.bf16 %v39_v0, %v39_v0  ;;  %v44_v5 = vpack.c.bf16 %v40_v1, %v40_v1  ;;  %v45_v6 = vpack.c.bf16 %v41_v2, %v41_v2  ;;  %v42_v7 = vld [vmem:[%s855_s0 + $0x18] sm:$0xff]  ;;  %v33_v8 = vld [vmem:[%s856_s1] sm:$0xff]  ;;  %v34_v9 = vld [vmem:[%s856_s1 + $0x8] sm:$0xff]  ;;  %546 = vset.pattern.permute.xlu2 %v595_v3 }
   0x3   :  { %v46_v10 = vpack.c.bf16 %v42_v7, %v42_v7  ;;  %v47_v11 = vld [vmem:[%s857_s2] sm:$0xff]  ;;  %v37_v15 = vpack.c.bf16 %v34_v9, %v33_v8  ;;  %v49_v16 = vld [vmem:[%s857_s2 + $0x10] sm:$0xff]  ;;  %v48_v18 = vld [vmem:[%s857_s2 + $0x8] sm:$0xff] }
   0x4   :  { %v80_v12 = vsel %vm78_vm0, %v43_v4, 0  ;;  %v83_v13 = vsel %vm78_vm0, %v44_v5, 0  ;;  %v86_v14 = vsel %vm78_vm0, %v45_v6, 0  ;;  %53 = vperm.xlu0 %544, %v47_v11   ;;  %63 = vperm.xlu1 %545, %v49_v16   ;;  %v50_v19 = vld [vmem:[%s857_s2 + $0x18] sm:$0xff]  ;;  %v35_v20 = vld [vmem:[%s856_s1 + $0x10] sm:$0xff] }
   0x5   :  { %98 = vmatpush.bf16.msra.mxu0 %v80_v12  ;;  %117 = vmatpush.bf16.msra.mxu1 %v83_v13  ;;  %v89_v17 = vsel %vm78_vm0, %v46_v10, 0  ;;  %v36_v21 = vld [vmem:[%s856_s1 + $0x18] sm:$0xff] }
   0x6   :  { %136 = vmatpush.bf16.msra.mxu2 %v86_v14  ;;  %155 = vmatpush.bf16.msra.mxu3 %v89_v17  ;;  %v38_v22 = vpack.c.bf16 %v36_v21, %v35_v20 }
   0x8   :  { %527 = vmatmul.msk.bf16.vlgmr.msra.gmra.mxu0 %vm71_vm1, %v37_v15  ;;  %529 = vmatmul.msk.bf16.vlgmr.msra.gmra.mxu1 %vm71_vm1, %v37_v15 }
   0x9   :  { %531 = vmatmul.msk.bf16.vlgmr.msra.gmra.mxu2 %vm71_vm1, %v37_v15  ;;  %533 = vmatmul.msk.bf16.vlgmr.msra.gmra.mxu3 %vm71_vm1, %v37_v15 }
   0xc   :  { %58 = vperm.xlu0 %544, %v48_v18   ;;  %68 = vperm.xlu1 %545, %v50_v19  }
  0x18   :  { %528 = vmatmul.msk.bf16.gmra.mxu0 %vm71_vm1, %v38_v22  ;;  %530 = vmatmul.msk.bf16.gmra.mxu1 %vm71_vm1, %v38_v22 }
  0x19   :  { %532 = vmatmul.msk.bf16.gmra.mxu2 %vm71_vm1, %v38_v22  ;;  %534 = vmatmul.msk.bf16.gmra.mxu3 %vm71_vm1, %v38_v22 }
  0x76   :  { %v54_v23 = vpop.permute.xlu0 %53  ;;  %v64_v53 = vpop.permute.xlu1 %63 }
  0x7e   :  { %v59_v32 = vpop.permute.xlu0 %58 }
  0x85   :  { %v100_v24 = vpop.f32.mrf.mxu0  ;;  %v119_v25 = vpop.f32.mrf.mxu1 }
  0x86   :  { %v689_v26 = vadd.f32 %v100_v24, %v54_v23  ;;  %v691_v27 = vadd.f32 %v119_v25, %v54_v23 }
  0x88   :  { %v167_v28 = vmul.f32 %v689_v26, %v689_v26  ;;  %v168_v29 = vmul.f32 %v691_v27, %v691_v27 }
  0x8a   :  { %v183_v30 = vmul.f32 %v167_v28, %v689_v26  ;;  %v184_v31 = vmul.f32 %v168_v29, %v691_v27  ;;  %v69_v28 = vpop.permute.xlu1 %68 }
  0x8c   :  { %v199_v33 = vmul.f32 0.044715, %v183_v30  ;;  %v200_v34 = vmul.f32 0.044715, %v184_v31  ;;  %v138_v35 = vpop.f32.mrf.mxu2  ;;  %v157_v36 = vpop.f32.mrf.mxu3 }
  0x8d   :  { %v699_v37 = vadd.f32 %v138_v35, %v54_v23  ;;  %v701_v38 = vadd.f32 %v157_v36, %v54_v23  ;;  %v102_v39 = vpop.f32.mrf.mxu0  ;;  %v121_v40 = vpop.f32.mrf.mxu1 }
  0x8e   :  { %v215_v41 = vadd.f32 %v199_v33, %v689_v26  ;;  %v216_v42 = vadd.f32 %v200_v34, %v691_v27  ;;  %v705_v43 = vadd.f32 %v102_v39, %v59_v32  ;;  %v707_v44 = vadd.f32 %v121_v40, %v59_v32 }
  0x8f   :  { %v169_v45 = vmul.f32 %v699_v37, %v699_v37  ;;  %v170_v46 = vmul.f32 %v701_v38, %v701_v38 }
  0x90   :  { %v171_v47 = vmul.f32 %v705_v43, %v705_v43  ;;  %v172_v48 = vmul.f32 %v707_v44, %v707_v44  ;;  %v231_v49 = vmul.f32 0.7978846, %v215_v41  ;;  %v232_v50 = vmul.f32 0.7978846, %v216_v42 }
  0x91   :  { %v185_v51 = vmul.f32 %v169_v45, %v699_v37  ;;  %v186_v52 = vmul.f32 %v170_v46, %v701_v38 }
  0x92   :  { %v187_v54 = vmul.f32 %v171_v47, %v705_v43  ;;  %v188_v55 = vmul.f32 %v172_v48, %v707_v44  ;;  %547 = vtanh.f32 %v231_v49 }
  0x93   :  { %v201_v56 = vmul.f32 0.044715, %v185_v51  ;;  %v202_v57 = vmul.f32 0.044715, %v186_v52  ;;  %549 = vtanh.f32 %v232_v50 }
  0x94   :  { %v203_v58 = vmul.f32 0.044715, %v187_v54  ;;  %v204_v59 = vmul.f32 0.044715, %v188_v55  ;;  %v140_v60 = vpop.f32.mrf.mxu2  ;;  %v159_v61 = vpop.f32.mrf.mxu3 }
  0x95   :  { %v217_v62 = vadd.f32 %v201_v56, %v699_v37  ;;  %v218_v63 = vadd.f32 %v202_v57, %v701_v38  ;;  %v723_v0 = vadd.f32 %v140_v60, %v59_v32  ;;  %v725_v1 = vadd.f32 %v159_v61, %v59_v32  ;;  %v105_v2 = vpop.f32.mrf.mxu0  ;;  %v124_v3 = vpop.f32.mrf.mxu1 }
  0x96   :  { %v219_v4 = vadd.f32 %v203_v58, %v705_v43  ;;  %v220_v5 = vadd.f32 %v204_v59, %v707_v44  ;;  %v729_v6 = vadd.f32 %v105_v2, %v64_v53  ;;  %v731_v7 = vadd.f32 %v124_v3, %v64_v53 }
  0x97   :  { %v173_v8 = vmul.f32 %v723_v0, %v723_v0  ;;  %v174_v9 = vmul.f32 %v725_v1, %v725_v1  ;;  %v233_v10 = vmul.f32 0.7978846, %v217_v62  ;;  %v234_v11 = vmul.f32 0.7978846, %v218_v63 }
  0x98   :  { %v548_v12 = vpop.eup %547  ;;  %v175_v13 = vmul.f32 %v729_v6, %v729_v6  ;;  %v176_v14 = vmul.f32 %v731_v7, %v731_v7  ;;  %v235_v15 = vmul.f32 0.7978846, %v219_v4  ;;  %v236_v16 = vmul.f32 0.7978846, %v220_v5 }
  0x99   :  { %v550_v17 = vpop.eup %549  ;;  %v189_v18 = vmul.f32 %v173_v8, %v723_v0  ;;  %v190_v19 = vmul.f32 %v174_v9, %v725_v1  ;;  %v263_v20 = vadd.f32 1.0, %v548_v12  ;;  %551 = vtanh.f32 %v233_v10 }
  0x9a   :  { %v191_v21 = vmul.f32 %v175_v13, %v729_v6  ;;  %v192_v22 = vmul.f32 %v176_v14, %v731_v7  ;;  %553 = vtanh.f32 %v235_v15  ;;  %v264_v23 = vadd.f32 1.0, %v550_v17 }
  0x9b   :  { %v205_v24 = vmul.f32 0.044715, %v189_v18  ;;  %v206_v25 = vmul.f32 0.044715, %v190_v19  ;;  %v279_v29 = vmul.f32 0.5, %v263_v20  ;;  %555 = vtanh.f32 %v236_v16 }
  0x9c   :  { %v207_v30 = vmul.f32 0.044715, %v191_v21  ;;  %v208_v31 = vmul.f32 0.044715, %v192_v22  ;;  %v143_v32 = vpop.f32.mrf.mxu2  ;;  %v162_v33 = vpop.f32.mrf.mxu3  ;;  %v280_v34 = vmul.f32 0.5, %v264_v23  ;;  %557 = vtanh.f32 %v234_v11 }
  0x9d   :  { %v221_v35 = vadd.f32 %v205_v24, %v723_v0  ;;  %v747_v36 = vadd.f32 %v206_v25, %v725_v1  ;;  %v749_v39 = vadd.f32 %v143_v32, %v64_v53  ;;  %v751_v40 = vadd.f32 %v162_v33, %v64_v53  ;;  %v107_v41 = vpop.f32.mrf.mxu0  ;;  %v126_v42 = vpop.f32.mrf.mxu1 }
  0x9e   :  { %v223_v45 = vadd.f32 %v207_v30, %v729_v6  ;;  %v224_v46 = vadd.f32 %v208_v31, %v731_v7  ;;  %v755_v47 = vadd.f32 %v107_v41, %v69_v28  ;;  %v757_v48 = vadd.f32 %v126_v42, %v69_v28 }
  0x9f   :  { %v552_v49 = vpop.eup %551  ;;  %v177_v50 = vmul.f32 %v749_v39, %v749_v39  ;;  %v178_v51 = vmul.f32 %v751_v40, %v751_v40  ;;  %v295_v52 = vmul.f32 %v279_v29, %v689_v26  ;;  %v296_v53 = vmul.f32 %v280_v34, %v691_v27 }
  0xa0   :  { %v554_v54 = vpop.eup %553  ;;  %v239_v55 = vmul.f32 0.7978846, %v223_v45  ;;  %v240_v56 = vmul.f32 0.7978846, %v224_v46  ;;  %v179_v57 = vmul.f32 %v755_v47, %v755_v47  ;;  %v180_v58 = vmul.f32 %v757_v48, %v757_v48 }
  0xa1   :  { %v556_v59 = vpop.eup %555  ;;  %v193_v60 = vmul.f32 %v177_v50, %v749_v39  ;;  %v194_v61 = vmul.f32 %v178_v51, %v751_v40  ;;  %v267_v62 = vadd.f32 1.0, %v554_v54  ;;  %v237_v63 = vmul.f32 0.7978846, %v221_v35  ;;  %v311_v51 = vld [vmem:[%s858_s3] sm:$0x1] }
  0xa2   :  { %v771_v2 = vpop.eup %557  ;;  %559 = vtanh.f32 %v239_v55  ;;  %v195_v26 = vmul.f32 %v179_v57, %v755_v47  ;;  %v196_v27 = vmul.f32 %v180_v58, %v757_v48  ;;  %v268_v3 = vadd.f32 1.0, %v556_v59 }
  0xa3   :  { %561 = vtanh.f32 %v240_v56  ;;  %v209_v4 = vmul.f32 0.044715, %v193_v60  ;;  %v210_v5 = vmul.f32 0.044715, %v194_v61  ;;  %v283_v8 = vmul.f32 0.5, %v267_v62 }
  0xa4   :  { %v211_v9 = vmul.f32 0.044715, %v195_v26  ;;  %v212_v10 = vmul.f32 0.044715, %v196_v27  ;;  %v145_v11 = vpop.f32.mrf.mxu2  ;;  %v164_v12 = vpop.f32.mrf.mxu3  ;;  %v284_v13 = vmul.f32 0.5, %v268_v3  ;;  %563 = vtanh.f32 %v237_v63 }
  0xa5   :  { %v225_v14 = vadd.f32 %v209_v4, %v749_v39  ;;  %v226_v15 = vadd.f32 %v210_v5, %v751_v40  ;;  %v777_v16 = vadd.f32 %v145_v11, %v69_v28  ;;  %v779_v17 = vadd.f32 %v164_v12, %v69_v28 }
  0xa6   :  { %v227_v18 = vadd.f32 %v211_v9, %v755_v47  ;;  %v228_v19 = vadd.f32 %v212_v10, %v757_v48  ;;  %v299_v20 = vmul.f32 %v283_v8, %v705_v43  ;;  %v300_v21 = vmul.f32 %v284_v13, %v707_v44 }
  0xa7   :  { %v241_v22 = vmul.f32 0.7978846, %v225_v14  ;;  %v242_v23 = vmul.f32 0.7978846, %v226_v15  ;;  %v181_v24 = vmul.f32 %v777_v16, %v777_v16  ;;  %v182_v25 = vmul.f32 %v779_v17, %v779_v17 }
  0xa8   :  { %v560_v29 = vpop.eup %559  ;;  %v243_v30 = vmul.f32 0.7978846, %v227_v18  ;;  %v244_v28 = vmul.f32 0.7978846, %v228_v19  ;;  %v313_v31 = vpack.c.bf16 %v299_v20, %v295_v52  ;;  %v314_v32 = vpack.c.bf16 %v300_v21, %v296_v53 }
  0xa9   :  { %v562_v33 = vpop.eup %561  ;;  %565 = vtanh.f32 %v241_v22  ;;  %v197_v34 = vmul.f32 %v181_v24, %v777_v16  ;;  %v198_v43 = vmul.f32 %v182_v25, %v779_v17  ;;  %v265_v35 = vadd.f32 1.0, %v552_v49 }
  0xaa   :  { %v564_v44 = vpop.eup %563  ;;  %567 = vtanh.f32 %v242_v23  ;;  %335 = vmatpush.bf16.msrb.mxu0 %v313_v31  ;;  %348 = vmatpush.bf16.msrb.mxu1 %v314_v32  ;;  %v238_v41 = vmul.f32 0.7978846, %v747_v36  ;;  %v271_v54 = vadd.f32 1.0, %v560_v29  ;;  %v272_v55 = vadd.f32 1.0, %v562_v33 }
  0xab   :  { %569 = vtanh.f32 %v243_v30  ;;  %v213_v42 = vmul.f32 0.044715, %v197_v34  ;;  %v214_v45 = vmul.f32 0.044715, %v198_v43  ;;  %v269_v46 = vadd.f32 1.0, %v564_v44 }
  0xac   :  { %571 = vtanh.f32 %v244_v28  ;;  %v281_v50 = vmul.f32 0.5, %v265_v35  ;;  %v312_v58 = vpack.c.bf16 %v311_v51, %v311_v51  ;;  %v266_v62 = vadd.f32 1.0, %v771_v2 }
  0xad   :  { %v229_v52 = vadd.f32 %v213_v42, %v777_v16  ;;  %v230_v53 = vadd.f32 %v214_v45, %v779_v17  ;;  %573 = vtanh.f32 %v238_v41  ;;  %v285_v49 = vmul.f32 0.5, %v269_v46 }
  0xae   :  { %v297_v60 = vmul.f32 %v281_v50, %v699_v37  ;;  %536 = vmatmul.msk.bf16.vlgmr.msrb.gmra.mxu1 %vm324_vm2, %v312_v58  ;;  %535 = vmatmul.msk.bf16.vlgmr.msrb.gmra.mxu0 %vm324_vm2, %v312_v58  ;;  %v16_v26 = vstv %s859_s6  ;;  %v14_v27 = vstv %s860_s4  ;;  %v287_v37 = vmul.f32 0.5, %v271_v54 }
  0xaf   :  { %v566_v56 = vpop.eup %565  ;;  %v245_v36 = vmul.f32 0.7978846, %v229_v52  ;;  %v246_v57 = vmul.f32 0.7978846, %v230_v53  ;;  %v301_v61 = vmul.f32 %v285_v49, %v723_v0  ;;  %17 = vst [vmem:[#allocation3] sm:$0x1] %v16_v26 }
  0xb0   :  { %v568_v59 = vpop.eup %567  ;;  %v288_v5 = vmul.f32 0.5, %v272_v55  ;;  %v273_v8 = vadd.f32 1.0, %v566_v56  ;;  %15 = vst [vmem:[#allocation2] sm:$0x1] %v14_v27  ;;  %v282_v12 = vmul.f32 0.5, %v266_v62  ;;  %v303_v15 = vmul.f32 %v287_v37, %v729_v6 }
  0xb1   :  { %v570_v63 = vpop.eup %569  ;;  %575 = vtanh.f32 %v245_v36  ;;  %v315_v0 = vpack.c.bf16 %v301_v61, %v297_v60  ;;  %v274_v13 = vadd.f32 1.0, %v568_v59 }
  0xb2   :  { %v572_v3 = vpop.eup %571  ;;  %v275_v4 = vadd.f32 1.0, %v570_v63  ;;  %577 = vtanh.f32 %v246_v57  ;;  %v304_v21 = vmul.f32 %v288_v5, %v731_v7  ;;  %v289_v22 = vmul.f32 0.5, %v273_v8  ;;  %v380_v7 = vld [vmem:[%s861_s5] sm:$0x1] }
  0xb3   :  { %v574_v2 = vpop.eup %573  ;;  %v276_v9 = vadd.f32 1.0, %v572_v3  ;;  %361 = vmatpush.bf16.msrb.mxu2 %v315_v0  ;;  %v298_v29 = vmul.f32 %v282_v12, %v701_v38  ;;  %v290_v31 = vmul.f32 0.5, %v274_v13  ;;  %v381_v35 = vpack.c.bf16 %v380_v7, %v380_v7 }
  0xb4   :  { %v291_v10 = vmul.f32 0.5, %v275_v4  ;;  %v270_v11 = vadd.f32 1.0, %v574_v2  ;;  %v305_v43 = vmul.f32 %v289_v22, %v749_v39  ;;  %v462_v63 = vlaneseq }
  0xb5   :  { %v292_v14 = vmul.f32 0.5, %v276_v9 }
  0xb6   :  { %v307_v18 = vmul.f32 %v291_v10, %v755_v47  ;;  %v286_v19 = vmul.f32 0.5, %v270_v11  ;;  %537 = vmatmul.msk.bf16.vlgmr.msrb.gmra.mxu2 %vm324_vm2, %v312_v58  ;;  %v386_v47 = vld [vmem:[#allocation3] sm:$0x1]  ;;  %vm833_vm6 = vcmp.lt.s32.totalorder %v462_v63, 512 }
  0xb7   :  { %v576_v20 = vpop.eup %575  ;;  %v308_v23 = vmul.f32 %v292_v14, %v757_v48  ;;  %389 = vperm.xlu2 %546, %v386_v47   ;;  %v317_v45 = vld [vmem:[#allocation2] sm:$0x1] }
  0xb8   :  { %v578_v24 = vpop.eup %577  ;;  %v277_v25 = vadd.f32 1.0, %v576_v20  ;;  %v302_v30 = vmul.f32 %v286_v19, %v725_v1  ;;  %v382_v28 = vpack.c.bf16 %v307_v18, %v303_v15  ;;  %v306_v1 = vmul.f32 %v290_v31, %v751_v40 }
  0xb9   :  { %v278_v6 = vadd.f32 1.0, %v578_v24  ;;  %v383_v32 = vpack.c.bf16 %v308_v23, %v304_v21 }
  0xba   :  { %v293_v33 = vmul.f32 0.5, %v277_v25  ;;  %v316_v34 = vpack.c.bf16 %v302_v30, %v298_v29  ;;  %403 = vmatpush.bf16.msra.mxu0 %v382_v28 }
  0xbb   :  { %v294_v48 = vmul.f32 0.5, %v278_v6  ;;  %416 = vmatpush.bf16.msra.mxu1 %v383_v32 }
  0xbc   :  { %v309_v38 = vmul.f32 %v293_v33, %v777_v16  ;;  %374 = vmatpush.bf16.msrb.mxu3 %v316_v34 }
  0xbd   :  { %v310_v44 = vmul.f32 %v294_v48, %v779_v17 }
  0xbe   :  { %v384_v41 = vpack.c.bf16 %v309_v38, %v305_v43  ;;  %540 = vmatmul.msk.bf16.vlgmr.msra.gmra.mxu1 %vm324_vm2, %v381_v35  ;;  %539 = vmatmul.msk.bf16.vlgmr.msra.gmra.mxu0 %vm324_vm2, %v381_v35 }
  0xbf   :  { %538 = vmatmul.msk.bf16.vlgmr.msrb.gmra.mxu3 %vm324_vm2, %v312_v58  ;;  %v385_v42 = vpack.c.bf16 %v310_v44, %v306_v1  ;;  %320 = vperm.xlu2 %546, %v317_v45  }
  0xc0   :  { %429 = vmatpush.bf16.msra.mxu2 %v384_v41 }
  0xc1   :  { %442 = vmatpush.bf16.msra.mxu3 %v385_v42 }
  0xc6   :  { %541 = vmatmul.msk.bf16.vlgmr.msra.gmra.mxu2 %vm324_vm2, %v381_v35 }
  0xcf   :  { %542 = vmatmul.msk.bf16.vlgmr.msra.gmra.mxu3 %vm324_vm2, %v381_v35 }
 0x111   :  { %v390_v39 = vpop.permute.xlu2 %389 }
 0x112   :  { %v392_v53 = vperm.slane %v390_v39, 0 }
 0x119   :  { %v321_v17 = vpop.permute.xlu2 %320 }
 0x11a   :  { %v323_v51 = vperm.slane %v321_v17, 0 }
 0x12b   :  { %v350_v40 = vpop.f32.mrf.mxu1  ;;  %v337_v16 = vpop.f32.mrf.mxu0 }
 0x12c   :  { %v351_v54 = vadd.f32 %v350_v40, %v323_v51  ;;  %v338_v58 = vadd.f32 %v337_v16, %v323_v51 }
 0x12e   :  { %v452_v59 = vrot.slane %v351_v54, 7 }
 0x130   :  { %v456_v4 = vsel %vm455_vm3, %v338_v58, %v452_v59 }
 0x133   :  { %v352_v46 = vpop.f32.mrf.mxu1  ;;  %v339_v50 = vpop.f32.mrf.mxu0 }
 0x139   :  { %v363_v52 = vpop.f32.mrf.mxu2 }
 0x13a   :  { %v364_v36 = vadd.f32 %v363_v52, %v323_v51 }
 0x13b   :  { %v418_v55 = vpop.f32.mrf.mxu1  ;;  %v405_v56 = vpop.f32.mrf.mxu0 }
 0x13c   :  { %v827_v49 = vadd.f32 %v418_v55, %v392_v53  ;;  %v830_v62 = vadd.f32 %v405_v56, %v392_v53  ;;  %v453_v27 = vrot.slane %v364_v36, 6 }
 0x13e   :  { %v472_v57 = vand.u32 2147483647, %v827_v49  ;;  %v471_v2 = vand.u32 2147483647, %v830_v62  ;;  %v468_v35 = vmax.f32 %v827_v49, 0.0  ;;  %v467_v46 = vmax.f32 %v830_v62, 0.0 }
 0x140   :  { %v476_v3 = vsub.f32 0.0, %v472_v57  ;;  %v475_v14 = vsub.f32 0.0, %v471_v2 }
 0x141   :  { %v365_v61 = vpop.f32.mrf.mxu2 }
 0x142   :  { %v376_v60 = vpop.f32.mrf.mxu3  ;;  %v481_v11 = vmul.f32 1.442695, %v476_v3  ;;  %v479_v19 = vmul.f32 1.442695, %v475_v14 }
 0x143   :  { %v377_v26 = vadd.f32 %v376_v60, %v323_v51  ;;  %v420_v5 = vpop.f32.mrf.mxu1  ;;  %v407_v9 = vpop.f32.mrf.mxu0 }
 0x144   :  { %579 = vpow2.f32 %v481_v11 }
 0x145   :  { %v454_v37 = vrot.slane %v377_v26, 5  ;;  %581 = vpow2.f32 %v479_v19 }
 0x147   :  { %v458_v8 = vsel %vm457_vm4, %v453_v27, %v454_v37 }
 0x148   :  { %v460_v10 = vsel %vm459_vm5, %v456_v4, %v458_v8 }
 0x149   :  { %466 = vst.msk [vmem:[%s862_s7] sm:$0xf] %vm833_vm6, %v460_v10  ;;  %v431_v13 = vpop.f32.mrf.mxu2 }
 0x14a   :  { %v378_v12 = vpop.f32.mrf.mxu3  ;;  %v432_v15 = vadd.f32 %v431_v13, %v392_v53  ;;  %v580_v24 = vpop.eup %579 }
 0x14b   :  { %v488_v30 = vadd.f32 1.0, %v580_v24  ;;  %v582_v31 = vpop.eup %581 }
 0x14c   :  { %v473_v18 = vand.u32 2147483647, %v432_v15  ;;  %v487_v34 = vadd.f32 1.0, %v582_v31  ;;  %v469_v41 = vmax.f32 %v432_v15, 0.0 }
 0x14e   :  { %v477_v20 = vsub.f32 0.0, %v473_v18 }
 0x150   :  { %v483_v21 = vmul.f32 1.442695, %v477_v20 }
 0x151   :  { %v433_v23 = vpop.f32.mrf.mxu2 }
 0x152   :  { %v444_v22 = vpop.f32.mrf.mxu3  ;;  %583 = vpow2.f32 %v483_v21 }
 0x153   :  { %v445_v25 = vadd.f32 %v444_v22, %v392_v53  ;;  %585 = vlog2.f32 %v488_v30 }
 0x155   :  { %v474_v29 = vand.u32 2147483647, %v445_v25  ;;  %v470_v17 = vmax.f32 %v445_v25, 0.0 }
 0x157   :  { %v478_v28 = vsub.f32 0.0, %v474_v29 }
 0x158   :  { %v584_v6 = vpop.eup %583 }
 0x159   :  { %v485_v32 = vmul.f32 1.442695, %v478_v28  ;;  %v489_v47 = vadd.f32 1.0, %v584_v6  ;;  %v586_v7 = vpop.eup %585 }
 0x15a   :  { %v446_v33 = vpop.f32.mrf.mxu3  ;;  %v494_v1 = vmul.f32 0.6931472, %v586_v7 }
 0x15b   :  { %587 = vpow2.f32 %v485_v32 }
 0x15c   :  { %589 = vlog2.f32 %v489_v47  ;;  %v500_v45 = vadd.f32 %v494_v1, %v468_v35 }
 0x15d   :  { %591 = vlog2.f32 %v487_v34 }
 0x15e   :  { %v504_v50 = vadd.f32 1e-06, %v500_v45 }
 0x160   :  { %v511_v55 = vrot.slane %v504_v50, 7 }
 0x161   :  { %v588_v48 = vpop.eup %587 }
 0x162   :  { %v590_v43 = vpop.eup %589  ;;  %v490_v38 = vadd.f32 1.0, %v588_v48 }
 0x163   :  { %v496_v44 = vmul.f32 0.6931472, %v590_v43  ;;  %v592_v42 = vpop.eup %591 }
 0x164   :  { %593 = vlog2.f32 %v490_v38  ;;  %v492_v40 = vmul.f32 0.6931472, %v592_v42 }
 0x165   :  { %v501_v39 = vadd.f32 %v496_v44, %v469_v41 }
 0x166   :  { %v499_v54 = vadd.f32 %v492_v40, %v467_v46 }
 0x167   :  { %v505_v51 = vadd.f32 1e-06, %v501_v39 }
 0x168   :  { %v503_v58 = vadd.f32 1e-06, %v499_v54 }
 0x169   :  { %v512_v56 = vrot.slane %v505_v51, 6 }
 0x16a   :  { %v594_v16 = vpop.eup %593  ;;  %v514_v59 = vsel %vm455_vm3, %v503_v58, %v511_v55 }
 0x16b   :  { %v498_v52 = vmul.f32 0.6931472, %v594_v16 }
 0x16d   :  { %v502_v53 = vadd.f32 %v498_v52, %v470_v17 }
 0x16f   :  { %v506_v36 = vadd.f32 1e-06, %v502_v53 }
 0x171   :  { %v513_v57 = vrot.slane %v506_v36, 5 }
 0x173   :  { %v515_v49 = vsel %vm457_vm4, %v512_v56, %v513_v57 }
 0x174   :  { %v516_v60 = vsel %vm459_vm5, %v514_v59, %v515_v49 }
 0x175   :  { %518 = vst.msk [vmem:[%s863_s8] sm:$0xf] %vm833_vm6, %v516_v60 }

// kernel: puno_forward.15
= control target key start
LH: loop header
LB: loop body
LE: loop exit
PB: predicated region body
PF: predicated region fallthrough
CT: control target
= control target key end

     0   :  { %vm20_vm0 = vcmask 261120   ;;  %vm37_vm1 = vcmask 123904   ;;  %s1784_s1 = inlined_call_operand.vmem [shape: f32[32,32,16], index: 1, kind: input, shape index: {}]   ;;  %s1785_s0 = inlined_call_operand.vmem [shape: f32[32,2,32], index: 0, kind: input, shape index: {}]   ;;  %s1786_s2 = inlined_call_operand.vmem [shape: f32[32,2,16], index: 2, kind: output, shape index: {}]  }
   0x1   :  { %v16_v0 = vld [vmem:[%s1784_s1 + $0x10] sm:$0xff]  ;;  %v17_v1 = vld [vmem:[%s1784_s1 + $0x18] sm:$0xff]  ;;  %v14_v11 = vld [vmem:[%s1784_s1] sm:$0xff] }
   0x2   :  { %v915_v2 = vld [vmem:[%s1784_s1 + $0x30] sm:$0xff]  ;;  %v19_v3 = vpack.c.bf16 %v17_v1, %v16_v0  ;;  %v916_v4 = vld [vmem:[%s1784_s1 + $0x38] sm:$0xff]  ;;  %v15_v13 = vld [vmem:[%s1784_s1 + $0x8] sm:$0xff] }
   0x3   :  { %v922_v5 = vld [vmem:[%s1784_s1 + $0x50] sm:$0xff]  ;;  %v923_v6 = vld [vmem:[%s1784_s1 + $0x58] sm:$0xff]  ;;  %v48_v7 = vpack.c.bf16 %v916_v4, %v915_v2  ;;  %v913_v14 = vld [vmem:[%s1784_s1 + $0x20] sm:$0xff]  ;;  %v18_v16 = vpack.c.bf16 %v15_v13, %v14_v11 }
   0x4   :  { %v76_v8 = vpack.c.bf16 %v923_v6, %v922_v5  ;;  %v929_v9 = vld [vmem:[%s1784_s1 + $0x70] sm:$0xff]  ;;  %v930_v10 = vld [vmem:[%s1784_s1 + $0x78] sm:$0xff]  ;;  %30 = vmatpush.bf16.msra.mxu0 %v19_v3  ;;  %v914_v15 = vld [vmem:[%s1784_s1 + $0x28] sm:$0xff] }
   0x5   :  { %v104_v12 = vpack.c.bf16 %v930_v10, %v929_v9  ;;  %58 = vmatpush.bf16.msra.mxu1 %v48_v7  ;;  %v47_v17 = vpack.c.bf16 %v914_v15, %v913_v14  ;;  %v920_v18 = vld [vmem:[%s1784_s1 + $0x40] sm:$0xff]  ;;  %v921_v19 = vld [vmem:[%s1784_s1 + $0x48] sm:$0xff]  ;;  %v950_v29 = vld [vmem:[%s1784_s1 + $0xd0] sm:$0xff] }
   0x6   :  { %86 = vmatpush.bf16.msra.mxu2 %v76_v8  ;;  %v927_v20 = vld [vmem:[%s1784_s1 + $0x60] sm:$0xff]  ;;  %v75_v21 = vpack.c.bf16 %v921_v19, %v920_v18  ;;  %v928_v22 = vld [vmem:[%s1784_s1 + $0x68] sm:$0xff]  ;;  %v951_v32 = vld [vmem:[%s1784_s1 + $0xd8] sm:$0xff] }
   0x7   :  { %114 = vmatpush.bf16.msra.mxu3 %v104_v12  ;;  %v12_v23 = vld [vmem:[%s1785_s0] sm:$0x3]  ;;  %v912_v24 = vld [vmem:[%s1785_s0 + $0x2] sm:$0x3]  ;;  %v103_v25 = vpack.c.bf16 %v928_v22, %v927_v20  ;;  %v919_v27 = vld [vmem:[%s1785_s0 + $0x4] sm:$0x3]  ;;  %v188_v36 = vpack.c.bf16 %v951_v32, %v950_v29 }
   0x8   :  { %v13_v26 = vpack.c.bf16 %v12_v23, %v12_v23  ;;  %v926_v28 = vld [vmem:[%s1785_s0 + $0x6] sm:$0x3]  ;;  %31 = vmatpush.bf16.msra.mxu0 %v18_v16  ;;  %v41_v30 = vpack.c.bf16 %v912_v24, %v912_v24  ;;  %v69_v31 = vpack.c.bf16 %v919_v27, %v919_v27  ;;  %v957_v33 = vld [vmem:[%s1784_s1 + $0xf0] sm:$0xff]  ;;  %v958_v34 = vld [vmem:[%s1784_s1 + $0xf8] sm:$0xff] }
   0x9   :  { %59 = vmatpush.bf16.msra.mxu1 %v47_v17  ;;  %v97_v35 = vpack.c.bf16 %v926_v28, %v926_v28  ;;  %v936_v37 = vld [vmem:[%s1784_s1 + $0x90] sm:$0xff]  ;;  %v937_v38 = vld [vmem:[%s1784_s1 + $0x98] sm:$0xff]  ;;  %v216_v40 = vpack.c.bf16 %v958_v34, %v957_v33  ;;  %v948_v43 = vld [vmem:[%s1784_s1 + $0xc0] sm:$0xff] }
   0xa   :  { %87 = vmatpush.bf16.msra.mxu2 %v75_v21  ;;  %v943_v39 = vld [vmem:[%s1784_s1 + $0xb0] sm:$0xff]  ;;  %v132_v41 = vpack.c.bf16 %v937_v38, %v936_v37  ;;  %v944_v42 = vld [vmem:[%s1784_s1 + $0xb8] sm:$0xff]  ;;  %v949_v44 = vld [vmem:[%s1784_s1 + $0xc8] sm:$0xff] }
   0xb   :  { %115 = vmatpush.bf16.msra.mxu3 %v103_v25  ;;  %911 = vmatmul.msk.bf16.vlgmr.msra.gmra.mxu0 %vm20_vm0, %v13_v26  ;;  %v160_v45 = vpack.c.bf16 %v944_v42, %v943_v39  ;;  %v187_v46 = vpack.c.bf16 %v949_v44, %v948_v43  ;;  %v955_v47 = vld [vmem:[%s1784_s1 + $0xe0] sm:$0xff]  ;;  %v956_v48 = vld [vmem:[%s1784_s1 + $0xe8] sm:$0xff]  ;;  %v978_v56 = vld [vmem:[%s1784_s1 + $0x150] sm:$0xff] }
   0xc   :  { %v934_v49 = vld [vmem:[%s1784_s1 + $0x80] sm:$0xff]  ;;  %917 = vmatmul.msk.bf16.vlgmr.msra.gmra.mxu1 %vm20_vm0, %v41_v30  ;;  %v935_v50 = vld [vmem:[%s1784_s1 + $0x88] sm:$0xff]  ;;  %142 = vmatpush.bf16.msrb.mxu0 %v132_v41  ;;  %v215_v54 = vpack.c.bf16 %v956_v48, %v955_v47  ;;  %v979_v57 = vld [vmem:[%s1784_s1 + $0x158] sm:$0xff] }
   0xd   :  { %924 = vmatmul.msk.bf16.vlgmr.msra.gmra.mxu2 %vm20_vm0, %v69_v31  ;;  %v941_v51 = vld [vmem:[%s1784_s1 + $0xa0] sm:$0xff]  ;;  %v942_v52 = vld [vmem:[%s1784_s1 + $0xa8] sm:$0xff]  ;;  %v131_v53 = vpack.c.bf16 %v935_v50, %v934_v49  ;;  %170 = vmatpush.bf16.msrb.mxu1 %v160_v45  ;;  %v300_v58 = vpack.c.bf16 %v979_v57, %v978_v56  ;;  %v985_v59 = vld [vmem:[%s1784_s1 + $0x170] sm:$0xff] }
   0xe   :  { %198 = vmatpush.bf16.msrb.mxu2 %v188_v36  ;;  %931 = vmatmul.msk.bf16.vlgmr.msra.gmra.mxu3 %vm20_vm0, %v97_v35  ;;  %v159_v55 = vpack.c.bf16 %v942_v52, %v941_v51  ;;  %v986_v60 = vld [vmem:[%s1784_s1 + $0x178] sm:$0xff]  ;;  %v964_v61 = vld [vmem:[%s1784_s1 + $0x110] sm:$0xff]  ;;  %v976_v4 = vld [vmem:[%s1784_s1 + $0x140] sm:$0xff] }
   0xf   :  { %226 = vmatpush.bf16.msrb.mxu3 %v216_v40  ;;  %v328_v62 = vpack.c.bf16 %v986_v60, %v985_v59  ;;  %v965_v63 = vld [vmem:[%s1784_s1 + $0x118] sm:$0xff]  ;;  %v971_v0 = vld [vmem:[%s1784_s1 + $0x130] sm:$0xff]  ;;  %v977_v5 = vld [vmem:[%s1784_s1 + $0x148] sm:$0xff] }
  0x10   :  { %v972_v1 = vld [vmem:[%s1784_s1 + $0x138] sm:$0xff]  ;;  %143 = vmatpush.bf16.msrb.mxu0 %v131_v53  ;;  %v244_v2 = vpack.c.bf16 %v965_v63, %v964_v61  ;;  %v983_v6 = vld [vmem:[%s1784_s1 + $0x160] sm:$0xff]  ;;  %v299_v7 = vpack.c.bf16 %v977_v5, %v976_v4  ;;  %v984_v8 = vld [vmem:[%s1784_s1 + $0x168] sm:$0xff] }
  0x11   :  { %v272_v3 = vpack.c.bf16 %v972_v1, %v971_v0  ;;  %171 = vmatpush.bf16.msrb.mxu1 %v159_v55  ;;  %v962_v9 = vld [vmem:[%s1784_s1 + $0x100] sm:$0xff]  ;;  %v963_v10 = vld [vmem:[%s1784_s1 + $0x108] sm:$0xff]  ;;  %v327_v11 = vpack.c.bf16 %v984_v8, %v983_v6  ;;  %v1006_v20 = vld [vmem:[%s1784_s1 + $0x1d0] sm:$0xff] }
  0x12   :  { %199 = vmatpush.bf16.msrb.mxu2 %v187_v46  ;;  %v243_v12 = vpack.c.bf16 %v963_v10, %v962_v9  ;;  %v969_v13 = vld [vmem:[%s1784_s1 + $0x120] sm:$0xff]  ;;  %v970_v14 = vld [vmem:[%s1784_s1 + $0x128] sm:$0xff]  ;;  %v1007_v21 = vld [vmem:[%s1784_s1 + $0x1d8] sm:$0xff] }
  0x13   :  { %227 = vmatpush.bf16.msrb.mxu3 %v215_v54  ;;  %v933_v15 = vld [vmem:[%s1785_s0 + $0x8] sm:$0x3]  ;;  %v271_v16 = vpack.c.bf16 %v970_v14, %v969_v13  ;;  %v940_v17 = vld [vmem:[%s1785_s0 + $0xa] sm:$0x3]  ;;  %v947_v18 = vld [vmem:[%s1785_s0 + $0xc] sm:$0x3]  ;;  %v412_v32 = vpack.c.bf16 %v1007_v21, %v1006_v20 }
  0x14   :  { %254 = vmatpush.bf16.msra.mxu0 %v244_v2  ;;  %v954_v19 = vld [vmem:[%s1785_s0 + $0xe] sm:$0x3]  ;;  %v1013_v22 = vld [vmem:[%s1784_s1 + $0x1f0] sm:$0xff]  ;;  %v125_v23 = vpack.c.bf16 %v933_v15, %v933_v15  ;;  %v1014_v24 = vld [vmem:[%s1784_s1 + $0x1f8] sm:$0xff]  ;;  %v153_v27 = vpack.c.bf16 %v940_v17, %v940_v17  ;;  %v181_v28 = vpack.c.bf16 %v947_v18, %v947_v18 }
  0x15   :  { %282 = vmatpush.bf16.msra.mxu1 %v272_v3  ;;  %v992_v25 = vld [vmem:[%s1784_s1 + $0x190] sm:$0xff]  ;;  %v993_v26 = vld [vmem:[%s1784_s1 + $0x198] sm:$0xff]  ;;  %v209_v31 = vpack.c.bf16 %v954_v19, %v954_v19  ;;  %v440_v33 = vpack.c.bf16 %v1014_v24, %v1013_v22  ;;  %v1004_v35 = vld [vmem:[%s1784_s1 + $0x1c0] sm:$0xff] }
  0x16   :  { %310 = vmatpush.bf16.msra.mxu2 %v300_v58  ;;  %v999_v29 = vld [vmem:[%s1784_s1 + $0x1b0] sm:$0xff]  ;;  %v1000_v30 = vld [vmem:[%s1784_s1 + $0x1b8] sm:$0xff]  ;;  %v356_v34 = vpack.c.bf16 %v993_v26, %v992_v25  ;;  %v1005_v36 = vld [vmem:[%s1784_s1 + $0x1c8] sm:$0xff] }
  0x17   :  { %338 = vmatpush.bf16.msra.mxu3 %v328_v62  ;;  %v1011_v37 = vld [vmem:[%s1784_s1 + $0x1e0] sm:$0xff]  ;;  %v384_v38 = vpack.c.bf16 %v1000_v30, %v999_v29  ;;  %v1012_v39 = vld [vmem:[%s1784_s1 + $0x1e8] sm:$0xff]  ;;  %v411_v44 = vpack.c.bf16 %v1005_v36, %v1004_v35  ;;  %v961_v48 = vld [vmem:[%s1785_s0 + $0x10] sm:$0x3] }
  0x18   :  { %255 = vmatpush.bf16.msra.mxu0 %v243_v12  ;;  %v990_v40 = vld [vmem:[%s1784_s1 + $0x180] sm:$0xff]  ;;  %v991_v41 = vld [vmem:[%s1784_s1 + $0x188] sm:$0xff]  ;;  %v439_v45 = vpack.c.bf16 %v1012_v39, %v1011_v37  ;;  %v968_v49 = vld [vmem:[%s1785_s0 + $0x12] sm:$0x3]  ;;  %v237_v55 = vpack.c.bf16 %v961_v48, %v961_v48 }
  0x19   :  { %283 = vmatpush.bf16.msra.mxu1 %v271_v16  ;;  %v997_v42 = vld [vmem:[%s1784_s1 + $0x1a0] sm:$0xff]  ;;  %v998_v43 = vld [vmem:[%s1784_s1 + $0x1a8] sm:$0xff]  ;;  %v355_v46 = vpack.c.bf16 %v991_v41, %v990_v40  ;;  %v975_v50 = vld [vmem:[%s1785_s0 + $0x14] sm:$0x3]  ;;  %v265_v59 = vpack.c.bf16 %v968_v49, %v968_v49 }
  0x1a   :  { %311 = vmatpush.bf16.msra.mxu2 %v299_v7  ;;  %v383_v47 = vpack.c.bf16 %v998_v43, %v997_v42  ;;  %v982_v51 = vld [vmem:[%s1785_s0 + $0x16] sm:$0x3]  ;;  %v1035_v53 = vld [vmem:[%s1784_s1 + $0x258] sm:$0xff]  ;;  %v293_v60 = vpack.c.bf16 %v975_v50, %v975_v50  ;;  %v1032_v3 = vld [vmem:[%s1784_s1 + $0x240] sm:$0xff] }
  0x1b   :  { %339 = vmatpush.bf16.msra.mxu3 %v327_v11  ;;  %938 = vmatmul.msk.bf16.vlgmr.msrb.gmra.mxu0 %vm20_vm0, %v125_v23  ;;  %v1034_v52 = vld [vmem:[%s1784_s1 + $0x250] sm:$0xff]  ;;  %v1042_v56 = vld [vmem:[%s1784_s1 + $0x278] sm:$0xff]  ;;  %v321_v63 = vpack.c.bf16 %v982_v51, %v982_v51  ;;  %v1033_v4 = vld [vmem:[%s1784_s1 + $0x248] sm:$0xff] }
  0x1c   :  { %945 = vmatmul.msk.bf16.vlgmr.msrb.gmra.mxu1 %vm20_vm0, %v153_v27  ;;  %366 = vmatpush.bf16.msrb.mxu0 %v356_v34  ;;  %v1041_v54 = vld [vmem:[%s1784_s1 + $0x270] sm:$0xff]  ;;  %v1021_v58 = vld [vmem:[%s1784_s1 + $0x218] sm:$0xff]  ;;  %v524_v0 = vpack.c.bf16 %v1035_v53, %v1034_v52  ;;  %v1039_v5 = vld [vmem:[%s1784_s1 + $0x260] sm:$0xff]  ;;  %v523_v12 = vpack.c.bf16 %v1033_v4, %v1032_v3 }
  0x1d   :  { %952 = vmatmul.msk.bf16.vlgmr.msrb.gmra.mxu2 %vm20_vm0, %v181_v28  ;;  %394 = vmatpush.bf16.msrb.mxu1 %v384_v38  ;;  %v1020_v57 = vld [vmem:[%s1784_s1 + $0x210] sm:$0xff]  ;;  %v1028_v62 = vld [vmem:[%s1784_s1 + $0x238] sm:$0xff]  ;;  %v552_v1 = vpack.c.bf16 %v1042_v56, %v1041_v54  ;;  %v1040_v7 = vld [vmem:[%s1784_s1 + $0x268] sm:$0xff] }
  0x1e   :  { %959 = vmatmul.msk.bf16.vlgmr.msrb.gmra.mxu3 %vm20_vm0, %v209_v31  ;;  %422 = vmatpush.bf16.msrb.mxu2 %v412_v32  ;;  %v1027_v61 = vld [vmem:[%s1784_s1 + $0x230] sm:$0xff]  ;;  %v468_v2 = vpack.c.bf16 %v1021_v58, %v1020_v57  ;;  %v1018_v8 = vld [vmem:[%s1784_s1 + $0x200] sm:$0xff]  ;;  %v1019_v9 = vld [vmem:[%s1784_s1 + $0x208] sm:$0xff]  ;;  %v551_v13 = vpack.c.bf16 %v1040_v7, %v1039_v5 }
  0x1f   :  { %450 = vmatpush.bf16.msrb.mxu3 %v440_v33  ;;  %v496_v6 = vpack.c.bf16 %v1028_v62, %v1027_v61  ;;  %v1025_v10 = vld [vmem:[%s1784_s1 + $0x220] sm:$0xff]  ;;  %v1026_v11 = vld [vmem:[%s1784_s1 + $0x228] sm:$0xff]  ;;  %v467_v14 = vpack.c.bf16 %v1019_v9, %v1018_v8  ;;  %v989_v16 = vld [vmem:[%s1785_s0 + $0x18] sm:$0x3] }
  0x20   :  { %367 = vmatpush.bf16.msrb.mxu0 %v355_v46  ;;  %v495_v15 = vpack.c.bf16 %v1026_v11, %v1025_v10  ;;  %v996_v17 = vld [vmem:[%s1785_s0 + $0x1a] sm:$0x3]  ;;  %v1003_v18 = vld [vmem:[%s1785_s0 + $0x1c] sm:$0x3]  ;;  %v1010_v19 = vld [vmem:[%s1785_s0 + $0x1e] sm:$0x3]  ;;  %v349_v23 = vpack.c.bf16 %v989_v16, %v989_v16 }
  0x21   :  { %395 = vmatpush.bf16.msrb.mxu1 %v383_v47  ;;  %v1062_v20 = vld [vmem:[%s1784_s1 + $0x2d0] sm:$0xff]  ;;  %v1063_v21 = vld [vmem:[%s1784_s1 + $0x2d8] sm:$0xff]  ;;  %v377_v27 = vpack.c.bf16 %v996_v17, %v996_v17  ;;  %v405_v28 = vpack.c.bf16 %v1003_v18, %v1003_v18  ;;  %v433_v31 = vpack.c.bf16 %v1010_v19, %v1010_v19  ;;  %v1060_v35 = vld [vmem:[%s1784_s1 + $0x2c0] sm:$0xff] }
  0x22   :  { %423 = vmatpush.bf16.msrb.mxu2 %v411_v44  ;;  %v1069_v22 = vld [vmem:[%s1784_s1 + $0x2f0] sm:$0xff]  ;;  %v1070_v24 = vld [vmem:[%s1784_s1 + $0x2f8] sm:$0xff]  ;;  %v636_v32 = vpack.c.bf16 %v1063_v21, %v1062_v20  ;;  %v1061_v36 = vld [vmem:[%s1784_s1 + $0x2c8] sm:$0xff] }
  0x23   :  { %451 = vmatpush.bf16.msrb.mxu3 %v439_v45  ;;  %v1048_v25 = vld [vmem:[%s1784_s1 + $0x290] sm:$0xff]  ;;  %v1049_v26 = vld [vmem:[%s1784_s1 + $0x298] sm:$0xff]  ;;  %v664_v33 = vpack.c.bf16 %v1070_v24, %v1069_v22  ;;  %v1067_v37 = vld [vmem:[%s1784_s1 + $0x2e0] sm:$0xff]  ;;  %v635_v44 = vpack.c.bf16 %v1061_v36, %v1060_v35 }
  0x24   :  { %v1055_v29 = vld [vmem:[%s1784_s1 + $0x2b0] sm:$0xff]  ;;  %v1056_v30 = vld [vmem:[%s1784_s1 + $0x2b8] sm:$0xff]  ;;  %v580_v34 = vpack.c.bf16 %v1049_v26, %v1048_v25  ;;  %v1068_v39 = vld [vmem:[%s1784_s1 + $0x2e8] sm:$0xff] }
  0x25   :  { %v608_v38 = vpack.c.bf16 %v1056_v30, %v1055_v29  ;;  %v1046_v40 = vld [vmem:[%s1784_s1 + $0x280] sm:$0xff]  ;;  %v1047_v41 = vld [vmem:[%s1784_s1 + $0x288] sm:$0xff]  ;;  %v663_v45 = vpack.c.bf16 %v1068_v39, %v1067_v37  ;;  %v1090_v52 = vld [vmem:[%s1784_s1 + $0x350] sm:$0xff] }
  0x26   :  { %v1053_v42 = vld [vmem:[%s1784_s1 + $0x2a0] sm:$0xff]  ;;  %v1054_v43 = vld [vmem:[%s1784_s1 + $0x2a8] sm:$0xff]  ;;  %v579_v46 = vpack.c.bf16 %v1047_v41, %v1046_v40  ;;  %v1091_v53 = vld [vmem:[%s1784_s1 + $0x358] sm:$0xff] }
  0x27   :  { %v607_v47 = vpack.c.bf16 %v1054_v43, %v1053_v42  ;;  %v1017_v48 = vld [vmem:[%s1785_s0 + $0x20] sm:$0x3]  ;;  %v1024_v49 = vld [vmem:[%s1785_s0 + $0x22] sm:$0x3]  ;;  %v1031_v50 = vld [vmem:[%s1785_s0 + $0x24] sm:$0x3] }
  0x28   :  { %v1038_v51 = vld [vmem:[%s1785_s0 + $0x26] sm:$0x3]  ;;  %v1097_v54 = vld [vmem:[%s1784_s1 + $0x370] sm:$0xff]  ;;  %v1098_v56 = vld [vmem:[%s1784_s1 + $0x378] sm:$0xff] }
  0x29   :  { %v1076_v57 = vld [vmem:[%s1784_s1 + $0x310] sm:$0xff]  ;;  %v1077_v58 = vld [vmem:[%s1784_s1 + $0x318] sm:$0xff]  ;;  %v1088_v3 = vld [vmem:[%s1784_s1 + $0x340] sm:$0xff] }
  0x2a   :  { %v1083_v61 = vld [vmem:[%s1784_s1 + $0x330] sm:$0xff]  ;;  %v1084_v62 = vld [vmem:[%s1784_s1 + $0x338] sm:$0xff]  ;;  %v1089_v4 = vld [vmem:[%s1784_s1 + $0x348] sm:$0xff] }
  0x2b   :  { %966 = vmatmul.msk.bf16.vlgmr.msra.gmra.mxu0 %vm20_vm0, %v237_v55  ;;  %v461_v55 = vpack.c.bf16 %v1017_v48, %v1017_v48  ;;  %v1095_v5 = vld [vmem:[%s1784_s1 + $0x360] sm:$0xff]  ;;  %v1096_v7 = vld [vmem:[%s1784_s1 + $0x368] sm:$0xff]  ;;  %v1118_v20 = vld [vmem:[%s1784_s1 + $0x3d0] sm:$0xff] }
  0x2c   :  { %973 = vmatmul.msk.bf16.vlgmr.msra.gmra.mxu1 %vm20_vm0, %v265_v59  ;;  %478 = vmatpush.bf16.msra.mxu0 %v468_v2  ;;  %v489_v59 = vpack.c.bf16 %v1024_v49, %v1024_v49  ;;  %v692_v2 = vpack.c.bf16 %v1077_v58, %v1076_v57  ;;  %v1074_v8 = vld [vmem:[%s1784_s1 + $0x300] sm:$0xff]  ;;  %v1075_v9 = vld [vmem:[%s1784_s1 + $0x308] sm:$0xff]  ;;  %v1119_v21 = vld [vmem:[%s1784_s1 + $0x3d8] sm:$0xff] }
  0x2d   :  { %980 = vmatmul.msk.bf16.vlgmr.msra.gmra.mxu2 %vm20_vm0, %v293_v60  ;;  %506 = vmatpush.bf16.msra.mxu1 %v496_v6  ;;  %v517_v60 = vpack.c.bf16 %v1031_v50, %v1031_v50  ;;  %v720_v6 = vpack.c.bf16 %v1084_v62, %v1083_v61  ;;  %v1081_v10 = vld [vmem:[%s1784_s1 + $0x320] sm:$0xff]  ;;  %v1082_v11 = vld [vmem:[%s1784_s1 + $0x328] sm:$0xff]  ;;  %v1125_v22 = vld [vmem:[%s1784_s1 + $0x3f0] sm:$0xff] }
  0x2e   :  { %987 = vmatmul.msk.bf16.vlgmr.msra.gmra.mxu3 %vm20_vm0, %v321_v63  ;;  %534 = vmatpush.bf16.msra.mxu2 %v524_v0  ;;  %v545_v63 = vpack.c.bf16 %v1038_v51, %v1038_v51  ;;  %v748_v0 = vpack.c.bf16 %v1091_v53, %v1090_v52  ;;  %v1045_v16 = vld [vmem:[%s1785_s0 + $0x28] sm:$0x3]  ;;  %v1052_v17 = vld [vmem:[%s1785_s0 + $0x2a] sm:$0x3]  ;;  %v1059_v18 = vld [vmem:[%s1785_s0 + $0x2c] sm:$0x3] }
  0x2f   :  { %562 = vmatpush.bf16.msra.mxu3 %v552_v1  ;;  %v776_v1 = vpack.c.bf16 %v1098_v56, %v1097_v54  ;;  %v1066_v19 = vld [vmem:[%s1785_s0 + $0x2e] sm:$0x3]  ;;  %v1126_v24 = vld [vmem:[%s1784_s1 + $0x3f8] sm:$0xff]  ;;  %v1104_v25 = vld [vmem:[%s1784_s1 + $0x390] sm:$0xff] }
  0x30   :  { %479 = vmatpush.bf16.msra.mxu0 %v467_v14  ;;  %v691_v14 = vpack.c.bf16 %v1075_v9, %v1074_v8  ;;  %v1105_v26 = vld [vmem:[%s1784_s1 + $0x398] sm:$0xff]  ;;  %v1111_v29 = vld [vmem:[%s1784_s1 + $0x3b0] sm:$0xff]  ;;  %v1116_v35 = vld [vmem:[%s1784_s1 + $0x3c0] sm:$0xff] }
  0x31   :  { %507 = vmatpush.bf16.msra.mxu1 %v495_v15  ;;  %v719_v15 = vpack.c.bf16 %v1082_v11, %v1081_v10  ;;  %v1112_v30 = vld [vmem:[%s1784_s1 + $0x3b8] sm:$0xff]  ;;  %v1117_v36 = vld [vmem:[%s1784_s1 + $0x3c8] sm:$0xff]  ;;  %v1123_v37 = vld [vmem:[%s1784_s1 + $0x3e0] sm:$0xff] }
  0x32   :  { %535 = vmatpush.bf16.msra.mxu2 %v523_v12  ;;  %v747_v12 = vpack.c.bf16 %v1089_v4, %v1088_v3  ;;  %v1124_v39 = vld [vmem:[%s1784_s1 + $0x3e8] sm:$0xff]  ;;  %v1102_v40 = vld [vmem:[%s1784_s1 + $0x380] sm:$0xff]  ;;  %v1073_v48 = vld [vmem:[%s1785_s0 + $0x30] sm:$0x3] }
  0x33   :  { %563 = vmatpush.bf16.msra.mxu3 %v551_v13  ;;  %v775_v13 = vpack.c.bf16 %v1096_v7, %v1095_v5  ;;  %v1103_v41 = vld [vmem:[%s1784_s1 + $0x388] sm:$0xff]  ;;  %v1109_v42 = vld [vmem:[%s1784_s1 + $0x3a0] sm:$0xff]  ;;  %v1080_v49 = vld [vmem:[%s1785_s0 + $0x32] sm:$0x3]  ;;  %v685_v52 = vpack.c.bf16 %v1073_v48, %v1073_v48 }
  0x34   :  { %v1110_v43 = vld [vmem:[%s1784_s1 + $0x3a8] sm:$0xff]  ;;  %v1087_v50 = vld [vmem:[%s1785_s0 + $0x34] sm:$0x3]  ;;  %v1094_v51 = vld [vmem:[%s1785_s0 + $0x36] sm:$0x3]  ;;  %v713_v53 = vpack.c.bf16 %v1080_v49, %v1080_v49 }
  0x35   :  { %v741_v54 = vpack.c.bf16 %v1087_v50, %v1087_v50  ;;  %v1101_v56 = vld [vmem:[%s1785_s0 + $0x38] sm:$0x3]  ;;  %v1108_v57 = vld [vmem:[%s1785_s0 + $0x3a] sm:$0x3]  ;;  %v1115_v58 = vld [vmem:[%s1785_s0 + $0x3c] sm:$0x3] }
  0x36   :  { %v825_v61 = vpack.c.bf16 %v1108_v57, %v1108_v57  ;;  %v853_v62 = vpack.c.bf16 %v1115_v58, %v1115_v58 }
  0x3b   :  { %994 = vmatmul.msk.bf16.vlgmr.msrb.gmra.mxu0 %vm20_vm0, %v349_v23  ;;  %v573_v23 = vpack.c.bf16 %v1045_v16, %v1045_v16 }
  0x3c   :  { %1001 = vmatmul.msk.bf16.vlgmr.msrb.gmra.mxu1 %vm20_vm0, %v377_v27  ;;  %590 = vmatpush.bf16.msrb.mxu0 %v580_v34  ;;  %v601_v27 = vpack.c.bf16 %v1052_v17, %v1052_v17  ;;  %v804_v34 = vpack.c.bf16 %v1105_v26, %v1104_v25 }
  0x3d   :  { %1008 = vmatmul.msk.bf16.vlgmr.msrb.gmra.mxu2 %vm20_vm0, %v405_v28  ;;  %618 = vmatpush.bf16.msrb.mxu1 %v608_v38  ;;  %v629_v28 = vpack.c.bf16 %v1059_v18, %v1059_v18  ;;  %v832_v38 = vpack.c.bf16 %v1112_v30, %v1111_v29 }
  0x3e   :  { %1015 = vmatmul.msk.bf16.vlgmr.msrb.gmra.mxu3 %vm20_vm0, %v433_v31  ;;  %646 = vmatpush.bf16.msrb.mxu2 %v636_v32  ;;  %v657_v31 = vpack.c.bf16 %v1066_v19, %v1066_v19  ;;  %v860_v32 = vpack.c.bf16 %v1119_v21, %v1118_v20 }
  0x3f   :  { %674 = vmatpush.bf16.msrb.mxu3 %v664_v33  ;;  %v888_v33 = vpack.c.bf16 %v1126_v24, %v1125_v22 }
  0x40   :  { %591 = vmatpush.bf16.msrb.mxu0 %v579_v46  ;;  %v803_v46 = vpack.c.bf16 %v1103_v41, %v1102_v40 }
  0x41   :  { %619 = vmatpush.bf16.msrb.mxu1 %v607_v47  ;;  %v831_v47 = vpack.c.bf16 %v1110_v43, %v1109_v42 }
  0x42   :  { %647 = vmatpush.bf16.msrb.mxu2 %v635_v44  ;;  %v859_v44 = vpack.c.bf16 %v1117_v36, %v1116_v35 }
  0x43   :  { %675 = vmatpush.bf16.msrb.mxu3 %v663_v45  ;;  %v887_v45 = vpack.c.bf16 %v1124_v39, %v1123_v37 }
  0x4b   :  { %1022 = vmatmul.msk.bf16.vlgmr.msra.gmra.mxu0 %vm20_vm0, %v461_v55  ;;  %v769_v55 = vpack.c.bf16 %v1094_v51, %v1094_v51 }
  0x4c   :  { %1029 = vmatmul.msk.bf16.vlgmr.msra.gmra.mxu1 %vm20_vm0, %v489_v59  ;;  %702 = vmatpush.bf16.msra.mxu0 %v692_v2  ;;  %v1122_v59 = vld [vmem:[%s1785_s0 + $0x3e] sm:$0x3] }
  0x4d   :  { %1036 = vmatmul.msk.bf16.vlgmr.msra.gmra.mxu2 %vm20_vm0, %v517_v60  ;;  %730 = vmatpush.bf16.msra.mxu1 %v720_v6  ;;  %v797_v60 = vpack.c.bf16 %v1101_v56, %v1101_v56 }
  0x4e   :  { %1043 = vmatmul.msk.bf16.vlgmr.msra.gmra.mxu3 %vm20_vm0, %v545_v63  ;;  %758 = vmatpush.bf16.msra.mxu2 %v748_v0  ;;  %v881_v63 = vpack.c.bf16 %v1122_v59, %v1122_v59 }
  0x4f   :  { %786 = vmatpush.bf16.msra.mxu3 %v776_v1 }
  0x50   :  { %703 = vmatpush.bf16.msra.mxu0 %v691_v14 }
  0x51   :  { %731 = vmatpush.bf16.msra.mxu1 %v719_v15 }
  0x52   :  { %759 = vmatpush.bf16.msra.mxu2 %v747_v12 }
  0x53   :  { %787 = vmatpush.bf16.msra.mxu3 %v775_v13 }
  0x5b   :  { %1050 = vmatmul.msk.bf16.vlgmr.msrb.gmra.mxu0 %vm20_vm0, %v573_v23 }
  0x5c   :  { %1057 = vmatmul.msk.bf16.vlgmr.msrb.gmra.mxu1 %vm20_vm0, %v601_v27  ;;  %814 = vmatpush.bf16.msrb.mxu0 %v804_v34 }
  0x5d   :  { %1064 = vmatmul.msk.bf16.vlgmr.msrb.gmra.mxu2 %vm20_vm0, %v629_v28  ;;  %842 = vmatpush.bf16.msrb.mxu1 %v832_v38 }
  0x5e   :  { %1071 = vmatmul.msk.bf16.vlgmr.msrb.gmra.mxu3 %vm20_vm0, %v657_v31  ;;  %870 = vmatpush.bf16.msrb.mxu2 %v860_v32 }
  0x5f   :  { %898 = vmatpush.bf16.msrb.mxu3 %v888_v33 }
  0x60   :  { %815 = vmatpush.bf16.msrb.mxu0 %v803_v46 }
  0x61   :  { %843 = vmatpush.bf16.msrb.mxu1 %v831_v47 }
  0x62   :  { %871 = vmatpush.bf16.msrb.mxu2 %v859_v44 }
  0x63   :  { %899 = vmatpush.bf16.msrb.mxu3 %v887_v45 }
  0x6b   :  { %1078 = vmatmul.msk.bf16.vlgmr.msra.gmra.mxu0 %vm20_vm0, %v685_v52 }
  0x6c   :  { %1085 = vmatmul.msk.bf16.vlgmr.msra.gmra.mxu1 %vm20_vm0, %v713_v53 }
  0x6d   :  { %1092 = vmatmul.msk.bf16.vlgmr.msra.gmra.mxu2 %vm20_vm0, %v741_v54 }
  0x6e   :  { %1099 = vmatmul.msk.bf16.vlgmr.msra.gmra.mxu3 %vm20_vm0, %v769_v55 }
  0x7b   :  { %1106 = vmatmul.msk.bf16.vlgmr.msrb.gmra.mxu0 %vm20_vm0, %v797_v60 }
  0x7c   :  { %1113 = vmatmul.msk.bf16.vlgmr.msrb.gmra.mxu1 %vm20_vm0, %v825_v61 }
  0x7d   :  { %1120 = vmatmul.msk.bf16.vlgmr.msrb.gmra.mxu2 %vm20_vm0, %v853_v62 }
  0x7e   :  { %1127 = vmatmul.msk.bf16.vlgmr.msrb.gmra.mxu3 %vm20_vm0, %v881_v63 }
  0x88   :  { %v33_v0 = vpop.f32.mrf.mxu0 }
  0x89   :  { %38 = vst.msk [vmem:[%s1786_s2] sm:$0x3] %vm37_vm1, %v33_v0  ;;  %v61_v1 = vpop.f32.mrf.mxu1 }
  0x8a   :  { %918 = vst.msk [vmem:[%s1786_s2 + $0x2] sm:$0x3] %vm37_vm1, %v61_v1 }
  0x90   :  { %v89_v2 = vpop.f32.mrf.mxu2  ;;  %v35_v4 = vpop.f32.mrf.mxu0 }
  0x91   :  { %925 = vst.msk [vmem:[%s1786_s2 + $0x4] sm:$0x3] %vm37_vm1, %v89_v2  ;;  %v117_v3 = vpop.f32.mrf.mxu3  ;;  %v63_v5 = vpop.f32.mrf.mxu1 }
  0x92   :  { %932 = vst.msk [vmem:[%s1786_s2 + $0x6] sm:$0x3] %vm37_vm1, %v117_v3 }
  0x98   :  { %v91_v6 = vpop.f32.mrf.mxu2  ;;  %v145_v8 = vpop.f32.mrf.mxu0 }
  0x99   :  { %v119_v7 = vpop.f32.mrf.mxu3  ;;  %939 = vst.msk [vmem:[%s1786_s2 + $0x8] sm:$0x3] %vm37_vm1, %v145_v8  ;;  %v173_v9 = vpop.f32.mrf.mxu1 }
  0x9a   :  { %946 = vst.msk [vmem:[%s1786_s2 + $0xa] sm:$0x3] %vm37_vm1, %v173_v9 }
  0xa0   :  { %v201_v10 = vpop.f32.mrf.mxu2  ;;  %v147_v12 = vpop.f32.mrf.mxu0 }
  0xa1   :  { %953 = vst.msk [vmem:[%s1786_s2 + $0xc] sm:$0x3] %vm37_vm1, %v201_v10  ;;  %v229_v11 = vpop.f32.mrf.mxu3  ;;  %v175_v13 = vpop.f32.mrf.mxu1 }
  0xa2   :  { %960 = vst.msk [vmem:[%s1786_s2 + $0xe] sm:$0x3] %vm37_vm1, %v229_v11 }
  0xa8   :  { %v203_v14 = vpop.f32.mrf.mxu2  ;;  %v257_v16 = vpop.f32.mrf.mxu0 }
  0xa9   :  { %v231_v15 = vpop.f32.mrf.mxu3  ;;  %967 = vst.msk [vmem:[%s1786_s2 + $0x10] sm:$0x3] %vm37_vm1, %v257_v16  ;;  %v285_v17 = vpop.f32.mrf.mxu1 }
  0xaa   :  { %974 = vst.msk [vmem:[%s1786_s2 + $0x12] sm:$0x3] %vm37_vm1, %v285_v17 }
  0xb0   :  { %v313_v18 = vpop.f32.mrf.mxu2  ;;  %v259_v20 = vpop.f32.mrf.mxu0 }
  0xb1   :  { %981 = vst.msk [vmem:[%s1786_s2 + $0x14] sm:$0x3] %vm37_vm1, %v313_v18  ;;  %v341_v19 = vpop.f32.mrf.mxu3  ;;  %v287_v21 = vpop.f32.mrf.mxu1 }
  0xb2   :  { %988 = vst.msk [vmem:[%s1786_s2 + $0x16] sm:$0x3] %vm37_vm1, %v341_v19 }
  0xb8   :  { %v315_v22 = vpop.f32.mrf.mxu2  ;;  %v369_v24 = vpop.f32.mrf.mxu0 }
  0xb9   :  { %v343_v23 = vpop.f32.mrf.mxu3  ;;  %995 = vst.msk [vmem:[%s1786_s2 + $0x18] sm:$0x3] %vm37_vm1, %v369_v24  ;;  %v397_v25 = vpop.f32.mrf.mxu1 }
  0xba   :  { %1002 = vst.msk [vmem:[%s1786_s2 + $0x1a] sm:$0x3] %vm37_vm1, %v397_v25 }
  0xc0   :  { %v425_v26 = vpop.f32.mrf.mxu2  ;;  %v371_v28 = vpop.f32.mrf.mxu0 }
  0xc1   :  { %1009 = vst.msk [vmem:[%s1786_s2 + $0x1c] sm:$0x3] %vm37_vm1, %v425_v26  ;;  %v453_v27 = vpop.f32.mrf.mxu3  ;;  %v399_v29 = vpop.f32.mrf.mxu1 }
  0xc2   :  { %1016 = vst.msk [vmem:[%s1786_s2 + $0x1e] sm:$0x3] %vm37_vm1, %v453_v27 }
  0xc8   :  { %v427_v30 = vpop.f32.mrf.mxu2  ;;  %v481_v32 = vpop.f32.mrf.mxu0 }
  0xc9   :  { %v455_v31 = vpop.f32.mrf.mxu3  ;;  %1023 = vst.msk [vmem:[%s1786_s2 + $0x20] sm:$0x3] %vm37_vm1, %v481_v32  ;;  %v509_v33 = vpop.f32.mrf.mxu1 }
  0xca   :  { %1030 = vst.msk [vmem:[%s1786_s2 + $0x22] sm:$0x3] %vm37_vm1, %v509_v33 }
  0xd0   :  { %v537_v34 = vpop.f32.mrf.mxu2  ;;  %v483_v36 = vpop.f32.mrf.mxu0 }
  0xd1   :  { %1037 = vst.msk [vmem:[%s1786_s2 + $0x24] sm:$0x3] %vm37_vm1, %v537_v34  ;;  %v565_v35 = vpop.f32.mrf.mxu3  ;;  %v511_v37 = vpop.f32.mrf.mxu1 }
  0xd2   :  { %1044 = vst.msk [vmem:[%s1786_s2 + $0x26] sm:$0x3] %vm37_vm1, %v565_v35 }
  0xd8   :  { %v539_v38 = vpop.f32.mrf.mxu2  ;;  %v593_v40 = vpop.f32.mrf.mxu0 }
  0xd9   :  { %v567_v39 = vpop.f32.mrf.mxu3  ;;  %1051 = vst.msk [vmem:[%s1786_s2 + $0x28] sm:$0x3] %vm37_vm1, %v593_v40  ;;  %v621_v41 = vpop.f32.mrf.mxu1 }
  0xda   :  { %1058 = vst.msk [vmem:[%s1786_s2 + $0x2a] sm:$0x3] %vm37_vm1, %v621_v41 }
  0xe0   :  { %v649_v42 = vpop.f32.mrf.mxu2  ;;  %v595_v44 = vpop.f32.mrf.mxu0 }
  0xe1   :  { %1065 = vst.msk [vmem:[%s1786_s2 + $0x2c] sm:$0x3] %vm37_vm1, %v649_v42  ;;  %v677_v43 = vpop.f32.mrf.mxu3  ;;  %v623_v45 = vpop.f32.mrf.mxu1 }
  0xe2   :  { %1072 = vst.msk [vmem:[%s1786_s2 + $0x2e] sm:$0x3] %vm37_vm1, %v677_v43 }
  0xe8   :  { %v651_v46 = vpop.f32.mrf.mxu2  ;;  %v705_v48 = vpop.f32.mrf.mxu0 }
  0xe9   :  { %v679_v47 = vpop.f32.mrf.mxu3  ;;  %1079 = vst.msk [vmem:[%s1786_s2 + $0x30] sm:$0x3] %vm37_vm1, %v705_v48  ;;  %v733_v49 = vpop.f32.mrf.mxu1 }
  0xea   :  { %1086 = vst.msk [vmem:[%s1786_s2 + $0x32] sm:$0x3] %vm37_vm1, %v733_v49 }
  0xf0   :  { %v761_v50 = vpop.f32.mrf.mxu2  ;;  %v707_v52 = vpop.f32.mrf.mxu0 }
  0xf1   :  { %1093 = vst.msk [vmem:[%s1786_s2 + $0x34] sm:$0x3] %vm37_vm1, %v761_v50  ;;  %v789_v51 = vpop.f32.mrf.mxu3  ;;  %v735_v53 = vpop.f32.mrf.mxu1 }
  0xf2   :  { %1100 = vst.msk [vmem:[%s1786_s2 + $0x36] sm:$0x3] %vm37_vm1, %v789_v51 }
  0xf8   :  { %v763_v54 = vpop.f32.mrf.mxu2  ;;  %v817_v56 = vpop.f32.mrf.mxu0 }
  0xf9   :  { %v791_v55 = vpop.f32.mrf.mxu3  ;;  %1107 = vst.msk [vmem:[%s1786_s2 + $0x38] sm:$0x3] %vm37_vm1, %v817_v56  ;;  %v845_v57 = vpop.f32.mrf.mxu1 }
  0xfa   :  { %1114 = vst.msk [vmem:[%s1786_s2 + $0x3a] sm:$0x3] %vm37_vm1, %v845_v57 }
 0x100   :  { %v873_v58 = vpop.f32.mrf.mxu2  ;;  %v819_v60 = vpop.f32.mrf.mxu0 }
 0x101   :  { %1121 = vst.msk [vmem:[%s1786_s2 + $0x3c] sm:$0x3] %vm37_vm1, %v873_v58  ;;  %v901_v59 = vpop.f32.mrf.mxu3  ;;  %v847_v61 = vpop.f32.mrf.mxu1 }
 0x102   :  { %1128 = vst.msk [vmem:[%s1786_s2 + $0x3e] sm:$0x3] %vm37_vm1, %v901_v59 }
 0x108   :  { %v875_v62 = vpop.f32.mrf.mxu2 }
 0x109   :  { %v903_v63 = vpop.f32.mrf.mxu3 }

</bundles_post_ra>
